<compile_context>
chip_gen: v5e
topology: v5e:2x2
jax: 0.10.0
libtpu: 0.0.40
codegen_flags: <defaults>
</compile_context>

<pallas_src>
import functools
import math

import jax
import jax.numpy as jnp
from jax.experimental import pallas as pl
from jax.experimental.pallas import tpu as pltpu


# Row layout of the packed (NUM_VEC_ROWS, d_model) "small vector" operand.
ROW_SELF_B = 0            # rows 0..3  : self-attn  bq, bk, bv, bo
ROW_CROSS_B = 4           # rows 4..7  : cross-attn bq, bk, bv, bo
ROW_FFN_B2 = 8
ROW_LN1_G, ROW_LN1_B = 9, 10
ROW_LN2_G, ROW_LN2_B = 11, 12
ROW_LN3_G, ROW_LN3_B = 13, 14
NUM_VEC_ROWS = 16         # padded to a multiple of 8 sublanes


# ----------------------------------------------------------------------------
# Single fused kernel: one batch element per grid step.
# ----------------------------------------------------------------------------
def decoder_layer_kernel(x_ref, enc_ref,
                         swq_ref, swk_ref, swv_ref, swo_ref,
                         cwq_ref, cwk_ref, cwv_ref, cwo_ref,
                         w1_ref, b1_ref, w2_ref, vecs_ref,
                         out_ref, *, num_heads, mxu_dtype):
    f32 = jnp.float32
    x = x_ref[...].astype(f32)              # (Sq, D)
    enc = enc_ref[...].astype(f32)          # (Sk, D)

    def vrow(i):                            # one packed (1, D) vector, f32
        return vecs_ref[i:i + 1, :].astype(f32)

    def mm(a, b):                           # MXU matmul, f32 accumulation
        return jnp.dot(a.astype(mxu_dtype), b.astype(mxu_dtype),
                       preferred_element_type=f32)

    def mha(xq, xkv, wq_ref, wk_ref, wv_ref, wo_ref, brow, causal):
        sq, d = xq.shape
        sk = xkv.shape[0]
        dh = d // num_heads
        scale = 1.0 / math.sqrt(dh)

        # Lane-dense full-width projections (good MXU fill), f32 results.
        q = mm(xq, wq_ref[...]) + vrow(brow + 0)        # (Sq, D)
        k = mm(xkv, wk_ref[...]) + vrow(brow + 1)       # (Sk, D)
        v = mm(xkv, wv_ref[...]) + vrow(brow + 2)       # (Sk, D)

        if causal:
            # In-kernel causal no-peak mask (no S^2 operand from HBM).
            row_id = jax.lax.broadcasted_iota(jnp.int32, (sq, sk), 0)
            col_id = jax.lax.broadcasted_iota(jnp.int32, (sq, sk), 1)
            keep = row_id >= col_id
        else:
            keep = None

        wo = wo_ref[...]
        out = jnp.zeros((sq, d), f32)
        # Static unrolled head loop; no (Sq,D)->(H,Sq,dh) transposes.
        # TODO(synk): at production dims make the head a grid axis instead.
        for h in range(num_heads):
            sl = slice(h * dh, (h + 1) * dh)
            # (Sq, dh) @ (Sk, dh)^T  -> (Sq, Sk), contraction on dh.
            s = jax.lax.dot_general(
                q[:, sl].astype(mxu_dtype), k[:, sl].astype(mxu_dtype),
                dimension_numbers=(((1,), (1,)), ((), ())),
                preferred_element_type=f32) * scale
            if keep is not None:
                s = jnp.where(keep, s, -1e9)            # same as the reference
            s = s - jnp.max(s, axis=-1, keepdims=True)
            p = jnp.exp(s)
            denom = jnp.sum(p, axis=-1, keepdims=True)
            p = p * pl.reciprocal(denom, approx=True)   # EUP, not VALU div
            ctx = mm(p, v[:, sl])                       # (Sq, dh)
            # Fold head-concat + output projection into an accumulation.
            out = out + mm(ctx, wo[sl, :])              # (Sq, D)
        return out + vrow(brow + 3)

    def add_layernorm(residual, y, g_row, b_row):       # fused epilogue
        h = residual + y
        mean = jnp.mean(h, axis=-1, keepdims=True)
        var = jnp.mean((h - mean) ** 2, axis=-1, keepdims=True)
        h_hat = (h - mean) * jax.lax.rsqrt(var + 1e-5)  # PyTorch eps
        return h_hat * vrow(g_row) + vrow(b_row)

    # --- self-attention (causal) + residual + LN1 (dropout == identity) -----
    sa = mha(x, x, swq_ref, swk_ref, swv_ref, swo_ref, ROW_SELF_B, True)
    x1 = add_layernorm(x, sa, ROW_LN1_G, ROW_LN1_B)

    # --- cross-attention (unmasked) + residual + LN2 -------------------------
    ca = mha(x1, enc, cwq_ref, cwk_ref, cwv_ref, cwo_ref, ROW_CROSS_B, False)
    x2 = add_layernorm(x1, ca, ROW_LN2_G, ROW_LN2_B)

    # --- feed-forward (Linear -> ReLU -> Linear) + residual + LN3 ------------
    # TODO(synk): tile Dff with a reduction grid axis + f32 accumulator at
    # production dims so the (Sq, Dff) hidden never exceeds VMEM.
    h = jnp.maximum(mm(x2, w1_ref[...]) + b1_ref[...].astype(f32), 0.0)
    ff = mm(h, w2_ref[...]) + vrow(ROW_FFN_B2)
    out_ref[...] = add_layernorm(x2, ff, ROW_LN3_G, ROW_LN3_B).astype(out_ref.dtype)


# ----------------------------------------------------------------------------
# Wrapper: pack small vectors, cast weights, launch one pallas_call.
# ----------------------------------------------------------------------------
def _pack_vectors(params, d_model):
    sa = params["self_attn"]
    ca = params["cross_attn"]
    rows = [sa[1], sa[3], sa[5], sa[7],        # self  bq, bk, bv, bo
            ca[1], ca[3], ca[5], ca[7],        # cross bq, bk, bv, bo
            params["ffn_b2"],
            params["ln1_g"], params["ln1_b"],
            params["ln2_g"], params["ln2_b"],
            params["ln3_g"], params["ln3_b"]]
    pad = NUM_VEC_ROWS - len(rows)
    rows.append(jnp.zeros((pad, d_model), jnp.float32))
    return jnp.concatenate(rows, axis=0).astype(jnp.float32)   # (16, D)


def decoder_layer(x, enc_output, no_peak_mask, params, *, num_heads,
                  mxu_dtype=jnp.bfloat16):
    """x: (B, Sq, D), enc_output: (B, Sk, D), no_peak_mask: (1, Sq, Sq).

    NOTE: the causal no-peak mask is rebuilt in-kernel (iota compares), so
    `no_peak_mask` is accepted for API parity but never DMA'd to the device
    kernel.  See TODO(synk) at the top for arbitrary masks.
    """
    del no_peak_mask
    B, Sq, D = x.shape
    Sk = enc_output.shape[1]
    sa, ca = params["self_attn"], params["cross_attn"]

    # Weights live in HBM at the MXU operand dtype (bf16 by default).
    def cw(w):
        return w.astype(mxu_dtype)

    weights = (cw(sa[0]), cw(sa[2]), cw(sa[4]), cw(sa[6]),
               cw(ca[0]), cw(ca[2]), cw(ca[4]), cw(ca[6]))
    w1 = cw(params["ffn_w1"])
    w2 = cw(params["ffn_w2"])
    b1 = params["ffn_b1"].astype(jnp.float32)
    Dff = w1.shape[1]
    vecs = _pack_vectors(params, D)                              # (16, D)

    # Size the scoped VMEM limit to the real working set (with headroom),
    # floored at the 32 MiB default and capped below physical VMEM.
    w_item = jnp.dtype(mxu_dtype).itemsize
    wbytes = (8 * D * D + 2 * D * Dff) * w_item
    abytes = 4 * (6 * Sq * D + 2 * Sk * D + Sq * Dff + Sq * Sk
                  + Dff + NUM_VEC_ROWS * D)
    vmem_limit = int(min(max(3 * (wbytes + abytes), 32 << 20), 100 << 20))

    kernel = functools.partial(decoder_layer_kernel,
                               num_heads=num_heads, mxu_dtype=mxu_dtype)

    def launch(single_buffer):
        # Constant-index-map operands: single-buffer to halve VMEM residency.
        pm = dict(pipeline_mode=pl.Buffered(1)) if single_buffer else {}
        act_q = pl.BlockSpec((None, Sq, D), lambda b: (b, 0, 0))
        act_kv = pl.BlockSpec((None, Sk, D), lambda b: (b, 0, 0))
        w_dd = pl.BlockSpec((D, D), lambda b: (0, 0), **pm)
        out = pl.pallas_call(
            kernel,
            out_shape=jax.ShapeDtypeStruct((B, Sq, D), x.dtype),
            grid_spec=pltpu.PrefetchScalarGridSpec(
                num_scalar_prefetch=0,
                grid=(B,),
                in_specs=[
                    act_q, act_kv,
                    w_dd, w_dd, w_dd, w_dd,                       # self  wq wk wv wo
                    w_dd, w_dd, w_dd, w_dd,                       # cross wq wk wv wo
                    pl.BlockSpec((D, Dff), lambda b: (0, 0), **pm),      # ffn w1
                    pl.BlockSpec((1, Dff), lambda b: (0, 0), **pm),      # ffn b1
                    pl.BlockSpec((Dff, D), lambda b: (0, 0), **pm),      # ffn w2
                    pl.BlockSpec((NUM_VEC_ROWS, D), lambda b: (0, 0), **pm),
                ],
                out_specs=pl.BlockSpec((None, Sq, D), lambda b: (b, 0, 0)),
            ),
            compiler_params=pltpu.CompilerParams(
                dimension_semantics=("parallel",),
                vmem_limit_bytes=vmem_limit),
        )(x, enc_output, *weights, w1, b1, w2, vecs)
        return jax.block_until_ready(out)

    try:
        return launch(True)
    except Exception:
        # Fallback for jax versions that reject pl.Buffered(buffer_count=1).
        return launch(False)


# ----------------------------------------------------------------------------
# Pure-JAX reference (for correctness check) and parameter init.
# ----------------------------------------------------------------------------
def decoder_layer_ref(x, enc, mask, params, *, num_heads):
    def mha(xq, xkv, p, m=None):
        wq, bq, wk, bk, wv, bv, wo, bo = p
        B, Sq, D = xq.shape
        Sk = xkv.shape[1]
        dh = D // num_heads
        q = (xq @ wq + bq).reshape(B, Sq, num_heads, dh).transpose(0, 2, 1, 3)
        k = (xkv @ wk + bk).reshape(B, Sk, num_heads, dh).transpose(0, 2, 1, 3)
        v = (xkv @ wv + bv).reshape(B, Sk, num_heads, dh).transpose(0, 2, 1, 3)
        s = jnp.einsum("bhqd,bhkd->bhqk", q, k) / math.sqrt(dh)
        if m is not None:
            s = jnp.where(m[:, None, :, :] == 0, -1e9, s)
        a = jax.nn.softmax(s, axis=-1)
        ctx = jnp.einsum("bhqk,bhkd->bhqd", a, v).transpose(0, 2, 1, 3).reshape(B, Sq, D)
        return ctx @ wo + bo

    def ln(h, g, b):
        mu = h.mean(-1, keepdims=True)
        var = ((h - mu) ** 2).mean(-1, keepdims=True)
        return (h - mu) * jax.lax.rsqrt(var + 1e-5) * g + b

    x = ln(x + mha(x, x, params["self_attn"], mask), params["ln1_g"], params["ln1_b"])
    x = ln(x + mha(x, enc, params["cross_attn"]), params["ln2_g"], params["ln2_b"])
    h = jnp.maximum(x @ params["ffn_w1"] + params["ffn_b1"], 0.0)
    x = ln(x + (h @ params["ffn_w2"] + params["ffn_b2"]),
           params["ln3_g"], params["ln3_b"])
    return x


def init_params(key, d_model, d_ff):
    def lin(k, n_in, n_out, scale=0.02):
        kw, kb = jax.random.split(k)
        w = scale * jax.random.normal(kw, (n_in, n_out), jnp.float32)
        b = scale * jax.random.normal(kb, (1, n_out), jnp.float32)
        return w, b

    keys = jax.random.split(key, 10)
    attn_params = []
    for i in range(2):  # self_attn, cross_attn
        wq, bq = lin(keys[4 * i + 0], d_model, d_model)
        wk, bk = lin(keys[4 * i + 1], d_model, d_model)
        wv, bv = lin(keys[4 * i + 2], d_model, d_model)
        wo, bo = lin(keys[4 * i + 3], d_model, d_model)
        attn_params.append((wq, bq, wk, bk, wv, bv, wo, bo))

    w1, b1 = lin(keys[8], d_model, d_ff)
    w2, b2 = lin(keys[9], d_ff, d_model)

    ones = jnp.ones((1, d_model), jnp.float32)
    zeros = jnp.zeros((1, d_model), jnp.float32)
    return {
        "self_attn": attn_params[0],
        "cross_attn": attn_params[1],
        "ffn_w1": w1, "ffn_b1": b1, "ffn_w2": w2, "ffn_b2": b2,
        "ln1_g": ones, "ln1_b": zeros,
        "ln2_g": ones, "ln2_b": zeros,
        "ln3_g": ones, "ln3_b": zeros,
    }


if __name__ == "__main__":
    # NOTE: these toy dims (D=32, dh=8) are padding-dominated on TPU; size
    # real benchmarks with D/dh/Dff multiples of 128 and Sq multiple of 8.
    B, S_tgt, S_src = 2, 8, 8
    d_model, num_heads, d_ff = 32, 4, 64
    dropout_rate = 0.1  # identity in eval mode

    key = jax.random.PRNGKey(0)
    k_x, k_enc, k_p = jax.random.split(key, 3)

    x = jax.random.normal(k_x, (B, S_tgt, d_model), jnp.float32)
    enc_output = jax.random.normal(k_enc, (B, S_src, d_model), jnp.float32)
    # causal "no-peak" mask: 1 = attend, 0 = masked
    no_peak_mask = jnp.tril(jnp.ones((1, S_tgt, S_tgt), jnp.float32))

    params = init_params(k_p, d_model, d_ff)
    ref = decoder_layer_ref(x, enc_output, no_peak_mask, params,
                            num_heads=num_heads)

    # Default (bf16 MXU operands, f32 accumulation / statistics).
    out_bf16 = decoder_layer(x, enc_output, no_peak_mask, params,
                             num_heads=num_heads)
    assert out_bf16.shape == (B, S_tgt, d_model)
    err_bf16 = float(jnp.max(jnp.abs(out_bf16 - ref)))
    assert jnp.allclose(out_bf16, ref, atol=3e-2, rtol=3e-2), err_bf16

    # f32 MXU operands: near-exact parity with the reference.
    out_f32 = decoder_layer(x, enc_output, no_peak_mask, params,
                            num_heads=num_heads, mxu_dtype=jnp.float32)
    err_f32 = float(jnp.max(jnp.abs(out_f32 - ref)))
    assert jnp.allclose(out_f32, ref, atol=5e-3, rtol=5e-3), err_f32

    print("KERNEL_OK")
</pallas_src>

<mosaic_0001>
module attributes {stable_mosaic.version = 11 : i64} {
  func.func @decoder_layer_kernel(%arg0: i32, %arg1: memref<1x8x32xf32, #tpu.memory_space<vmem>>, %arg2: memref<1x8x32xf32, #tpu.memory_space<vmem>>, %arg3: memref<32x32xbf16, #tpu.memory_space<vmem>>, %arg4: memref<32x32xbf16, #tpu.memory_space<vmem>>, %arg5: memref<32x32xbf16, #tpu.memory_space<vmem>>, %arg6: memref<32x32xbf16, #tpu.memory_space<vmem>>, %arg7: memref<32x32xbf16, #tpu.memory_space<vmem>>, %arg8: memref<32x32xbf16, #tpu.memory_space<vmem>>, %arg9: memref<32x32xbf16, #tpu.memory_space<vmem>>, %arg10: memref<32x32xbf16, #tpu.memory_space<vmem>>, %arg11: memref<32x64xbf16, #tpu.memory_space<vmem>>, %arg12: memref<1x64xf32, #tpu.memory_space<vmem>>, %arg13: memref<64x32xbf16, #tpu.memory_space<vmem>>, %arg14: memref<16x32xf32, #tpu.memory_space<vmem>>, %arg15: memref<1x8x32xf32, #tpu.memory_space<vmem>>) attributes {dimension_semantics = [#tpu.dimension_semantics<parallel>], iteration_bounds = array<i64: 2>, scalar_prefetch = 0 : i64, scratch_operands = 0 : i64, tpu.core_type = #tpu.core_type<tc>, window_params = [{transform_indices = @transform_0, window_bounds = array<i64: 1, 8, 32>}, {transform_indices = @transform_1, window_bounds = array<i64: 1, 8, 32>}, {pipeline_mode = #tpu.pipeline_mode<synchronous>, transform_indices = @transform_2, window_bounds = array<i64: 32, 32>}, {pipeline_mode = #tpu.pipeline_mode<synchronous>, transform_indices = @transform_3, window_bounds = array<i64: 32, 32>}, {pipeline_mode = #tpu.pipeline_mode<synchronous>, transform_indices = @transform_4, window_bounds = array<i64: 32, 32>}, {pipeline_mode = #tpu.pipeline_mode<synchronous>, transform_indices = @transform_5, window_bounds = array<i64: 32, 32>}, {pipeline_mode = #tpu.pipeline_mode<synchronous>, transform_indices = @transform_6, window_bounds = array<i64: 32, 32>}, {pipeline_mode = #tpu.pipeline_mode<synchronous>, transform_indices = @transform_7, window_bounds = array<i64: 32, 32>}, {pipeline_mode = #tpu.pipeline_mode<synchronous>, transform_indices = @transform_8, window_bounds = array<i64: 32, 32>}, {pipeline_mode = #tpu.pipeline_mode<synchronous>, transform_indices = @transform_9, window_bounds = array<i64: 32, 32>}, {pipeline_mode = #tpu.pipeline_mode<synchronous>, transform_indices = @transform_10, window_bounds = array<i64: 32, 64>}, {pipeline_mode = #tpu.pipeline_mode<synchronous>, transform_indices = @transform_11, window_bounds = array<i64: 1, 64>}, {pipeline_mode = #tpu.pipeline_mode<synchronous>, transform_indices = @transform_12, window_bounds = array<i64: 64, 32>}, {pipeline_mode = #tpu.pipeline_mode<synchronous>, transform_indices = @transform_13, window_bounds = array<i64: 16, 32>}, {transform_indices = @transform_14, window_bounds = array<i64: 1, 8, 32>}]} {
    %c0 = arith.constant 0 : index
    %c0_0 = arith.constant 0 : index
    %c0_1 = arith.constant 0 : index
    %0 = vector.load %arg1[%c0, %c0_0, %c0_1] : memref<1x8x32xf32, #tpu.memory_space<vmem>>, vector<1x8x32xf32>
    %1 = vector.shape_cast %0 : vector<1x8x32xf32> to vector<8x32xf32>
    %c0_2 = arith.constant 0 : index
    %c0_3 = arith.constant 0 : index
    %c0_4 = arith.constant 0 : index
    %2 = vector.load %arg2[%c0_2, %c0_3, %c0_4] : memref<1x8x32xf32, #tpu.memory_space<vmem>>, vector<1x8x32xf32>
    %3 = vector.shape_cast %2 : vector<1x8x32xf32> to vector<8x32xf32>
    %c0_5 = arith.constant 0 : index
    %c0_6 = arith.constant 0 : index
    %4 = vector.load %arg3[%c0_5, %c0_6] : memref<32x32xbf16, #tpu.memory_space<vmem>>, vector<32x32xbf16>
    %5 = arith.truncf %1 : vector<8x32xf32> to vector<8x32xbf16>
    %cst = arith.constant dense<0.000000e+00> : vector<8x32xf32>
    %6 = tpu.matmul %5, %4, %cst {dimension_numbers = #tpu.dot_dimension_numbers<[1], [0], [0], [1], [0, 0, 1, 1], [], []>} : vector<8x32xbf16>, vector<32x32xbf16>, vector<8x32xf32> -> vector<8x32xf32>
    %c0_7 = arith.constant 0 : index
    %c0_8 = arith.constant 0 : index
    %7 = vector.load %arg14[%c0_7, %c0_8] : memref<16x32xf32, #tpu.memory_space<vmem>>, vector<1x32xf32>
    %8 = vector.broadcast %7 : vector<1x32xf32> to vector<8x32xf32>
    %9 = arith.addf %6, %8 : vector<8x32xf32>
    %c0_9 = arith.constant 0 : index
    %c0_10 = arith.constant 0 : index
    %10 = vector.load %arg4[%c0_9, %c0_10] : memref<32x32xbf16, #tpu.memory_space<vmem>>, vector<32x32xbf16>
    %11 = arith.truncf %1 : vector<8x32xf32> to vector<8x32xbf16>
    %cst_11 = arith.constant dense<0.000000e+00> : vector<8x32xf32>
    %12 = tpu.matmul %11, %10, %cst_11 {dimension_numbers = #tpu.dot_dimension_numbers<[1], [0], [0], [1], [0, 0, 1, 1], [], []>} : vector<8x32xbf16>, vector<32x32xbf16>, vector<8x32xf32> -> vector<8x32xf32>
    %c1 = arith.constant 1 : index
    %c0_12 = arith.constant 0 : index
    %13 = vector.load %arg14[%c1, %c0_12] : memref<16x32xf32, #tpu.memory_space<vmem>>, vector<1x32xf32>
    %14 = vector.broadcast %13 : vector<1x32xf32> to vector<8x32xf32>
    %15 = arith.addf %12, %14 : vector<8x32xf32>
    %c0_13 = arith.constant 0 : index
    %c0_14 = arith.constant 0 : index
    %16 = vector.load %arg5[%c0_13, %c0_14] : memref<32x32xbf16, #tpu.memory_space<vmem>>, vector<32x32xbf16>
    %17 = arith.truncf %1 : vector<8x32xf32> to vector<8x32xbf16>
    %cst_15 = arith.constant dense<0.000000e+00> : vector<8x32xf32>
    %18 = tpu.matmul %17, %16, %cst_15 {dimension_numbers = #tpu.dot_dimension_numbers<[1], [0], [0], [1], [0, 0, 1, 1], [], []>} : vector<8x32xbf16>, vector<32x32xbf16>, vector<8x32xf32> -> vector<8x32xf32>
    %c2 = arith.constant 2 : index
    %c0_16 = arith.constant 0 : index
    %19 = vector.load %arg14[%c2, %c0_16] : memref<16x32xf32, #tpu.memory_space<vmem>>, vector<1x32xf32>
    %20 = vector.broadcast %19 : vector<1x32xf32> to vector<8x32xf32>
    %21 = arith.addf %18, %20 : vector<8x32xf32>
    %22 = tpu.iota {dimensions = array<i32: 0>} : vector<8x8xi32>
    %23 = tpu.iota {dimensions = array<i32: 1>} : vector<8x8xi32>
    %24 = arith.cmpi sge, %22, %23 : vector<8x8xi32>
    %c0_17 = arith.constant 0 : index
    %c0_18 = arith.constant 0 : index
    %25 = vector.load %arg6[%c0_17, %c0_18] : memref<32x32xbf16, #tpu.memory_space<vmem>>, vector<32x32xbf16>
    %cst_19 = arith.constant 0.000000e+00 : f32
    %26 = vector.broadcast %cst_19 : f32 to vector<8x32xf32>
    %27 = vector.extract_strided_slice %9 {offsets = [0, 0], sizes = [8, 8], strides = [1, 1]} : vector<8x32xf32> to vector<8x8xf32>
    %28 = arith.truncf %27 : vector<8x8xf32> to vector<8x8xbf16>
    %29 = vector.extract_strided_slice %15 {offsets = [0, 0], sizes = [8, 8], strides = [1, 1]} : vector<8x32xf32> to vector<8x8xf32>
    %30 = arith.truncf %29 : vector<8x8xf32> to vector<8x8xbf16>
    %cst_20 = arith.constant dense<0.000000e+00> : vector<8x8xf32>
    %31 = tpu.matmul %28, %30, %cst_20 {dimension_numbers = #tpu.dot_dimension_numbers<[1], [1], [0], [0], [0, 0, 1, 0], [], []>} : vector<8x8xbf16>, vector<8x8xbf16>, vector<8x8xf32> -> vector<8x8xf32>
    %cst_21 = arith.constant 0.353553385 : f32
    %32 = vector.broadcast %cst_21 : f32 to vector<8x8xf32>
    %33 = arith.mulf %31, %32 : vector<8x8xf32>
    %cst_22 = arith.constant -1.000000e+09 : f32
    %34 = vector.broadcast %cst_22 : f32 to vector<8x8xf32>
    %35 = arith.select %24, %33, %34 : vector<8x8xi1>, vector<8x8xf32>
    %cst_23 = arith.constant dense<0xFF800000> : vector<8xf32>
    %36 = vector.multi_reduction <maximumf>, %35, %cst_23 [1] : vector<8x8xf32> to vector<8xf32>
    %37 = vector.shape_cast %36 : vector<8xf32> to vector<8x1xf32>
    %38 = vector.broadcast %37 : vector<8x1xf32> to vector<8x8xf32>
    %39 = arith.subf %35, %38 : vector<8x8xf32>
    %40 = math.exp %39 : vector<8x8xf32>
    %cst_24 = arith.constant dense<0.000000e+00> : vector<8xf32>
    %41 = vector.multi_reduction <add>, %40, %cst_24 [1] : vector<8x8xf32> to vector<8xf32>
    %42 = vector.shape_cast %41 : vector<8xf32> to vector<8x1xf32>
    %43 = tpu.reciprocal %42 {approx = true} : vector<8x1xf32> -> vector<8x1xf32>
    %44 = vector.broadcast %43 : vector<8x1xf32> to vector<8x8xf32>
    %45 = arith.mulf %40, %44 : vector<8x8xf32>
    %46 = vector.extract_strided_slice %21 {offsets = [0, 0], sizes = [8, 8], strides = [1, 1]} : vector<8x32xf32> to vector<8x8xf32>
    %47 = arith.truncf %45 : vector<8x8xf32> to vector<8x8xbf16>
    %48 = arith.truncf %46 : vector<8x8xf32> to vector<8x8xbf16>
    %cst_25 = arith.constant dense<0.000000e+00> : vector<8x8xf32>
    %49 = tpu.matmul %47, %48, %cst_25 {dimension_numbers = #tpu.dot_dimension_numbers<[1], [0], [0], [1], [0, 0, 1, 1], [], []>} : vector<8x8xbf16>, vector<8x8xbf16>, vector<8x8xf32> -> vector<8x8xf32>
    %50 = vector.extract_strided_slice %25 {offsets = [0, 0], sizes = [8, 32], strides = [1, 1]} : vector<32x32xbf16> to vector<8x32xbf16>
    %51 = arith.truncf %49 : vector<8x8xf32> to vector<8x8xbf16>
    %cst_26 = arith.constant dense<0.000000e+00> : vector<8x32xf32>
    %52 = tpu.matmul %51, %50, %cst_26 {dimension_numbers = #tpu.dot_dimension_numbers<[1], [0], [0], [1], [0, 0, 1, 1], [], []>} : vector<8x8xbf16>, vector<8x32xbf16>, vector<8x32xf32> -> vector<8x32xf32>
    %53 = arith.addf %26, %52 : vector<8x32xf32>
    %54 = vector.extract_strided_slice %9 {offsets = [0, 8], sizes = [8, 8], strides = [1, 1]} : vector<8x32xf32> to vector<8x8xf32>
    %55 = arith.truncf %54 : vector<8x8xf32> to vector<8x8xbf16>
    %56 = vector.extract_strided_slice %15 {offsets = [0, 8], sizes = [8, 8], strides = [1, 1]} : vector<8x32xf32> to vector<8x8xf32>
    %57 = arith.truncf %56 : vector<8x8xf32> to vector<8x8xbf16>
    %cst_27 = arith.constant dense<0.000000e+00> : vector<8x8xf32>
    %58 = tpu.matmul %55, %57, %cst_27 {dimension_numbers = #tpu.dot_dimension_numbers<[1], [1], [0], [0], [0, 0, 1, 0], [], []>} : vector<8x8xbf16>, vector<8x8xbf16>, vector<8x8xf32> -> vector<8x8xf32>
    %cst_28 = arith.constant 0.353553385 : f32
    %59 = vector.broadcast %cst_28 : f32 to vector<8x8xf32>
    %60 = arith.mulf %58, %59 : vector<8x8xf32>
    %cst_29 = arith.constant -1.000000e+09 : f32
    %61 = vector.broadcast %cst_29 : f32 to vector<8x8xf32>
    %62 = arith.select %24, %60, %61 : vector<8x8xi1>, vector<8x8xf32>
    %cst_30 = arith.constant dense<0xFF800000> : vector<8xf32>
    %63 = vector.multi_reduction <maximumf>, %62, %cst_30 [1] : vector<8x8xf32> to vector<8xf32>
    %64 = vector.shape_cast %63 : vector<8xf32> to vector<8x1xf32>
    %65 = vector.broadcast %64 : vector<8x1xf32> to vector<8x8xf32>
    %66 = arith.subf %62, %65 : vector<8x8xf32>
    %67 = math.exp %66 : vector<8x8xf32>
    %cst_31 = arith.constant dense<0.000000e+00> : vector<8xf32>
    %68 = vector.multi_reduction <add>, %67, %cst_31 [1] : vector<8x8xf32> to vector<8xf32>
    %69 = vector.shape_cast %68 : vector<8xf32> to vector<8x1xf32>
    %70 = tpu.reciprocal %69 {approx = true} : vector<8x1xf32> -> vector<8x1xf32>
    %71 = vector.broadcast %70 : vector<8x1xf32> to vector<8x8xf32>
    %72 = arith.mulf %67, %71 : vector<8x8xf32>
    %73 = vector.extract_strided_slice %21 {offsets = [0, 8], sizes = [8, 8], strides = [1, 1]} : vector<8x32xf32> to vector<8x8xf32>
    %74 = arith.truncf %72 : vector<8x8xf32> to vector<8x8xbf16>
    %75 = arith.truncf %73 : vector<8x8xf32> to vector<8x8xbf16>
    %cst_32 = arith.constant dense<0.000000e+00> : vector<8x8xf32>
    %76 = tpu.matmul %74, %75, %cst_32 {dimension_numbers = #tpu.dot_dimension_numbers<[1], [0], [0], [1], [0, 0, 1, 1], [], []>} : vector<8x8xbf16>, vector<8x8xbf16>, vector<8x8xf32> -> vector<8x8xf32>
    %77 = vector.extract_strided_slice %25 {offsets = [8, 0], sizes = [8, 32], strides = [1, 1]} : vector<32x32xbf16> to vector<8x32xbf16>
    %78 = arith.truncf %76 : vector<8x8xf32> to vector<8x8xbf16>
    %cst_33 = arith.constant dense<0.000000e+00> : vector<8x32xf32>
    %79 = tpu.matmul %78, %77, %cst_33 {dimension_numbers = #tpu.dot_dimension_numbers<[1], [0], [0], [1], [0, 0, 1, 1], [], []>} : vector<8x8xbf16>, vector<8x32xbf16>, vector<8x32xf32> -> vector<8x32xf32>
    %80 = arith.addf %53, %79 : vector<8x32xf32>
    %81 = vector.extract_strided_slice %9 {offsets = [0, 16], sizes = [8, 8], strides = [1, 1]} : vector<8x32xf32> to vector<8x8xf32>
    %82 = arith.truncf %81 : vector<8x8xf32> to vector<8x8xbf16>
    %83 = vector.extract_strided_slice %15 {offsets = [0, 16], sizes = [8, 8], strides = [1, 1]} : vector<8x32xf32> to vector<8x8xf32>
    %84 = arith.truncf %83 : vector<8x8xf32> to vector<8x8xbf16>
    %cst_34 = arith.constant dense<0.000000e+00> : vector<8x8xf32>
    %85 = tpu.matmul %82, %84, %cst_34 {dimension_numbers = #tpu.dot_dimension_numbers<[1], [1], [0], [0], [0, 0, 1, 0], [], []>} : vector<8x8xbf16>, vector<8x8xbf16>, vector<8x8xf32> -> vector<8x8xf32>
    %cst_35 = arith.constant 0.353553385 : f32
    %86 = vector.broadcast %cst_35 : f32 to vector<8x8xf32>
    %87 = arith.mulf %85, %86 : vector<8x8xf32>
    %cst_36 = arith.constant -1.000000e+09 : f32
    %88 = vector.broadcast %cst_36 : f32 to vector<8x8xf32>
    %89 = arith.select %24, %87, %88 : vector<8x8xi1>, vector<8x8xf32>
    %cst_37 = arith.constant dense<0xFF800000> : vector<8xf32>
    %90 = vector.multi_reduction <maximumf>, %89, %cst_37 [1] : vector<8x8xf32> to vector<8xf32>
    %91 = vector.shape_cast %90 : vector<8xf32> to vector<8x1xf32>
    %92 = vector.broadcast %91 : vector<8x1xf32> to vector<8x8xf32>
    %93 = arith.subf %89, %92 : vector<8x8xf32>
    %94 = math.exp %93 : vector<8x8xf32>
    %cst_38 = arith.constant dense<0.000000e+00> : vector<8xf32>
    %95 = vector.multi_reduction <add>, %94, %cst_38 [1] : vector<8x8xf32> to vector<8xf32>
    %96 = vector.shape_cast %95 : vector<8xf32> to vector<8x1xf32>
    %97 = tpu.reciprocal %96 {approx = true} : vector<8x1xf32> -> vector<8x1xf32>
    %98 = vector.broadcast %97 : vector<8x1xf32> to vector<8x8xf32>
    %99 = arith.mulf %94, %98 : vector<8x8xf32>
    %100 = vector.extract_strided_slice %21 {offsets = [0, 16], sizes = [8, 8], strides = [1, 1]} : vector<8x32xf32> to vector<8x8xf32>
    %101 = arith.truncf %99 : vector<8x8xf32> to vector<8x8xbf16>
    %102 = arith.truncf %100 : vector<8x8xf32> to vector<8x8xbf16>
    %cst_39 = arith.constant dense<0.000000e+00> : vector<8x8xf32>
    %103 = tpu.matmul %101, %102, %cst_39 {dimension_numbers = #tpu.dot_dimension_numbers<[1], [0], [0], [1], [0, 0, 1, 1], [], []>} : vector<8x8xbf16>, vector<8x8xbf16>, vector<8x8xf32> -> vector<8x8xf32>
    %104 = vector.extract_strided_slice %25 {offsets = [16, 0], sizes = [8, 32], strides = [1, 1]} : vector<32x32xbf16> to vector<8x32xbf16>
    %105 = arith.truncf %103 : vector<8x8xf32> to vector<8x8xbf16>
    %cst_40 = arith.constant dense<0.000000e+00> : vector<8x32xf32>
    %106 = tpu.matmul %105, %104, %cst_40 {dimension_numbers = #tpu.dot_dimension_numbers<[1], [0], [0], [1], [0, 0, 1, 1], [], []>} : vector<8x8xbf16>, vector<8x32xbf16>, vector<8x32xf32> -> vector<8x32xf32>
    %107 = arith.addf %80, %106 : vector<8x32xf32>
    %108 = vector.extract_strided_slice %9 {offsets = [0, 24], sizes = [8, 8], strides = [1, 1]} : vector<8x32xf32> to vector<8x8xf32>
    %109 = arith.truncf %108 : vector<8x8xf32> to vector<8x8xbf16>
    %110 = vector.extract_strided_slice %15 {offsets = [0, 24], sizes = [8, 8], strides = [1, 1]} : vector<8x32xf32> to vector<8x8xf32>
    %111 = arith.truncf %110 : vector<8x8xf32> to vector<8x8xbf16>
    %cst_41 = arith.constant dense<0.000000e+00> : vector<8x8xf32>
    %112 = tpu.matmul %109, %111, %cst_41 {dimension_numbers = #tpu.dot_dimension_numbers<[1], [1], [0], [0], [0, 0, 1, 0], [], []>} : vector<8x8xbf16>, vector<8x8xbf16>, vector<8x8xf32> -> vector<8x8xf32>
    %cst_42 = arith.constant 0.353553385 : f32
    %113 = vector.broadcast %cst_42 : f32 to vector<8x8xf32>
    %114 = arith.mulf %112, %113 : vector<8x8xf32>
    %cst_43 = arith.constant -1.000000e+09 : f32
    %115 = vector.broadcast %cst_43 : f32 to vector<8x8xf32>
    %116 = arith.select %24, %114, %115 : vector<8x8xi1>, vector<8x8xf32>
    %cst_44 = arith.constant dense<0xFF800000> : vector<8xf32>
    %117 = vector.multi_reduction <maximumf>, %116, %cst_44 [1] : vector<8x8xf32> to vector<8xf32>
    %118 = vector.shape_cast %117 : vector<8xf32> to vector<8x1xf32>
    %119 = vector.broadcast %118 : vector<8x1xf32> to vector<8x8xf32>
    %120 = arith.subf %116, %119 : vector<8x8xf32>
    %121 = math.exp %120 : vector<8x8xf32>
    %cst_45 = arith.constant dense<0.000000e+00> : vector<8xf32>
    %122 = vector.multi_reduction <add>, %121, %cst_45 [1] : vector<8x8xf32> to vector<8xf32>
    %123 = vector.shape_cast %122 : vector<8xf32> to vector<8x1xf32>
    %124 = tpu.reciprocal %123 {approx = true} : vector<8x1xf32> -> vector<8x1xf32>
    %125 = vector.broadcast %124 : vector<8x1xf32> to vector<8x8xf32>
    %126 = arith.mulf %121, %125 : vector<8x8xf32>
    %127 = vector.extract_strided_slice %21 {offsets = [0, 24], sizes = [8, 8], strides = [1, 1]} : vector<8x32xf32> to vector<8x8xf32>
    %128 = arith.truncf %126 : vector<8x8xf32> to vector<8x8xbf16>
    %129 = arith.truncf %127 : vector<8x8xf32> to vector<8x8xbf16>
    %cst_46 = arith.constant dense<0.000000e+00> : vector<8x8xf32>
    %130 = tpu.matmul %128, %129, %cst_46 {dimension_numbers = #tpu.dot_dimension_numbers<[1], [0], [0], [1], [0, 0, 1, 1], [], []>} : vector<8x8xbf16>, vector<8x8xbf16>, vector<8x8xf32> -> vector<8x8xf32>
    %131 = vector.extract_strided_slice %25 {offsets = [24, 0], sizes = [8, 32], strides = [1, 1]} : vector<32x32xbf16> to vector<8x32xbf16>
    %132 = arith.truncf %130 : vector<8x8xf32> to vector<8x8xbf16>
    %cst_47 = arith.constant dense<0.000000e+00> : vector<8x32xf32>
    %133 = tpu.matmul %132, %131, %cst_47 {dimension_numbers = #tpu.dot_dimension_numbers<[1], [0], [0], [1], [0, 0, 1, 1], [], []>} : vector<8x8xbf16>, vector<8x32xbf16>, vector<8x32xf32> -> vector<8x32xf32>
    %134 = arith.addf %107, %133 : vector<8x32xf32>
    %c3 = arith.constant 3 : index
    %c0_48 = arith.constant 0 : index
    %135 = vector.load %arg14[%c3, %c0_48] : memref<16x32xf32, #tpu.memory_space<vmem>>, vector<1x32xf32>
    %136 = vector.broadcast %135 : vector<1x32xf32> to vector<8x32xf32>
    %137 = arith.addf %134, %136 : vector<8x32xf32>
    %138 = arith.addf %1, %137 : vector<8x32xf32>
    %cst_49 = arith.constant dense<0.000000e+00> : vector<8xf32>
    %139 = vector.multi_reduction <add>, %138, %cst_49 [1] : vector<8x32xf32> to vector<8xf32>
    %140 = vector.shape_cast %139 : vector<8xf32> to vector<8x1xf32>
    %cst_50 = arith.constant 3.200000e+01 : f32
    %141 = vector.broadcast %cst_50 : f32 to vector<8x1xf32>
    %142 = arith.divf %140, %141 : vector<8x1xf32>
    %143 = vector.broadcast %142 : vector<8x1xf32> to vector<8x32xf32>
    %144 = arith.subf %138, %143 : vector<8x32xf32>
    %145 = arith.mulf %144, %144 : vector<8x32xf32>
    %cst_51 = arith.constant dense<0.000000e+00> : vector<8xf32>
    %146 = vector.multi_reduction <add>, %145, %cst_51 [1] : vector<8x32xf32> to vector<8xf32>
    %147 = vector.shape_cast %146 : vector<8xf32> to vector<8x1xf32>
    %cst_52 = arith.constant 3.200000e+01 : f32
    %148 = vector.broadcast %cst_52 : f32 to vector<8x1xf32>
    %149 = arith.divf %147, %148 : vector<8x1xf32>
    %150 = vector.broadcast %142 : vector<8x1xf32> to vector<8x32xf32>
    %151 = arith.subf %138, %150 : vector<8x32xf32>
    %cst_53 = arith.constant 9.99999974E-6 : f32
    %152 = vector.broadcast %cst_53 : f32 to vector<8x1xf32>
    %153 = arith.addf %149, %152 : vector<8x1xf32>
    %154 = math.rsqrt %153 : vector<8x1xf32>
    %155 = vector.broadcast %154 : vector<8x1xf32> to vector<8x32xf32>
    %156 = arith.mulf %151, %155 : vector<8x32xf32>
    %c9 = arith.constant 9 : index
    %c0_54 = arith.constant 0 : index
    %157 = vector.load %arg14[%c9, %c0_54] : memref<16x32xf32, #tpu.memory_space<vmem>>, vector<1x32xf32>
    %158 = vector.broadcast %157 : vector<1x32xf32> to vector<8x32xf32>
    %159 = arith.mulf %156, %158 : vector<8x32xf32>
    %c10 = arith.constant 10 : index
    %c0_55 = arith.constant 0 : index
    %160 = vector.load %arg14[%c10, %c0_55] : memref<16x32xf32, #tpu.memory_space<vmem>>, vector<1x32xf32>
    %161 = vector.broadcast %160 : vector<1x32xf32> to vector<8x32xf32>
    %162 = arith.addf %159, %161 : vector<8x32xf32>
    %c0_56 = arith.constant 0 : index
    %c0_57 = arith.constant 0 : index
    %163 = vector.load %arg7[%c0_56, %c0_57] : memref<32x32xbf16, #tpu.memory_space<vmem>>, vector<32x32xbf16>
    %164 = arith.truncf %162 : vector<8x32xf32> to vector<8x32xbf16>
    %cst_58 = arith.constant dense<0.000000e+00> : vector<8x32xf32>
    %165 = tpu.matmul %164, %163, %cst_58 {dimension_numbers = #tpu.dot_dimension_numbers<[1], [0], [0], [1], [0, 0, 1, 1], [], []>} : vector<8x32xbf16>, vector<32x32xbf16>, vector<8x32xf32> -> vector<8x32xf32>
    %c4 = arith.constant 4 : index
    %c0_59 = arith.constant 0 : index
    %166 = vector.load %arg14[%c4, %c0_59] : memref<16x32xf32, #tpu.memory_space<vmem>>, vector<1x32xf32>
    %167 = vector.broadcast %166 : vector<1x32xf32> to vector<8x32xf32>
    %168 = arith.addf %165, %167 : vector<8x32xf32>
    %c0_60 = arith.constant 0 : index
    %c0_61 = arith.constant 0 : index
    %169 = vector.load %arg8[%c0_60, %c0_61] : memref<32x32xbf16, #tpu.memory_space<vmem>>, vector<32x32xbf16>
    %170 = arith.truncf %3 : vector<8x32xf32> to vector<8x32xbf16>
    %cst_62 = arith.constant dense<0.000000e+00> : vector<8x32xf32>
    %171 = tpu.matmul %170, %169, %cst_62 {dimension_numbers = #tpu.dot_dimension_numbers<[1], [0], [0], [1], [0, 0, 1, 1], [], []>} : vector<8x32xbf16>, vector<32x32xbf16>, vector<8x32xf32> -> vector<8x32xf32>
    %c5 = arith.constant 5 : index
    %c0_63 = arith.constant 0 : index
    %172 = vector.load %arg14[%c5, %c0_63] : memref<16x32xf32, #tpu.memory_space<vmem>>, vector<1x32xf32>
    %173 = vector.broadcast %172 : vector<1x32xf32> to vector<8x32xf32>
    %174 = arith.addf %171, %173 : vector<8x32xf32>
    %c0_64 = arith.constant 0 : index
    %c0_65 = arith.constant 0 : index
    %175 = vector.load %arg9[%c0_64, %c0_65] : memref<32x32xbf16, #tpu.memory_space<vmem>>, vector<32x32xbf16>
    %176 = arith.truncf %3 : vector<8x32xf32> to vector<8x32xbf16>
    %cst_66 = arith.constant dense<0.000000e+00> : vector<8x32xf32>
    %177 = tpu.matmul %176, %175, %cst_66 {dimension_numbers = #tpu.dot_dimension_numbers<[1], [0], [0], [1], [0, 0, 1, 1], [], []>} : vector<8x32xbf16>, vector<32x32xbf16>, vector<8x32xf32> -> vector<8x32xf32>
    %c6 = arith.constant 6 : index
    %c0_67 = arith.constant 0 : index
    %178 = vector.load %arg14[%c6, %c0_67] : memref<16x32xf32, #tpu.memory_space<vmem>>, vector<1x32xf32>
    %179 = vector.broadcast %178 : vector<1x32xf32> to vector<8x32xf32>
    %180 = arith.addf %177, %179 : vector<8x32xf32>
    %c0_68 = arith.constant 0 : index
    %c0_69 = arith.constant 0 : index
    %181 = vector.load %arg10[%c0_68, %c0_69] : memref<32x32xbf16, #tpu.memory_space<vmem>>, vector<32x32xbf16>
    %cst_70 = arith.constant 0.000000e+00 : f32
    %182 = vector.broadcast %cst_70 : f32 to vector<8x32xf32>
    %183 = vector.extract_strided_slice %168 {offsets = [0, 0], sizes = [8, 8], strides = [1, 1]} : vector<8x32xf32> to vector<8x8xf32>
    %184 = arith.truncf %183 : vector<8x8xf32> to vector<8x8xbf16>
    %185 = vector.extract_strided_slice %174 {offsets = [0, 0], sizes = [8, 8], strides = [1, 1]} : vector<8x32xf32> to vector<8x8xf32>
    %186 = arith.truncf %185 : vector<8x8xf32> to vector<8x8xbf16>
    %cst_71 = arith.constant dense<0.000000e+00> : vector<8x8xf32>
    %187 = tpu.matmul %184, %186, %cst_71 {dimension_numbers = #tpu.dot_dimension_numbers<[1], [1], [0], [0], [0, 0, 1, 0], [], []>} : vector<8x8xbf16>, vector<8x8xbf16>, vector<8x8xf32> -> vector<8x8xf32>
    %cst_72 = arith.constant 0.353553385 : f32
    %188 = vector.broadcast %cst_72 : f32 to vector<8x8xf32>
    %189 = arith.mulf %187, %188 : vector<8x8xf32>
    %cst_73 = arith.constant dense<0xFF800000> : vector<8xf32>
    %190 = vector.multi_reduction <maximumf>, %189, %cst_73 [1] : vector<8x8xf32> to vector<8xf32>
    %191 = vector.shape_cast %190 : vector<8xf32> to vector<8x1xf32>
    %192 = vector.broadcast %191 : vector<8x1xf32> to vector<8x8xf32>
    %193 = arith.subf %189, %192 : vector<8x8xf32>
    %194 = math.exp %193 : vector<8x8xf32>
    %cst_74 = arith.constant dense<0.000000e+00> : vector<8xf32>
    %195 = vector.multi_reduction <add>, %194, %cst_74 [1] : vector<8x8xf32> to vector<8xf32>
    %196 = vector.shape_cast %195 : vector<8xf32> to vector<8x1xf32>
    %197 = tpu.reciprocal %196 {approx = true} : vector<8x1xf32> -> vector<8x1xf32>
    %198 = vector.broadcast %197 : vector<8x1xf32> to vector<8x8xf32>
    %199 = arith.mulf %194, %198 : vector<8x8xf32>
    %200 = vector.extract_strided_slice %180 {offsets = [0, 0], sizes = [8, 8], strides = [1, 1]} : vector<8x32xf32> to vector<8x8xf32>
    %201 = arith.truncf %199 : vector<8x8xf32> to vector<8x8xbf16>
    %202 = arith.truncf %200 : vector<8x8xf32> to vector<8x8xbf16>
    %cst_75 = arith.constant dense<0.000000e+00> : vector<8x8xf32>
    %203 = tpu.matmul %201, %202, %cst_75 {dimension_numbers = #tpu.dot_dimension_numbers<[1], [0], [0], [1], [0, 0, 1, 1], [], []>} : vector<8x8xbf16>, vector<8x8xbf16>, vector<8x8xf32> -> vector<8x8xf32>
    %204 = vector.extract_strided_slice %181 {offsets = [0, 0], sizes = [8, 32], strides = [1, 1]} : vector<32x32xbf16> to vector<8x32xbf16>
    %205 = arith.truncf %203 : vector<8x8xf32> to vector<8x8xbf16>
    %cst_76 = arith.constant dense<0.000000e+00> : vector<8x32xf32>
    %206 = tpu.matmul %205, %204, %cst_76 {dimension_numbers = #tpu.dot_dimension_numbers<[1], [0], [0], [1], [0, 0, 1, 1], [], []>} : vector<8x8xbf16>, vector<8x32xbf16>, vector<8x32xf32> -> vector<8x32xf32>
    %207 = arith.addf %182, %206 : vector<8x32xf32>
    %208 = vector.extract_strided_slice %168 {offsets = [0, 8], sizes = [8, 8], strides = [1, 1]} : vector<8x32xf32> to vector<8x8xf32>
    %209 = arith.truncf %208 : vector<8x8xf32> to vector<8x8xbf16>
    %210 = vector.extract_strided_slice %174 {offsets = [0, 8], sizes = [8, 8], strides = [1, 1]} : vector<8x32xf32> to vector<8x8xf32>
    %211 = arith.truncf %210 : vector<8x8xf32> to vector<8x8xbf16>
    %cst_77 = arith.constant dense<0.000000e+00> : vector<8x8xf32>
    %212 = tpu.matmul %209, %211, %cst_77 {dimension_numbers = #tpu.dot_dimension_numbers<[1], [1], [0], [0], [0, 0, 1, 0], [], []>} : vector<8x8xbf16>, vector<8x8xbf16>, vector<8x8xf32> -> vector<8x8xf32>
    %cst_78 = arith.constant 0.353553385 : f32
    %213 = vector.broadcast %cst_78 : f32 to vector<8x8xf32>
    %214 = arith.mulf %212, %213 : vector<8x8xf32>
    %cst_79 = arith.constant dense<0xFF800000> : vector<8xf32>
    %215 = vector.multi_reduction <maximumf>, %214, %cst_79 [1] : vector<8x8xf32> to vector<8xf32>
    %216 = vector.shape_cast %215 : vector<8xf32> to vector<8x1xf32>
    %217 = vector.broadcast %216 : vector<8x1xf32> to vector<8x8xf32>
    %218 = arith.subf %214, %217 : vector<8x8xf32>
    %219 = math.exp %218 : vector<8x8xf32>
    %cst_80 = arith.constant dense<0.000000e+00> : vector<8xf32>
    %220 = vector.multi_reduction <add>, %219, %cst_80 [1] : vector<8x8xf32> to vector<8xf32>
    %221 = vector.shape_cast %220 : vector<8xf32> to vector<8x1xf32>
    %222 = tpu.reciprocal %221 {approx = true} : vector<8x1xf32> -> vector<8x1xf32>
    %223 = vector.broadcast %222 : vector<8x1xf32> to vector<8x8xf32>
    %224 = arith.mulf %219, %223 : vector<8x8xf32>
    %225 = vector.extract_strided_slice %180 {offsets = [0, 8], sizes = [8, 8], strides = [1, 1]} : vector<8x32xf32> to vector<8x8xf32>
    %226 = arith.truncf %224 : vector<8x8xf32> to vector<8x8xbf16>
    %227 = arith.truncf %225 : vector<8x8xf32> to vector<8x8xbf16>
    %cst_81 = arith.constant dense<0.000000e+00> : vector<8x8xf32>
    %228 = tpu.matmul %226, %227, %cst_81 {dimension_numbers = #tpu.dot_dimension_numbers<[1], [0], [0], [1], [0, 0, 1, 1], [], []>} : vector<8x8xbf16>, vector<8x8xbf16>, vector<8x8xf32> -> vector<8x8xf32>
    %229 = vector.extract_strided_slice %181 {offsets = [8, 0], sizes = [8, 32], strides = [1, 1]} : vector<32x32xbf16> to vector<8x32xbf16>
    %230 = arith.truncf %228 : vector<8x8xf32> to vector<8x8xbf16>
    %cst_82 = arith.constant dense<0.000000e+00> : vector<8x32xf32>
    %231 = tpu.matmul %230, %229, %cst_82 {dimension_numbers = #tpu.dot_dimension_numbers<[1], [0], [0], [1], [0, 0, 1, 1], [], []>} : vector<8x8xbf16>, vector<8x32xbf16>, vector<8x32xf32> -> vector<8x32xf32>
    %232 = arith.addf %207, %231 : vector<8x32xf32>
    %233 = vector.extract_strided_slice %168 {offsets = [0, 16], sizes = [8, 8], strides = [1, 1]} : vector<8x32xf32> to vector<8x8xf32>
    %234 = arith.truncf %233 : vector<8x8xf32> to vector<8x8xbf16>
    %235 = vector.extract_strided_slice %174 {offsets = [0, 16], sizes = [8, 8], strides = [1, 1]} : vector<8x32xf32> to vector<8x8xf32>
    %236 = arith.truncf %235 : vector<8x8xf32> to vector<8x8xbf16>
    %cst_83 = arith.constant dense<0.000000e+00> : vector<8x8xf32>
    %237 = tpu.matmul %234, %236, %cst_83 {dimension_numbers = #tpu.dot_dimension_numbers<[1], [1], [0], [0], [0, 0, 1, 0], [], []>} : vector<8x8xbf16>, vector<8x8xbf16>, vector<8x8xf32> -> vector<8x8xf32>
    %cst_84 = arith.constant 0.353553385 : f32
    %238 = vector.broadcast %cst_84 : f32 to vector<8x8xf32>
    %239 = arith.mulf %237, %238 : vector<8x8xf32>
    %cst_85 = arith.constant dense<0xFF800000> : vector<8xf32>
    %240 = vector.multi_reduction <maximumf>, %239, %cst_85 [1] : vector<8x8xf32> to vector<8xf32>
    %241 = vector.shape_cast %240 : vector<8xf32> to vector<8x1xf32>
    %242 = vector.broadcast %241 : vector<8x1xf32> to vector<8x8xf32>
    %243 = arith.subf %239, %242 : vector<8x8xf32>
    %244 = math.exp %243 : vector<8x8xf32>
    %cst_86 = arith.constant dense<0.000000e+00> : vector<8xf32>
    %245 = vector.multi_reduction <add>, %244, %cst_86 [1] : vector<8x8xf32> to vector<8xf32>
    %246 = vector.shape_cast %245 : vector<8xf32> to vector<8x1xf32>
    %247 = tpu.reciprocal %246 {approx = true} : vector<8x1xf32> -> vector<8x1xf32>
    %248 = vector.broadcast %247 : vector<8x1xf32> to vector<8x8xf32>
    %249 = arith.mulf %244, %248 : vector<8x8xf32>
    %250 = vector.extract_strided_slice %180 {offsets = [0, 16], sizes = [8, 8], strides = [1, 1]} : vector<8x32xf32> to vector<8x8xf32>
    %251 = arith.truncf %249 : vector<8x8xf32> to vector<8x8xbf16>
    %252 = arith.truncf %250 : vector<8x8xf32> to vector<8x8xbf16>
    %cst_87 = arith.constant dense<0.000000e+00> : vector<8x8xf32>
    %253 = tpu.matmul %251, %252, %cst_87 {dimension_numbers = #tpu.dot_dimension_numbers<[1], [0], [0], [1], [0, 0, 1, 1], [], []>} : vector<8x8xbf16>, vector<8x8xbf16>, vector<8x8xf32> -> vector<8x8xf32>
    %254 = vector.extract_strided_slice %181 {offsets = [16, 0], sizes = [8, 32], strides = [1, 1]} : vector<32x32xbf16> to vector<8x32xbf16>
    %255 = arith.truncf %253 : vector<8x8xf32> to vector<8x8xbf16>
    %cst_88 = arith.constant dense<0.000000e+00> : vector<8x32xf32>
    %256 = tpu.matmul %255, %254, %cst_88 {dimension_numbers = #tpu.dot_dimension_numbers<[1], [0], [0], [1], [0, 0, 1, 1], [], []>} : vector<8x8xbf16>, vector<8x32xbf16>, vector<8x32xf32> -> vector<8x32xf32>
    %257 = arith.addf %232, %256 : vector<8x32xf32>
    %258 = vector.extract_strided_slice %168 {offsets = [0, 24], sizes = [8, 8], strides = [1, 1]} : vector<8x32xf32> to vector<8x8xf32>
    %259 = arith.truncf %258 : vector<8x8xf32> to vector<8x8xbf16>
    %260 = vector.extract_strided_slice %174 {offsets = [0, 24], sizes = [8, 8], strides = [1, 1]} : vector<8x32xf32> to vector<8x8xf32>
    %261 = arith.truncf %260 : vector<8x8xf32> to vector<8x8xbf16>
    %cst_89 = arith.constant dense<0.000000e+00> : vector<8x8xf32>
    %262 = tpu.matmul %259, %261, %cst_89 {dimension_numbers = #tpu.dot_dimension_numbers<[1], [1], [0], [0], [0, 0, 1, 0], [], []>} : vector<8x8xbf16>, vector<8x8xbf16>, vector<8x8xf32> -> vector<8x8xf32>
    %cst_90 = arith.constant 0.353553385 : f32
    %263 = vector.broadcast %cst_90 : f32 to vector<8x8xf32>
    %264 = arith.mulf %262, %263 : vector<8x8xf32>
    %cst_91 = arith.constant dense<0xFF800000> : vector<8xf32>
    %265 = vector.multi_reduction <maximumf>, %264, %cst_91 [1] : vector<8x8xf32> to vector<8xf32>
    %266 = vector.shape_cast %265 : vector<8xf32> to vector<8x1xf32>
    %267 = vector.broadcast %266 : vector<8x1xf32> to vector<8x8xf32>
    %268 = arith.subf %264, %267 : vector<8x8xf32>
    %269 = math.exp %268 : vector<8x8xf32>
    %cst_92 = arith.constant dense<0.000000e+00> : vector<8xf32>
    %270 = vector.multi_reduction <add>, %269, %cst_92 [1] : vector<8x8xf32> to vector<8xf32>
    %271 = vector.shape_cast %270 : vector<8xf32> to vector<8x1xf32>
    %272 = tpu.reciprocal %271 {approx = true} : vector<8x1xf32> -> vector<8x1xf32>
    %273 = vector.broadcast %272 : vector<8x1xf32> to vector<8x8xf32>
    %274 = arith.mulf %269, %273 : vector<8x8xf32>
    %275 = vector.extract_strided_slice %180 {offsets = [0, 24], sizes = [8, 8], strides = [1, 1]} : vector<8x32xf32> to vector<8x8xf32>
    %276 = arith.truncf %274 : vector<8x8xf32> to vector<8x8xbf16>
    %277 = arith.truncf %275 : vector<8x8xf32> to vector<8x8xbf16>
    %cst_93 = arith.constant dense<0.000000e+00> : vector<8x8xf32>
    %278 = tpu.matmul %276, %277, %cst_93 {dimension_numbers = #tpu.dot_dimension_numbers<[1], [0], [0], [1], [0, 0, 1, 1], [], []>} : vector<8x8xbf16>, vector<8x8xbf16>, vector<8x8xf32> -> vector<8x8xf32>
    %279 = vector.extract_strided_slice %181 {offsets = [24, 0], sizes = [8, 32], strides = [1, 1]} : vector<32x32xbf16> to vector<8x32xbf16>
    %280 = arith.truncf %278 : vector<8x8xf32> to vector<8x8xbf16>
    %cst_94 = arith.constant dense<0.000000e+00> : vector<8x32xf32>
    %281 = tpu.matmul %280, %279, %cst_94 {dimension_numbers = #tpu.dot_dimension_numbers<[1], [0], [0], [1], [0, 0, 1, 1], [], []>} : vector<8x8xbf16>, vector<8x32xbf16>, vector<8x32xf32> -> vector<8x32xf32>
    %282 = arith.addf %257, %281 : vector<8x32xf32>
    %c7 = arith.constant 7 : index
    %c0_95 = arith.constant 0 : index
    %283 = vector.load %arg14[%c7, %c0_95] : memref<16x32xf32, #tpu.memory_space<vmem>>, vector<1x32xf32>
    %284 = vector.broadcast %283 : vector<1x32xf32> to vector<8x32xf32>
    %285 = arith.addf %282, %284 : vector<8x32xf32>
    %286 = arith.addf %162, %285 : vector<8x32xf32>
    %cst_96 = arith.constant dense<0.000000e+00> : vector<8xf32>
    %287 = vector.multi_reduction <add>, %286, %cst_96 [1] : vector<8x32xf32> to vector<8xf32>
    %288 = vector.shape_cast %287 : vector<8xf32> to vector<8x1xf32>
    %cst_97 = arith.constant 3.200000e+01 : f32
    %289 = vector.broadcast %cst_97 : f32 to vector<8x1xf32>
    %290 = arith.divf %288, %289 : vector<8x1xf32>
    %291 = vector.broadcast %290 : vector<8x1xf32> to vector<8x32xf32>
    %292 = arith.subf %286, %291 : vector<8x32xf32>
    %293 = arith.mulf %292, %292 : vector<8x32xf32>
    %cst_98 = arith.constant dense<0.000000e+00> : vector<8xf32>
    %294 = vector.multi_reduction <add>, %293, %cst_98 [1] : vector<8x32xf32> to vector<8xf32>
    %295 = vector.shape_cast %294 : vector<8xf32> to vector<8x1xf32>
    %cst_99 = arith.constant 3.200000e+01 : f32
    %296 = vector.broadcast %cst_99 : f32 to vector<8x1xf32>
    %297 = arith.divf %295, %296 : vector<8x1xf32>
    %298 = vector.broadcast %290 : vector<8x1xf32> to vector<8x32xf32>
    %299 = arith.subf %286, %298 : vector<8x32xf32>
    %cst_100 = arith.constant 9.99999974E-6 : f32
    %300 = vector.broadcast %cst_100 : f32 to vector<8x1xf32>
    %301 = arith.addf %297, %300 : vector<8x1xf32>
    %302 = math.rsqrt %301 : vector<8x1xf32>
    %303 = vector.broadcast %302 : vector<8x1xf32> to vector<8x32xf32>
    %304 = arith.mulf %299, %303 : vector<8x32xf32>
    %c11 = arith.constant 11 : index
    %c0_101 = arith.constant 0 : index
    %305 = vector.load %arg14[%c11, %c0_101] : memref<16x32xf32, #tpu.memory_space<vmem>>, vector<1x32xf32>
    %306 = vector.broadcast %305 : vector<1x32xf32> to vector<8x32xf32>
    %307 = arith.mulf %304, %306 : vector<8x32xf32>
    %c12 = arith.constant 12 : index
    %c0_102 = arith.constant 0 : index
    %308 = vector.load %arg14[%c12, %c0_102] : memref<16x32xf32, #tpu.memory_space<vmem>>, vector<1x32xf32>
    %309 = vector.broadcast %308 : vector<1x32xf32> to vector<8x32xf32>
    %310 = arith.addf %307, %309 : vector<8x32xf32>
    %c0_103 = arith.constant 0 : index
    %c0_104 = arith.constant 0 : index
    %311 = vector.load %arg11[%c0_103, %c0_104] : memref<32x64xbf16, #tpu.memory_space<vmem>>, vector<32x64xbf16>
    %312 = arith.truncf %310 : vector<8x32xf32> to vector<8x32xbf16>
    %cst_105 = arith.constant dense<0.000000e+00> : vector<8x64xf32>
    %313 = tpu.matmul %312, %311, %cst_105 {dimension_numbers = #tpu.dot_dimension_numbers<[1], [0], [0], [1], [0, 0, 1, 1], [], []>} : vector<8x32xbf16>, vector<32x64xbf16>, vector<8x64xf32> -> vector<8x64xf32>
    %c0_106 = arith.constant 0 : index
    %c0_107 = arith.constant 0 : index
    %314 = vector.load %arg12[%c0_106, %c0_107] : memref<1x64xf32, #tpu.memory_space<vmem>>, vector<1x64xf32>
    %315 = vector.broadcast %314 : vector<1x64xf32> to vector<8x64xf32>
    %316 = arith.addf %313, %315 : vector<8x64xf32>
    %cst_108 = arith.constant 0.000000e+00 : f32
    %317 = vector.broadcast %cst_108 : f32 to vector<8x64xf32>
    %318 = arith.maximumf %316, %317 : vector<8x64xf32>
    %c0_109 = arith.constant 0 : index
    %c0_110 = arith.constant 0 : index
    %319 = vector.load %arg13[%c0_109, %c0_110] : memref<64x32xbf16, #tpu.memory_space<vmem>>, vector<64x32xbf16>
    %320 = arith.truncf %318 : vector<8x64xf32> to vector<8x64xbf16>
    %cst_111 = arith.constant dense<0.000000e+00> : vector<8x32xf32>
    %321 = tpu.matmul %320, %319, %cst_111 {dimension_numbers = #tpu.dot_dimension_numbers<[1], [0], [0], [1], [0, 0, 1, 1], [], []>} : vector<8x64xbf16>, vector<64x32xbf16>, vector<8x32xf32> -> vector<8x32xf32>
    %c8 = arith.constant 8 : index
    %c0_112 = arith.constant 0 : index
    %322 = vector.load %arg14[%c8, %c0_112] : memref<16x32xf32, #tpu.memory_space<vmem>>, vector<1x32xf32>
    %323 = vector.broadcast %322 : vector<1x32xf32> to vector<8x32xf32>
    %324 = arith.addf %321, %323 : vector<8x32xf32>
    %325 = arith.addf %310, %324 : vector<8x32xf32>
    %cst_113 = arith.constant dense<0.000000e+00> : vector<8xf32>
    %326 = vector.multi_reduction <add>, %325, %cst_113 [1] : vector<8x32xf32> to vector<8xf32>
    %327 = vector.shape_cast %326 : vector<8xf32> to vector<8x1xf32>
    %cst_114 = arith.constant 3.200000e+01 : f32
    %328 = vector.broadcast %cst_114 : f32 to vector<8x1xf32>
    %329 = arith.divf %327, %328 : vector<8x1xf32>
    %330 = vector.broadcast %329 : vector<8x1xf32> to vector<8x32xf32>
    %331 = arith.subf %325, %330 : vector<8x32xf32>
    %332 = arith.mulf %331, %331 : vector<8x32xf32>
    %cst_115 = arith.constant dense<0.000000e+00> : vector<8xf32>
    %333 = vector.multi_reduction <add>, %332, %cst_115 [1] : vector<8x32xf32> to vector<8xf32>
    %334 = vector.shape_cast %333 : vector<8xf32> to vector<8x1xf32>
    %cst_116 = arith.constant 3.200000e+01 : f32
    %335 = vector.broadcast %cst_116 : f32 to vector<8x1xf32>
    %336 = arith.divf %334, %335 : vector<8x1xf32>
    %337 = vector.broadcast %329 : vector<8x1xf32> to vector<8x32xf32>
    %338 = arith.subf %325, %337 : vector<8x32xf32>
    %cst_117 = arith.constant 9.99999974E-6 : f32
    %339 = vector.broadcast %cst_117 : f32 to vector<8x1xf32>
    %340 = arith.addf %336, %339 : vector<8x1xf32>
    %341 = math.rsqrt %340 : vector<8x1xf32>
    %342 = vector.broadcast %341 : vector<8x1xf32> to vector<8x32xf32>
    %343 = arith.mulf %338, %342 : vector<8x32xf32>
    %c13 = arith.constant 13 : index
    %c0_118 = arith.constant 0 : index
    %344 = vector.load %arg14[%c13, %c0_118] : memref<16x32xf32, #tpu.memory_space<vmem>>, vector<1x32xf32>
    %345 = vector.broadcast %344 : vector<1x32xf32> to vector<8x32xf32>
    %346 = arith.mulf %343, %345 : vector<8x32xf32>
    %c14 = arith.constant 14 : index
    %c0_119 = arith.constant 0 : index
    %347 = vector.load %arg14[%c14, %c0_119] : memref<16x32xf32, #tpu.memory_space<vmem>>, vector<1x32xf32>
    %348 = vector.broadcast %347 : vector<1x32xf32> to vector<8x32xf32>
    %349 = arith.addf %346, %348 : vector<8x32xf32>
    %c0_120 = arith.constant 0 : index
    %c0_121 = arith.constant 0 : index
    %c0_122 = arith.constant 0 : index
    %350 = vector.load %arg15[%c0_120, %c0_121, %c0_122] : memref<1x8x32xf32, #tpu.memory_space<vmem>>, vector<1x8x32xf32>
    %351 = vector.shape_cast %350 : vector<1x8x32xf32> to vector<8x32xf32>
    %352 = vector.shape_cast %349 : vector<8x32xf32> to vector<1x8x32xf32>
    tpu.vector_store %arg15[%c0_120, %c0_121, %c0_122], %352 {strides = array<i32>} : memref<1x8x32xf32, #tpu.memory_space<vmem>>, vector<1x8x32xf32>,
    return
  }
  func.func @transform_0(%arg0: i32) -> (i32, i32, i32) {
    %c0_i32 = arith.constant 0 : i32
    %c0_i32_0 = arith.constant 0 : i32
    %c0_i32_1 = arith.constant 0 : i32
    return %arg0, %c0_i32, %c0_i32_0 : i32, i32, i32
  }
  func.func @transform_1(%arg0: i32) -> (i32, i32, i32) {
    %c0_i32 = arith.constant 0 : i32
    %c0_i32_0 = arith.constant 0 : i32
    %c0_i32_1 = arith.constant 0 : i32
    return %arg0, %c0_i32, %c0_i32_0 : i32, i32, i32
  }
  func.func @transform_2(%arg0: i32) -> (i32, i32) {
    %c0_i32 = arith.constant 0 : i32
    %c0_i32_0 = arith.constant 0 : i32
    %c0_i32_1 = arith.constant 0 : i32
    return %c0_i32, %c0_i32_0 : i32, i32
  }
  func.func @transform_3(%arg0: i32) -> (i32, i32) {
    %c0_i32 = arith.constant 0 : i32
    %c0_i32_0 = arith.constant 0 : i32
    %c0_i32_1 = arith.constant 0 : i32
    return %c0_i32, %c0_i32_0 : i32, i32
  }
  func.func @transform_4(%arg0: i32) -> (i32, i32) {
    %c0_i32 = arith.constant 0 : i32
    %c0_i32_0 = arith.constant 0 : i32
    %c0_i32_1 = arith.constant 0 : i32
    return %c0_i32, %c0_i32_0 : i32, i32
  }
  func.func @transform_5(%arg0: i32) -> (i32, i32) {
    %c0_i32 = arith.constant 0 : i32
    %c0_i32_0 = arith.constant 0 : i32
    %c0_i32_1 = arith.constant 0 : i32
    return %c0_i32, %c0_i32_0 : i32, i32
  }
  func.func @transform_6(%arg0: i32) -> (i32, i32) {
    %c0_i32 = arith.constant 0 : i32
    %c0_i32_0 = arith.constant 0 : i32
    %c0_i32_1 = arith.constant 0 : i32
    return %c0_i32, %c0_i32_0 : i32, i32
  }
  func.func @transform_7(%arg0: i32) -> (i32, i32) {
    %c0_i32 = arith.constant 0 : i32
    %c0_i32_0 = arith.constant 0 : i32
    %c0_i32_1 = arith.constant 0 : i32
    return %c0_i32, %c0_i32_0 : i32, i32
  }
  func.func @transform_8(%arg0: i32) -> (i32, i32) {
    %c0_i32 = arith.constant 0 : i32
    %c0_i32_0 = arith.constant 0 : i32
    %c0_i32_1 = arith.constant 0 : i32
    return %c0_i32, %c0_i32_0 : i32, i32
  }
  func.func @transform_9(%arg0: i32) -> (i32, i32) {
    %c0_i32 = arith.constant 0 : i32
    %c0_i32_0 = arith.constant 0 : i32
    %c0_i32_1 = arith.constant 0 : i32
    return %c0_i32, %c0_i32_0 : i32, i32
  }
  func.func @transform_10(%arg0: i32) -> (i32, i32) {
    %c0_i32 = arith.constant 0 : i32
    %c0_i32_0 = arith.constant 0 : i32
    %c0_i32_1 = arith.constant 0 : i32
    return %c0_i32, %c0_i32_0 : i32, i32
  }
  func.func @transform_11(%arg0: i32) -> (i32, i32) {
    %c0_i32 = arith.constant 0 : i32
    %c0_i32_0 = arith.constant 0 : i32
    %c0_i32_1 = arith.constant 0 : i32
    return %c0_i32, %c0_i32_0 : i32, i32
  }
  func.func @transform_12(%arg0: i32) -> (i32, i32) {
    %c0_i32 = arith.constant 0 : i32
    %c0_i32_0 = arith.constant 0 : i32
    %c0_i32_1 = arith.constant 0 : i32
    return %c0_i32, %c0_i32_0 : i32, i32
  }
  func.func @transform_13(%arg0: i32) -> (i32, i32) {
    %c0_i32 = arith.constant 0 : i32
    %c0_i32_0 = arith.constant 0 : i32
    %c0_i32_1 = arith.constant 0 : i32
    return %c0_i32, %c0_i32_0 : i32, i32
  }
  func.func @transform_14(%arg0: i32) -> (i32, i32, i32) {
    %c0_i32 = arith.constant 0 : i32
    %c0_i32_0 = arith.constant 0 : i32
    %c0_i32_1 = arith.constant 0 : i32
    return %arg0, %c0_i32, %c0_i32_0 : i32, i32, i32
  }
}

module attributes {stable_mosaic.version = 11 : i64} {
  func.func @decoder_layer_kernel(%arg0: i32, %arg1: memref<1x8x32xf32, #tpu.memory_space<vmem>>, %arg2: memref<1x8x32xf32, #tpu.memory_space<vmem>>, %arg3: memref<32x32xbf16, #tpu.memory_space<vmem>>, %arg4: memref<32x32xbf16, #tpu.memory_space<vmem>>, %arg5: memref<32x32xbf16, #tpu.memory_space<vmem>>, %arg6: memref<32x32xbf16, #tpu.memory_space<vmem>>, %arg7: memref<32x32xbf16, #tpu.memory_space<vmem>>, %arg8: memref<32x32xbf16, #tpu.memory_space<vmem>>, %arg9: memref<32x32xbf16, #tpu.memory_space<vmem>>, %arg10: memref<32x32xbf16, #tpu.memory_space<vmem>>, %arg11: memref<32x64xbf16, #tpu.memory_space<vmem>>, %arg12: memref<1x64xf32, #tpu.memory_space<vmem>>, %arg13: memref<64x32xbf16, #tpu.memory_space<vmem>>, %arg14: memref<16x32xf32, #tpu.memory_space<vmem>>, %arg15: memref<1x8x32xf32, #tpu.memory_space<vmem>>) attributes {dimension_semantics = [#tpu.dimension_semantics<parallel>], iteration_bounds = array<i64: 2>, scalar_prefetch = 0 : i64, scratch_operands = 0 : i64, tpu.core_type = #tpu.core_type<tc>, window_params = [{transform_indices = @transform_0, window_bounds = array<i64: 1, 8, 32>}, {transform_indices = @transform_1, window_bounds = array<i64: 1, 8, 32>}, {pipeline_mode = #tpu.pipeline_mode<synchronous>, transform_indices = @transform_2, window_bounds = array<i64: 32, 32>}, {pipeline_mode = #tpu.pipeline_mode<synchronous>, transform_indices = @transform_3, window_bounds = array<i64: 32, 32>}, {pipeline_mode = #tpu.pipeline_mode<synchronous>, transform_indices = @transform_4, window_bounds = array<i64: 32, 32>}, {pipeline_mode = #tpu.pipeline_mode<synchronous>, transform_indices = @transform_5, window_bounds = array<i64: 32, 32>}, {pipeline_mode = #tpu.pipeline_mode<synchronous>, transform_indices = @transform_6, window_bounds = array<i64: 32, 32>}, {pipeline_mode = #tpu.pipeline_mode<synchronous>, transform_indices = @transform_7, window_bounds = array<i64: 32, 32>}, {pipeline_mode = #tpu.pipeline_mode<synchronous>, transform_indices = @transform_8, window_bounds = array<i64: 32, 32>}, {pipeline_mode = #tpu.pipeline_mode<synchronous>, transform_indices = @transform_9, window_bounds = array<i64: 32, 32>}, {pipeline_mode = #tpu.pipeline_mode<synchronous>, transform_indices = @transform_10, window_bounds = array<i64: 32, 64>}, {pipeline_mode = #tpu.pipeline_mode<synchronous>, transform_indices = @transform_11, window_bounds = array<i64: 1, 64>}, {pipeline_mode = #tpu.pipeline_mode<synchronous>, transform_indices = @transform_12, window_bounds = array<i64: 64, 32>}, {pipeline_mode = #tpu.pipeline_mode<synchronous>, transform_indices = @transform_13, window_bounds = array<i64: 16, 32>}, {transform_indices = @transform_14, window_bounds = array<i64: 1, 8, 32>}]} {
    %c0 = arith.constant 0 : index
    %c0_0 = arith.constant 0 : index
    %c0_1 = arith.constant 0 : index
    %0 = vector.load %arg1[%c0, %c0_0, %c0_1] : memref<1x8x32xf32, #tpu.memory_space<vmem>>, vector<1x8x32xf32>
    %1 = vector.shape_cast %0 : vector<1x8x32xf32> to vector<8x32xf32>
    %c0_2 = arith.constant 0 : index
    %c0_3 = arith.constant 0 : index
    %c0_4 = arith.constant 0 : index
    %2 = vector.load %arg2[%c0_2, %c0_3, %c0_4] : memref<1x8x32xf32, #tpu.memory_space<vmem>>, vector<1x8x32xf32>
    %3 = vector.shape_cast %2 : vector<1x8x32xf32> to vector<8x32xf32>
    %c0_5 = arith.constant 0 : index
    %c0_6 = arith.constant 0 : index
    %4 = vector.load %arg3[%c0_5, %c0_6] : memref<32x32xbf16, #tpu.memory_space<vmem>>, vector<32x32xbf16>
    %5 = arith.truncf %1 : vector<8x32xf32> to vector<8x32xbf16>
    %cst = arith.constant dense<0.000000e+00> : vector<8x32xf32>
    %6 = tpu.matmul %5, %4, %cst {dimension_numbers = #tpu.dot_dimension_numbers<[1], [0], [0], [1], [0, 0, 1, 1], [], []>} : vector<8x32xbf16>, vector<32x32xbf16>, vector<8x32xf32> -> vector<8x32xf32>
    %c0_7 = arith.constant 0 : index
    %c0_8 = arith.constant 0 : index
    %7 = vector.load %arg14[%c0_7, %c0_8] : memref<16x32xf32, #tpu.memory_space<vmem>>, vector<1x32xf32>
    %8 = vector.broadcast %7 : vector<1x32xf32> to vector<8x32xf32>
    %9 = arith.addf %6, %8 : vector<8x32xf32>
    %c0_9 = arith.constant 0 : index
    %c0_10 = arith.constant 0 : index
    %10 = vector.load %arg4[%c0_9, %c0_10] : memref<32x32xbf16, #tpu.memory_space<vmem>>, vector<32x32xbf16>
    %11 = arith.truncf %1 : vector<8x32xf32> to vector<8x32xbf16>
    %cst_11 = arith.constant dense<0.000000e+00> : vector<8x32xf32>
    %12 = tpu.matmul %11, %10, %cst_11 {dimension_numbers = #tpu.dot_dimension_numbers<[1], [0], [0], [1], [0, 0, 1, 1], [], []>} : vector<8x32xbf16>, vector<32x32xbf16>, vector<8x32xf32> -> vector<8x32xf32>
    %c1 = arith.constant 1 : index
    %c0_12 = arith.constant 0 : index
    %13 = vector.load %arg14[%c1, %c0_12] : memref<16x32xf32, #tpu.memory_space<vmem>>, vector<1x32xf32>
    %14 = vector.broadcast %13 : vector<1x32xf32> to vector<8x32xf32>
    %15 = arith.addf %12, %14 : vector<8x32xf32>
    %c0_13 = arith.constant 0 : index
    %c0_14 = arith.constant 0 : index
    %16 = vector.load %arg5[%c0_13, %c0_14] : memref<32x32xbf16, #tpu.memory_space<vmem>>, vector<32x32xbf16>
    %17 = arith.truncf %1 : vector<8x32xf32> to vector<8x32xbf16>
    %cst_15 = arith.constant dense<0.000000e+00> : vector<8x32xf32>
    %18 = tpu.matmul %17, %16, %cst_15 {dimension_numbers = #tpu.dot_dimension_numbers<[1], [0], [0], [1], [0, 0, 1, 1], [], []>} : vector<8x32xbf16>, vector<32x32xbf16>, vector<8x32xf32> -> vector<8x32xf32>
    %c2 = arith.constant 2 : index
    %c0_16 = arith.constant 0 : index
    %19 = vector.load %arg14[%c2, %c0_16] : memref<16x32xf32, #tpu.memory_space<vmem>>, vector<1x32xf32>
    %20 = vector.broadcast %19 : vector<1x32xf32> to vector<8x32xf32>
    %21 = arith.addf %18, %20 : vector<8x32xf32>
    %22 = tpu.iota {dimensions = array<i32: 0>} : vector<8x8xi32>
    %23 = tpu.iota {dimensions = array<i32: 1>} : vector<8x8xi32>
    %24 = arith.cmpi sge, %22, %23 : vector<8x8xi32>
    %c0_17 = arith.constant 0 : index
    %c0_18 = arith.constant 0 : index
    %25 = vector.load %arg6[%c0_17, %c0_18] : memref<32x32xbf16, #tpu.memory_space<vmem>>, vector<32x32xbf16>
    %cst_19 = arith.constant 0.000000e+00 : f32
    %26 = vector.broadcast %cst_19 : f32 to vector<8x32xf32>
    %27 = vector.extract_strided_slice %9 {offsets = [0, 0], sizes = [8, 8], strides = [1, 1]} : vector<8x32xf32> to vector<8x8xf32>
    %28 = arith.truncf %27 : vector<8x8xf32> to vector<8x8xbf16>
    %29 = vector.extract_strided_slice %15 {offsets = [0, 0], sizes = [8, 8], strides = [1, 1]} : vector<8x32xf32> to vector<8x8xf32>
    %30 = arith.truncf %29 : vector<8x8xf32> to vector<8x8xbf16>
    %cst_20 = arith.constant dense<0.000000e+00> : vector<8x8xf32>
    %31 = tpu.matmul %28, %30, %cst_20 {dimension_numbers = #tpu.dot_dimension_numbers<[1], [1], [0], [0], [0, 0, 1, 0], [], []>} : vector<8x8xbf16>, vector<8x8xbf16>, vector<8x8xf32> -> vector<8x8xf32>
    %cst_21 = arith.constant 0.353553385 : f32
    %32 = vector.broadcast %cst_21 : f32 to vector<8x8xf32>
    %33 = arith.mulf %31, %32 : vector<8x8xf32>
    %cst_22 = arith.constant -1.000000e+09 : f32
    %34 = vector.broadcast %cst_22 : f32 to vector<8x8xf32>
    %35 = arith.select %24, %33, %34 : vector<8x8xi1>, vector<8x8xf32>
    %cst_23 = arith.constant dense<0xFF800000> : vector<8xf32>
    %36 = vector.multi_reduction <maximumf>, %35, %cst_23 [1] : vector<8x8xf32> to vector<8xf32>
    %37 = vector.shape_cast %36 : vector<8xf32> to vector<8x1xf32>
    %38 = vector.broadcast %37 : vector<8x1xf32> to vector<8x8xf32>
    %39 = arith.subf %35, %38 : vector<8x8xf32>
    %40 = math.exp %39 : vector<8x8xf32>
    %cst_24 = arith.constant dense<0.000000e+00> : vector<8xf32>
    %41 = vector.multi_reduction <add>, %40, %cst_24 [1] : vector<8x8xf32> to vector<8xf32>
    %42 = vector.shape_cast %41 : vector<8xf32> to vector<8x1xf32>
    %43 = tpu.reciprocal %42 {approx = true} : vector<8x1xf32> -> vector<8x1xf32>
    %44 = vector.broadcast %43 : vector<8x1xf32> to vector<8x8xf32>
    %45 = arith.mulf %40, %44 : vector<8x8xf32>
    %46 = vector.extract_strided_slice %21 {offsets = [0, 0], sizes = [8, 8], strides = [1, 1]} : vector<8x32xf32> to vector<8x8xf32>
    %47 = arith.truncf %45 : vector<8x8xf32> to vector<8x8xbf16>
    %48 = arith.truncf %46 : vector<8x8xf32> to vector<8x8xbf16>
    %cst_25 = arith.constant dense<0.000000e+00> : vector<8x8xf32>
    %49 = tpu.matmul %47, %48, %cst_25 {dimension_numbers = #tpu.dot_dimension_numbers<[1], [0], [0], [1], [0, 0, 1, 1], [], []>} : vector<8x8xbf16>, vector<8x8xbf16>, vector<8x8xf32> -> vector<8x8xf32>
    %50 = vector.extract_strided_slice %25 {offsets = [0, 0], sizes = [8, 32], strides = [1, 1]} : vector<32x32xbf16> to vector<8x32xbf16>
    %51 = arith.truncf %49 : vector<8x8xf32> to vector<8x8xbf16>
    %cst_26 = arith.constant dense<0.000000e+00> : vector<8x32xf32>
    %52 = tpu.matmul %51, %50, %cst_26 {dimension_numbers = #tpu.dot_dimension_numbers<[1], [0], [0], [1], [0, 0, 1, 1], [], []>} : vector<8x8xbf16>, vector<8x32xbf16>, vector<8x32xf32> -> vector<8x32xf32>
    %53 = arith.addf %26, %52 : vector<8x32xf32>
    %54 = vector.extract_strided_slice %9 {offsets = [0, 8], sizes = [8, 8], strides = [1, 1]} : vector<8x32xf32> to vector<8x8xf32>
    %55 = arith.truncf %54 : vector<8x8xf32> to vector<8x8xbf16>
    %56 = vector.extract_strided_slice %15 {offsets = [0, 8], sizes = [8, 8], strides = [1, 1]} : vector<8x32xf32> to vector<8x8xf32>
    %57 = arith.truncf %56 : vector<8x8xf32> to vector<8x8xbf16>
    %cst_27 = arith.constant dense<0.000000e+00> : vector<8x8xf32>
    %58 = tpu.matmul %55, %57, %cst_27 {dimension_numbers = #tpu.dot_dimension_numbers<[1], [1], [0], [0], [0, 0, 1, 0], [], []>} : vector<8x8xbf16>, vector<8x8xbf16>, vector<8x8xf32> -> vector<8x8xf32>
    %cst_28 = arith.constant 0.353553385 : f32
    %59 = vector.broadcast %cst_28 : f32 to vector<8x8xf32>
    %60 = arith.mulf %58, %59 : vector<8x8xf32>
    %cst_29 = arith.constant -1.000000e+09 : f32
    %61 = vector.broadcast %cst_29 : f32 to vector<8x8xf32>
    %62 = arith.select %24, %60, %61 : vector<8x8xi1>, vector<8x8xf32>
    %cst_30 = arith.constant dense<0xFF800000> : vector<8xf32>
    %63 = vector.multi_reduction <maximumf>, %62, %cst_30 [1] : vector<8x8xf32> to vector<8xf32>
    %64 = vector.shape_cast %63 : vector<8xf32> to vector<8x1xf32>
    %65 = vector.broadcast %64 : vector<8x1xf32> to vector<8x8xf32>
    %66 = arith.subf %62, %65 : vector<8x8xf32>
    %67 = math.exp %66 : vector<8x8xf32>
    %cst_31 = arith.constant dense<0.000000e+00> : vector<8xf32>
    %68 = vector.multi_reduction <add>, %67, %cst_31 [1] : vector<8x8xf32> to vector<8xf32>
    %69 = vector.shape_cast %68 : vector<8xf32> to vector<8x1xf32>
    %70 = tpu.reciprocal %69 {approx = true} : vector<8x1xf32> -> vector<8x1xf32>
    %71 = vector.broadcast %70 : vector<8x1xf32> to vector<8x8xf32>
    %72 = arith.mulf %67, %71 : vector<8x8xf32>
    %73 = vector.extract_strided_slice %21 {offsets = [0, 8], sizes = [8, 8], strides = [1, 1]} : vector<8x32xf32> to vector<8x8xf32>
    %74 = arith.truncf %72 : vector<8x8xf32> to vector<8x8xbf16>
    %75 = arith.truncf %73 : vector<8x8xf32> to vector<8x8xbf16>
    %cst_32 = arith.constant dense<0.000000e+00> : vector<8x8xf32>
    %76 = tpu.matmul %74, %75, %cst_32 {dimension_numbers = #tpu.dot_dimension_numbers<[1], [0], [0], [1], [0, 0, 1, 1], [], []>} : vector<8x8xbf16>, vector<8x8xbf16>, vector<8x8xf32> -> vector<8x8xf32>
    %77 = vector.extract_strided_slice %25 {offsets = [8, 0], sizes = [8, 32], strides = [1, 1]} : vector<32x32xbf16> to vector<8x32xbf16>
    %78 = arith.truncf %76 : vector<8x8xf32> to vector<8x8xbf16>
    %cst_33 = arith.constant dense<0.000000e+00> : vector<8x32xf32>
    %79 = tpu.matmul %78, %77, %cst_33 {dimension_numbers = #tpu.dot_dimension_numbers<[1], [0], [0], [1], [0, 0, 1, 1], [], []>} : vector<8x8xbf16>, vector<8x32xbf16>, vector<8x32xf32> -> vector<8x32xf32>
    %80 = arith.addf %53, %79 : vector<8x32xf32>
    %81 = vector.extract_strided_slice %9 {offsets = [0, 16], sizes = [8, 8], strides = [1, 1]} : vector<8x32xf32> to vector<8x8xf32>
    %82 = arith.truncf %81 : vector<8x8xf32> to vector<8x8xbf16>
    %83 = vector.extract_strided_slice %15 {offsets = [0, 16], sizes = [8, 8], strides = [1, 1]} : vector<8x32xf32> to vector<8x8xf32>
    %84 = arith.truncf %83 : vector<8x8xf32> to vector<8x8xbf16>
    %cst_34 = arith.constant dense<0.000000e+00> : vector<8x8xf32>
    %85 = tpu.matmul %82, %84, %cst_34 {dimension_numbers = #tpu.dot_dimension_numbers<[1], [1], [0], [0], [0, 0, 1, 0], [], []>} : vector<8x8xbf16>, vector<8x8xbf16>, vector<8x8xf32> -> vector<8x8xf32>
    %cst_35 = arith.constant 0.353553385 : f32
    %86 = vector.broadcast %cst_35 : f32 to vector<8x8xf32>
    %87 = arith.mulf %85, %86 : vector<8x8xf32>
    %cst_36 = arith.constant -1.000000e+09 : f32
    %88 = vector.broadcast %cst_36 : f32 to vector<8x8xf32>
    %89 = arith.select %24, %87, %88 : vector<8x8xi1>, vector<8x8xf32>
    %cst_37 = arith.constant dense<0xFF800000> : vector<8xf32>
    %90 = vector.multi_reduction <maximumf>, %89, %cst_37 [1] : vector<8x8xf32> to vector<8xf32>
    %91 = vector.shape_cast %90 : vector<8xf32> to vector<8x1xf32>
    %92 = vector.broadcast %91 : vector<8x1xf32> to vector<8x8xf32>
    %93 = arith.subf %89, %92 : vector<8x8xf32>
    %94 = math.exp %93 : vector<8x8xf32>
    %cst_38 = arith.constant dense<0.000000e+00> : vector<8xf32>
    %95 = vector.multi_reduction <add>, %94, %cst_38 [1] : vector<8x8xf32> to vector<8xf32>
    %96 = vector.shape_cast %95 : vector<8xf32> to vector<8x1xf32>
    %97 = tpu.reciprocal %96 {approx = true} : vector<8x1xf32> -> vector<8x1xf32>
    %98 = vector.broadcast %97 : vector<8x1xf32> to vector<8x8xf32>
    %99 = arith.mulf %94, %98 : vector<8x8xf32>
    %100 = vector.extract_strided_slice %21 {offsets = [0, 16], sizes = [8, 8], strides = [1, 1]} : vector<8x32xf32> to vector<8x8xf32>
    %101 = arith.truncf %99 : vector<8x8xf32> to vector<8x8xbf16>
    %102 = arith.truncf %100 : vector<8x8xf32> to vector<8x8xbf16>
    %cst_39 = arith.constant dense<0.000000e+00> : vector<8x8xf32>
    %103 = tpu.matmul %101, %102, %cst_39 {dimension_numbers = #tpu.dot_dimension_numbers<[1], [0], [0], [1], [0, 0, 1, 1], [], []>} : vector<8x8xbf16>, vector<8x8xbf16>, vector<8x8xf32> -> vector<8x8xf32>
    %104 = vector.extract_strided_slice %25 {offsets = [16, 0], sizes = [8, 32], strides = [1, 1]} : vector<32x32xbf16> to vector<8x32xbf16>
    %105 = arith.truncf %103 : vector<8x8xf32> to vector<8x8xbf16>
    %cst_40 = arith.constant dense<0.000000e+00> : vector<8x32xf32>
    %106 = tpu.matmul %105, %104, %cst_40 {dimension_numbers = #tpu.dot_dimension_numbers<[1], [0], [0], [1], [0, 0, 1, 1], [], []>} : vector<8x8xbf16>, vector<8x32xbf16>, vector<8x32xf32> -> vector<8x32xf32>
    %107 = arith.addf %80, %106 : vector<8x32xf32>
    %108 = vector.extract_strided_slice %9 {offsets = [0, 24], sizes = [8, 8], strides = [1, 1]} : vector<8x32xf32> to vector<8x8xf32>
    %109 = arith.truncf %108 : vector<8x8xf32> to vector<8x8xbf16>
    %110 = vector.extract_strided_slice %15 {offsets = [0, 24], sizes = [8, 8], strides = [1, 1]} : vector<8x32xf32> to vector<8x8xf32>
    %111 = arith.truncf %110 : vector<8x8xf32> to vector<8x8xbf16>
    %cst_41 = arith.constant dense<0.000000e+00> : vector<8x8xf32>
    %112 = tpu.matmul %109, %111, %cst_41 {dimension_numbers = #tpu.dot_dimension_numbers<[1], [1], [0], [0], [0, 0, 1, 0], [], []>} : vector<8x8xbf16>, vector<8x8xbf16>, vector<8x8xf32> -> vector<8x8xf32>
    %cst_42 = arith.constant 0.353553385 : f32
    %113 = vector.broadcast %cst_42 : f32 to vector<8x8xf32>
    %114 = arith.mulf %112, %113 : vector<8x8xf32>
    %cst_43 = arith.constant -1.000000e+09 : f32
    %115 = vector.broadcast %cst_43 : f32 to vector<8x8xf32>
    %116 = arith.select %24, %114, %115 : vector<8x8xi1>, vector<8x8xf32>
    %cst_44 = arith.constant dense<0xFF800000> : vector<8xf32>
    %117 = vector.multi_reduction <maximumf>, %116, %cst_44 [1] : vector<8x8xf32> to vector<8xf32>
    %118 = vector.shape_cast %117 : vector<8xf32> to vector<8x1xf32>
    %119 = vector.broadcast %118 : vector<8x1xf32> to vector<8x8xf32>
    %120 = arith.subf %116, %119 : vector<8x8xf32>
    %121 = math.exp %120 : vector<8x8xf32>
    %cst_45 = arith.constant dense<0.000000e+00> : vector<8xf32>
    %122 = vector.multi_reduction <add>, %121, %cst_45 [1] : vector<8x8xf32> to vector<8xf32>
    %123 = vector.shape_cast %122 : vector<8xf32> to vector<8x1xf32>
    %124 = tpu.reciprocal %123 {approx = true} : vector<8x1xf32> -> vector<8x1xf32>
    %125 = vector.broadcast %124 : vector<8x1xf32> to vector<8x8xf32>
    %126 = arith.mulf %121, %125 : vector<8x8xf32>
    %127 = vector.extract_strided_slice %21 {offsets = [0, 24], sizes = [8, 8], strides = [1, 1]} : vector<8x32xf32> to vector<8x8xf32>
    %128 = arith.truncf %126 : vector<8x8xf32> to vector<8x8xbf16>
    %129 = arith.truncf %127 : vector<8x8xf32> to vector<8x8xbf16>
    %cst_46 = arith.constant dense<0.000000e+00> : vector<8x8xf32>
    %130 = tpu.matmul %128, %129, %cst_46 {dimension_numbers = #tpu.dot_dimension_numbers<[1], [0], [0], [1], [0, 0, 1, 1], [], []>} : vector<8x8xbf16>, vector<8x8xbf16>, vector<8x8xf32> -> vector<8x8xf32>
    %131 = vector.extract_strided_slice %25 {offsets = [24, 0], sizes = [8, 32], strides = [1, 1]} : vector<32x32xbf16> to vector<8x32xbf16>
    %132 = arith.truncf %130 : vector<8x8xf32> to vector<8x8xbf16>
    %cst_47 = arith.constant dense<0.000000e+00> : vector<8x32xf32>
    %133 = tpu.matmul %132, %131, %cst_47 {dimension_numbers = #tpu.dot_dimension_numbers<[1], [0], [0], [1], [0, 0, 1, 1], [], []>} : vector<8x8xbf16>, vector<8x32xbf16>, vector<8x32xf32> -> vector<8x32xf32>
    %134 = arith.addf %107, %133 : vector<8x32xf32>
    %c3 = arith.constant 3 : index
    %c0_48 = arith.constant 0 : index
    %135 = vector.load %arg14[%c3, %c0_48] : memref<16x32xf32, #tpu.memory_space<vmem>>, vector<1x32xf32>
    %136 = vector.broadcast %135 : vector<1x32xf32> to vector<8x32xf32>
    %137 = arith.addf %134, %136 : vector<8x32xf32>
    %138 = arith.addf %1, %137 : vector<8x32xf32>
    %cst_49 = arith.constant dense<0.000000e+00> : vector<8xf32>
    %139 = vector.multi_reduction <add>, %138, %cst_49 [1] : vector<8x32xf32> to vector<8xf32>
    %140 = vector.shape_cast %139 : vector<8xf32> to vector<8x1xf32>
    %cst_50 = arith.constant 3.200000e+01 : f32
    %141 = vector.broadcast %cst_50 : f32 to vector<8x1xf32>
    %142 = arith.divf %140, %141 : vector<8x1xf32>
    %143 = vector.broadcast %142 : vector<8x1xf32> to vector<8x32xf32>
    %144 = arith.subf %138, %143 : vector<8x32xf32>
    %145 = arith.mulf %144, %144 : vector<8x32xf32>
    %cst_51 = arith.constant dense<0.000000e+00> : vector<8xf32>
    %146 = vector.multi_reduction <add>, %145, %cst_51 [1] : vector<8x32xf32> to vector<8xf32>
    %147 = vector.shape_cast %146 : vector<8xf32> to vector<8x1xf32>
    %cst_52 = arith.constant 3.200000e+01 : f32
    %148 = vector.broadcast %cst_52 : f32 to vector<8x1xf32>
    %149 = arith.divf %147, %148 : vector<8x1xf32>
    %150 = vector.broadcast %142 : vector<8x1xf32> to vector<8x32xf32>
    %151 = arith.subf %138, %150 : vector<8x32xf32>
    %cst_53 = arith.constant 9.99999974E-6 : f32
    %152 = vector.broadcast %cst_53 : f32 to vector<8x1xf32>
    %153 = arith.addf %149, %152 : vector<8x1xf32>
    %154 = math.rsqrt %153 : vector<8x1xf32>
    %155 = vector.broadcast %154 : vector<8x1xf32> to vector<8x32xf32>
    %156 = arith.mulf %151, %155 : vector<8x32xf32>
    %c9 = arith.constant 9 : index
    %c0_54 = arith.constant 0 : index
    %157 = vector.load %arg14[%c9, %c0_54] : memref<16x32xf32, #tpu.memory_space<vmem>>, vector<1x32xf32>
    %158 = vector.broadcast %157 : vector<1x32xf32> to vector<8x32xf32>
    %159 = arith.mulf %156, %158 : vector<8x32xf32>
    %c10 = arith.constant 10 : index
    %c0_55 = arith.constant 0 : index
    %160 = vector.load %arg14[%c10, %c0_55] : memref<16x32xf32, #tpu.memory_space<vmem>>, vector<1x32xf32>
    %161 = vector.broadcast %160 : vector<1x32xf32> to vector<8x32xf32>
    %162 = arith.addf %159, %161 : vector<8x32xf32>
    %c0_56 = arith.constant 0 : index
    %c0_57 = arith.constant 0 : index
    %163 = vector.load %arg7[%c0_56, %c0_57] : memref<32x32xbf16, #tpu.memory_space<vmem>>, vector<32x32xbf16>
    %164 = arith.truncf %162 : vector<8x32xf32> to vector<8x32xbf16>
    %cst_58 = arith.constant dense<0.000000e+00> : vector<8x32xf32>
    %165 = tpu.matmul %164, %163, %cst_58 {dimension_numbers = #tpu.dot_dimension_numbers<[1], [0], [0], [1], [0, 0, 1, 1], [], []>} : vector<8x32xbf16>, vector<32x32xbf16>, vector<8x32xf32> -> vector<8x32xf32>
    %c4 = arith.constant 4 : index
    %c0_59 = arith.constant 0 : index
    %166 = vector.load %arg14[%c4, %c0_59] : memref<16x32xf32, #tpu.memory_space<vmem>>, vector<1x32xf32>
    %167 = vector.broadcast %166 : vector<1x32xf32> to vector<8x32xf32>
    %168 = arith.addf %165, %167 : vector<8x32xf32>
    %c0_60 = arith.constant 0 : index
    %c0_61 = arith.constant 0 : index
    %169 = vector.load %arg8[%c0_60, %c0_61] : memref<32x32xbf16, #tpu.memory_space<vmem>>, vector<32x32xbf16>
    %170 = arith.truncf %3 : vector<8x32xf32> to vector<8x32xbf16>
    %cst_62 = arith.constant dense<0.000000e+00> : vector<8x32xf32>
    %171 = tpu.matmul %170, %169, %cst_62 {dimension_numbers = #tpu.dot_dimension_numbers<[1], [0], [0], [1], [0, 0, 1, 1], [], []>} : vector<8x32xbf16>, vector<32x32xbf16>, vector<8x32xf32> -> vector<8x32xf32>
    %c5 = arith.constant 5 : index
    %c0_63 = arith.constant 0 : index
    %172 = vector.load %arg14[%c5, %c0_63] : memref<16x32xf32, #tpu.memory_space<vmem>>, vector<1x32xf32>
    %173 = vector.broadcast %172 : vector<1x32xf32> to vector<8x32xf32>
    %174 = arith.addf %171, %173 : vector<8x32xf32>
    %c0_64 = arith.constant 0 : index
    %c0_65 = arith.constant 0 : index
    %175 = vector.load %arg9[%c0_64, %c0_65] : memref<32x32xbf16, #tpu.memory_space<vmem>>, vector<32x32xbf16>
    %176 = arith.truncf %3 : vector<8x32xf32> to vector<8x32xbf16>
    %cst_66 = arith.constant dense<0.000000e+00> : vector<8x32xf32>
    %177 = tpu.matmul %176, %175, %cst_66 {dimension_numbers = #tpu.dot_dimension_numbers<[1], [0], [0], [1], [0, 0, 1, 1], [], []>} : vector<8x32xbf16>, vector<32x32xbf16>, vector<8x32xf32> -> vector<8x32xf32>
    %c6 = arith.constant 6 : index
    %c0_67 = arith.constant 0 : index
    %178 = vector.load %arg14[%c6, %c0_67] : memref<16x32xf32, #tpu.memory_space<vmem>>, vector<1x32xf32>
    %179 = vector.broadcast %178 : vector<1x32xf32> to vector<8x32xf32>
    %180 = arith.addf %177, %179 : vector<8x32xf32>
    %c0_68 = arith.constant 0 : index
    %c0_69 = arith.constant 0 : index
    %181 = vector.load %arg10[%c0_68, %c0_69] : memref<32x32xbf16, #tpu.memory_space<vmem>>, vector<32x32xbf16>
    %cst_70 = arith.constant 0.000000e+00 : f32
    %182 = vector.broadcast %cst_70 : f32 to vector<8x32xf32>
    %183 = vector.extract_strided_slice %168 {offsets = [0, 0], sizes = [8, 8], strides = [1, 1]} : vector<8x32xf32> to vector<8x8xf32>
    %184 = arith.truncf %183 : vector<8x8xf32> to vector<8x8xbf16>
    %185 = vector.extract_strided_slice %174 {offsets = [0, 0], sizes = [8, 8], strides = [1, 1]} : vector<8x32xf32> to vector<8x8xf32>
    %186 = arith.truncf %185 : vector<8x8xf32> to vector<8x8xbf16>
    %cst_71 = arith.constant dense<0.000000e+00> : vector<8x8xf32>
    %187 = tpu.matmul %184, %186, %cst_71 {dimension_numbers = #tpu.dot_dimension_numbers<[1], [1], [0], [0], [0, 0, 1, 0], [], []>} : vector<8x8xbf16>, vector<8x8xbf16>, vector<8x8xf32> -> vector<8x8xf32>
    %cst_72 = arith.constant 0.353553385 : f32
    %188 = vector.broadcast %cst_72 : f32 to vector<8x8xf32>
    %189 = arith.mulf %187, %188 : vector<8x8xf32>
    %cst_73 = arith.constant dense<0xFF800000> : vector<8xf32>
    %190 = vector.multi_reduction <maximumf>, %189, %cst_73 [1] : vector<8x8xf32> to vector<8xf32>
    %191 = vector.shape_cast %190 : vector<8xf32> to vector<8x1xf32>
    %192 = vector.broadcast %191 : vector<8x1xf32> to vector<8x8xf32>
    %193 = arith.subf %189, %192 : vector<8x8xf32>
    %194 = math.exp %193 : vector<8x8xf32>
    %cst_74 = arith.constant dense<0.000000e+00> : vector<8xf32>
    %195 = vector.multi_reduction <add>, %194, %cst_74 [1] : vector<8x8xf32> to vector<8xf32>
    %196 = vector.shape_cast %195 : vector<8xf32> to vector<8x1xf32>
    %197 = tpu.reciprocal %196 {approx = true} : vector<8x1xf32> -> vector<8x1xf32>
    %198 = vector.broadcast %197 : vector<8x1xf32> to vector<8x8xf32>
    %199 = arith.mulf %194, %198 : vector<8x8xf32>
    %200 = vector.extract_strided_slice %180 {offsets = [0, 0], sizes = [8, 8], strides = [1, 1]} : vector<8x32xf32> to vector<8x8xf32>
    %201 = arith.truncf %199 : vector<8x8xf32> to vector<8x8xbf16>
    %202 = arith.truncf %200 : vector<8x8xf32> to vector<8x8xbf16>
    %cst_75 = arith.constant dense<0.000000e+00> : vector<8x8xf32>
    %203 = tpu.matmul %201, %202, %cst_75 {dimension_numbers = #tpu.dot_dimension_numbers<[1], [0], [0], [1], [0, 0, 1, 1], [], []>} : vector<8x8xbf16>, vector<8x8xbf16>, vector<8x8xf32> -> vector<8x8xf32>
    %204 = vector.extract_strided_slice %181 {offsets = [0, 0], sizes = [8, 32], strides = [1, 1]} : vector<32x32xbf16> to vector<8x32xbf16>
    %205 = arith.truncf %203 : vector<8x8xf32> to vector<8x8xbf16>
    %cst_76 = arith.constant dense<0.000000e+00> : vector<8x32xf32>
    %206 = tpu.matmul %205, %204, %cst_76 {dimension_numbers = #tpu.dot_dimension_numbers<[1], [0], [0], [1], [0, 0, 1, 1], [], []>} : vector<8x8xbf16>, vector<8x32xbf16>, vector<8x32xf32> -> vector<8x32xf32>
    %207 = arith.addf %182, %206 : vector<8x32xf32>
    %208 = vector.extract_strided_slice %168 {offsets = [0, 8], sizes = [8, 8], strides = [1, 1]} : vector<8x32xf32> to vector<8x8xf32>
    %209 = arith.truncf %208 : vector<8x8xf32> to vector<8x8xbf16>
    %210 = vector.extract_strided_slice %174 {offsets = [0, 8], sizes = [8, 8], strides = [1, 1]} : vector<8x32xf32> to vector<8x8xf32>
    %211 = arith.truncf %210 : vector<8x8xf32> to vector<8x8xbf16>
    %cst_77 = arith.constant dense<0.000000e+00> : vector<8x8xf32>
    %212 = tpu.matmul %209, %211, %cst_77 {dimension_numbers = #tpu.dot_dimension_numbers<[1], [1], [0], [0], [0, 0, 1, 0], [], []>} : vector<8x8xbf16>, vector<8x8xbf16>, vector<8x8xf32> -> vector<8x8xf32>
    %cst_78 = arith.constant 0.353553385 : f32
    %213 = vector.broadcast %cst_78 : f32 to vector<8x8xf32>
    %214 = arith.mulf %212, %213 : vector<8x8xf32>
    %cst_79 = arith.constant dense<0xFF800000> : vector<8xf32>
    %215 = vector.multi_reduction <maximumf>, %214, %cst_79 [1] : vector<8x8xf32> to vector<8xf32>
    %216 = vector.shape_cast %215 : vector<8xf32> to vector<8x1xf32>
    %217 = vector.broadcast %216 : vector<8x1xf32> to vector<8x8xf32>
    %218 = arith.subf %214, %217 : vector<8x8xf32>
    %219 = math.exp %218 : vector<8x8xf32>
    %cst_80 = arith.constant dense<0.000000e+00> : vector<8xf32>
    %220 = vector.multi_reduction <add>, %219, %cst_80 [1] : vector<8x8xf32> to vector<8xf32>
    %221 = vector.shape_cast %220 : vector<8xf32> to vector<8x1xf32>
    %222 = tpu.reciprocal %221 {approx = true} : vector<8x1xf32> -> vector<8x1xf32>
    %223 = vector.broadcast %222 : vector<8x1xf32> to vector<8x8xf32>
    %224 = arith.mulf %219, %223 : vector<8x8xf32>
    %225 = vector.extract_strided_slice %180 {offsets = [0, 8], sizes = [8, 8], strides = [1, 1]} : vector<8x32xf32> to vector<8x8xf32>
    %226 = arith.truncf %224 : vector<8x8xf32> to vector<8x8xbf16>
    %227 = arith.truncf %225 : vector<8x8xf32> to vector<8x8xbf16>
    %cst_81 = arith.constant dense<0.000000e+00> : vector<8x8xf32>
    %228 = tpu.matmul %226, %227, %cst_81 {dimension_numbers = #tpu.dot_dimension_numbers<[1], [0], [0], [1], [0, 0, 1, 1], [], []>} : vector<8x8xbf16>, vector<8x8xbf16>, vector<8x8xf32> -> vector<8x8xf32>
    %229 = vector.extract_strided_slice %181 {offsets = [8, 0], sizes = [8, 32], strides = [1, 1]} : vector<32x32xbf16> to vector<8x32xbf16>
    %230 = arith.truncf %228 : vector<8x8xf32> to vector<8x8xbf16>
    %cst_82 = arith.constant dense<0.000000e+00> : vector<8x32xf32>
    %231 = tpu.matmul %230, %229, %cst_82 {dimension_numbers = #tpu.dot_dimension_numbers<[1], [0], [0], [1], [0, 0, 1, 1], [], []>} : vector<8x8xbf16>, vector<8x32xbf16>, vector<8x32xf32> -> vector<8x32xf32>
    %232 = arith.addf %207, %231 : vector<8x32xf32>
    %233 = vector.extract_strided_slice %168 {offsets = [0, 16], sizes = [8, 8], strides = [1, 1]} : vector<8x32xf32> to vector<8x8xf32>
    %234 = arith.truncf %233 : vector<8x8xf32> to vector<8x8xbf16>
    %235 = vector.extract_strided_slice %174 {offsets = [0, 16], sizes = [8, 8], strides = [1, 1]} : vector<8x32xf32> to vector<8x8xf32>
    %236 = arith.truncf %235 : vector<8x8xf32> to vector<8x8xbf16>
    %cst_83 = arith.constant dense<0.000000e+00> : vector<8x8xf32>
    %237 = tpu.matmul %234, %236, %cst_83 {dimension_numbers = #tpu.dot_dimension_numbers<[1], [1], [0], [0], [0, 0, 1, 0], [], []>} : vector<8x8xbf16>, vector<8x8xbf16>, vector<8x8xf32> -> vector<8x8xf32>
    %cst_84 = arith.constant 0.353553385 : f32
    %238 = vector.broadcast %cst_84 : f32 to vector<8x8xf32>
    %239 = arith.mulf %237, %238 : vector<8x8xf32>
    %cst_85 = arith.constant dense<0xFF800000> : vector<8xf32>
    %240 = vector.multi_reduction <maximumf>, %239, %cst_85 [1] : vector<8x8xf32> to vector<8xf32>
    %241 = vector.shape_cast %240 : vector<8xf32> to vector<8x1xf32>
    %242 = vector.broadcast %241 : vector<8x1xf32> to vector<8x8xf32>
    %243 = arith.subf %239, %242 : vector<8x8xf32>
    %244 = math.exp %243 : vector<8x8xf32>
    %cst_86 = arith.constant dense<0.000000e+00> : vector<8xf32>
    %245 = vector.multi_reduction <add>, %244, %cst_86 [1] : vector<8x8xf32> to vector<8xf32>
    %246 = vector.shape_cast %245 : vector<8xf32> to vector<8x1xf32>
    %247 = tpu.reciprocal %246 {approx = true} : vector<8x1xf32> -> vector<8x1xf32>
    %248 = vector.broadcast %247 : vector<8x1xf32> to vector<8x8xf32>
    %249 = arith.mulf %244, %248 : vector<8x8xf32>
    %250 = vector.extract_strided_slice %180 {offsets = [0, 16], sizes = [8, 8], strides = [1, 1]} : vector<8x32xf32> to vector<8x8xf32>
    %251 = arith.truncf %249 : vector<8x8xf32> to vector<8x8xbf16>
    %252 = arith.truncf %250 : vector<8x8xf32> to vector<8x8xbf16>
    %cst_87 = arith.constant dense<0.000000e+00> : vector<8x8xf32>
    %253 = tpu.matmul %251, %252, %cst_87 {dimension_numbers = #tpu.dot_dimension_numbers<[1], [0], [0], [1], [0, 0, 1, 1], [], []>} : vector<8x8xbf16>, vector<8x8xbf16>, vector<8x8xf32> -> vector<8x8xf32>
    %254 = vector.extract_strided_slice %181 {offsets = [16, 0], sizes = [8, 32], strides = [1, 1]} : vector<32x32xbf16> to vector<8x32xbf16>
    %255 = arith.truncf %253 : vector<8x8xf32> to vector<8x8xbf16>
    %cst_88 = arith.constant dense<0.000000e+00> : vector<8x32xf32>
    %256 = tpu.matmul %255, %254, %cst_88 {dimension_numbers = #tpu.dot_dimension_numbers<[1], [0], [0], [1], [0, 0, 1, 1], [], []>} : vector<8x8xbf16>, vector<8x32xbf16>, vector<8x32xf32> -> vector<8x32xf32>
    %257 = arith.addf %232, %256 : vector<8x32xf32>
    %258 = vector.extract_strided_slice %168 {offsets = [0, 24], sizes = [8, 8], strides = [1, 1]} : vector<8x32xf32> to vector<8x8xf32>
    %259 = arith.truncf %258 : vector<8x8xf32> to vector<8x8xbf16>
    %260 = vector.extract_strided_slice %174 {offsets = [0, 24], sizes = [8, 8], strides = [1, 1]} : vector<8x32xf32> to vector<8x8xf32>
    %261 = arith.truncf %260 : vector<8x8xf32> to vector<8x8xbf16>
    %cst_89 = arith.constant dense<0.000000e+00> : vector<8x8xf32>
    %262 = tpu.matmul %259, %261, %cst_89 {dimension_numbers = #tpu.dot_dimension_numbers<[1], [1], [0], [0], [0, 0, 1, 0], [], []>} : vector<8x8xbf16>, vector<8x8xbf16>, vector<8x8xf32> -> vector<8x8xf32>
    %cst_90 = arith.constant 0.353553385 : f32
    %263 = vector.broadcast %cst_90 : f32 to vector<8x8xf32>
    %264 = arith.mulf %262, %263 : vector<8x8xf32>
    %cst_91 = arith.constant dense<0xFF800000> : vector<8xf32>
    %265 = vector.multi_reduction <maximumf>, %264, %cst_91 [1] : vector<8x8xf32> to vector<8xf32>
    %266 = vector.shape_cast %265 : vector<8xf32> to vector<8x1xf32>
    %267 = vector.broadcast %266 : vector<8x1xf32> to vector<8x8xf32>
    %268 = arith.subf %264, %267 : vector<8x8xf32>
    %269 = math.exp %268 : vector<8x8xf32>
    %cst_92 = arith.constant dense<0.000000e+00> : vector<8xf32>
    %270 = vector.multi_reduction <add>, %269, %cst_92 [1] : vector<8x8xf32> to vector<8xf32>
    %271 = vector.shape_cast %270 : vector<8xf32> to vector<8x1xf32>
    %272 = tpu.reciprocal %271 {approx = true} : vector<8x1xf32> -> vector<8x1xf32>
    %273 = vector.broadcast %272 : vector<8x1xf32> to vector<8x8xf32>
    %274 = arith.mulf %269, %273 : vector<8x8xf32>
    %275 = vector.extract_strided_slice %180 {offsets = [0, 24], sizes = [8, 8], strides = [1, 1]} : vector<8x32xf32> to vector<8x8xf32>
    %276 = arith.truncf %274 : vector<8x8xf32> to vector<8x8xbf16>
    %277 = arith.truncf %275 : vector<8x8xf32> to vector<8x8xbf16>
    %cst_93 = arith.constant dense<0.000000e+00> : vector<8x8xf32>
    %278 = tpu.matmul %276, %277, %cst_93 {dimension_numbers = #tpu.dot_dimension_numbers<[1], [0], [0], [1], [0, 0, 1, 1], [], []>} : vector<8x8xbf16>, vector<8x8xbf16>, vector<8x8xf32> -> vector<8x8xf32>
    %279 = vector.extract_strided_slice %181 {offsets = [24, 0], sizes = [8, 32], strides = [1, 1]} : vector<32x32xbf16> to vector<8x32xbf16>
    %280 = arith.truncf %278 : vector<8x8xf32> to vector<8x8xbf16>
    %cst_94 = arith.constant dense<0.000000e+00> : vector<8x32xf32>
    %281 = tpu.matmul %280, %279, %cst_94 {dimension_numbers = #tpu.dot_dimension_numbers<[1], [0], [0], [1], [0, 0, 1, 1], [], []>} : vector<8x8xbf16>, vector<8x32xbf16>, vector<8x32xf32> -> vector<8x32xf32>
    %282 = arith.addf %257, %281 : vector<8x32xf32>
    %c7 = arith.constant 7 : index
    %c0_95 = arith.constant 0 : index
    %283 = vector.load %arg14[%c7, %c0_95] : memref<16x32xf32, #tpu.memory_space<vmem>>, vector<1x32xf32>
    %284 = vector.broadcast %283 : vector<1x32xf32> to vector<8x32xf32>
    %285 = arith.addf %282, %284 : vector<8x32xf32>
    %286 = arith.addf %162, %285 : vector<8x32xf32>
    %cst_96 = arith.constant dense<0.000000e+00> : vector<8xf32>
    %287 = vector.multi_reduction <add>, %286, %cst_96 [1] : vector<8x32xf32> to vector<8xf32>
    %288 = vector.shape_cast %287 : vector<8xf32> to vector<8x1xf32>
    %cst_97 = arith.constant 3.200000e+01 : f32
    %289 = vector.broadcast %cst_97 : f32 to vector<8x1xf32>
    %290 = arith.divf %288, %289 : vector<8x1xf32>
    %291 = vector.broadcast %290 : vector<8x1xf32> to vector<8x32xf32>
    %292 = arith.subf %286, %291 : vector<8x32xf32>
    %293 = arith.mulf %292, %292 : vector<8x32xf32>
    %cst_98 = arith.constant dense<0.000000e+00> : vector<8xf32>
    %294 = vector.multi_reduction <add>, %293, %cst_98 [1] : vector<8x32xf32> to vector<8xf32>
    %295 = vector.shape_cast %294 : vector<8xf32> to vector<8x1xf32>
    %cst_99 = arith.constant 3.200000e+01 : f32
    %296 = vector.broadcast %cst_99 : f32 to vector<8x1xf32>
    %297 = arith.divf %295, %296 : vector<8x1xf32>
    %298 = vector.broadcast %290 : vector<8x1xf32> to vector<8x32xf32>
    %299 = arith.subf %286, %298 : vector<8x32xf32>
    %cst_100 = arith.constant 9.99999974E-6 : f32
    %300 = vector.broadcast %cst_100 : f32 to vector<8x1xf32>
    %301 = arith.addf %297, %300 : vector<8x1xf32>
    %302 = math.rsqrt %301 : vector<8x1xf32>
    %303 = vector.broadcast %302 : vector<8x1xf32> to vector<8x32xf32>
    %304 = arith.mulf %299, %303 : vector<8x32xf32>
    %c11 = arith.constant 11 : index
    %c0_101 = arith.constant 0 : index
    %305 = vector.load %arg14[%c11, %c0_101] : memref<16x32xf32, #tpu.memory_space<vmem>>, vector<1x32xf32>
    %306 = vector.broadcast %305 : vector<1x32xf32> to vector<8x32xf32>
    %307 = arith.mulf %304, %306 : vector<8x32xf32>
    %c12 = arith.constant 12 : index
    %c0_102 = arith.constant 0 : index
    %308 = vector.load %arg14[%c12, %c0_102] : memref<16x32xf32, #tpu.memory_space<vmem>>, vector<1x32xf32>
    %309 = vector.broadcast %308 : vector<1x32xf32> to vector<8x32xf32>
    %310 = arith.addf %307, %309 : vector<8x32xf32>
    %c0_103 = arith.constant 0 : index
    %c0_104 = arith.constant 0 : index
    %311 = vector.load %arg11[%c0_103, %c0_104] : memref<32x64xbf16, #tpu.memory_space<vmem>>, vector<32x64xbf16>
    %312 = arith.truncf %310 : vector<8x32xf32> to vector<8x32xbf16>
    %cst_105 = arith.constant dense<0.000000e+00> : vector<8x64xf32>
    %313 = tpu.matmul %312, %311, %cst_105 {dimension_numbers = #tpu.dot_dimension_numbers<[1], [0], [0], [1], [0, 0, 1, 1], [], []>} : vector<8x32xbf16>, vector<32x64xbf16>, vector<8x64xf32> -> vector<8x64xf32>
    %c0_106 = arith.constant 0 : index
    %c0_107 = arith.constant 0 : index
    %314 = vector.load %arg12[%c0_106, %c0_107] : memref<1x64xf32, #tpu.memory_space<vmem>>, vector<1x64xf32>
    %315 = vector.broadcast %314 : vector<1x64xf32> to vector<8x64xf32>
    %316 = arith.addf %313, %315 : vector<8x64xf32>
    %cst_108 = arith.constant 0.000000e+00 : f32
    %317 = vector.broadcast %cst_108 : f32 to vector<8x64xf32>
    %318 = arith.maximumf %316, %317 : vector<8x64xf32>
    %c0_109 = arith.constant 0 : index
    %c0_110 = arith.constant 0 : index
    %319 = vector.load %arg13[%c0_109, %c0_110] : memref<64x32xbf16, #tpu.memory_space<vmem>>, vector<64x32xbf16>
    %320 = arith.truncf %318 : vector<8x64xf32> to vector<8x64xbf16>
    %cst_111 = arith.constant dense<0.000000e+00> : vector<8x32xf32>
    %321 = tpu.matmul %320, %319, %cst_111 {dimension_numbers = #tpu.dot_dimension_numbers<[1], [0], [0], [1], [0, 0, 1, 1], [], []>} : vector<8x64xbf16>, vector<64x32xbf16>, vector<8x32xf32> -> vector<8x32xf32>
    %c8 = arith.constant 8 : index
    %c0_112 = arith.constant 0 : index
    %322 = vector.load %arg14[%c8, %c0_112] : memref<16x32xf32, #tpu.memory_space<vmem>>, vector<1x32xf32>
    %323 = vector.broadcast %322 : vector<1x32xf32> to vector<8x32xf32>
    %324 = arith.addf %321, %323 : vector<8x32xf32>
    %325 = arith.addf %310, %324 : vector<8x32xf32>
    %cst_113 = arith.constant dense<0.000000e+00> : vector<8xf32>
    %326 = vector.multi_reduction <add>, %325, %cst_113 [1] : vector<8x32xf32> to vector<8xf32>
    %327 = vector.shape_cast %326 : vector<8xf32> to vector<8x1xf32>
    %cst_114 = arith.constant 3.200000e+01 : f32
    %328 = vector.broadcast %cst_114 : f32 to vector<8x1xf32>
    %329 = arith.divf %327, %328 : vector<8x1xf32>
    %330 = vector.broadcast %329 : vector<8x1xf32> to vector<8x32xf32>
    %331 = arith.subf %325, %330 : vector<8x32xf32>
    %332 = arith.mulf %331, %331 : vector<8x32xf32>
    %cst_115 = arith.constant dense<0.000000e+00> : vector<8xf32>
    %333 = vector.multi_reduction <add>, %332, %cst_115 [1] : vector<8x32xf32> to vector<8xf32>
    %334 = vector.shape_cast %333 : vector<8xf32> to vector<8x1xf32>
    %cst_116 = arith.constant 3.200000e+01 : f32
    %335 = vector.broadcast %cst_116 : f32 to vector<8x1xf32>
    %336 = arith.divf %334, %335 : vector<8x1xf32>
    %337 = vector.broadcast %329 : vector<8x1xf32> to vector<8x32xf32>
    %338 = arith.subf %325, %337 : vector<8x32xf32>
    %cst_117 = arith.constant 9.99999974E-6 : f32
    %339 = vector.broadcast %cst_117 : f32 to vector<8x1xf32>
    %340 = arith.addf %336, %339 : vector<8x1xf32>
    %341 = math.rsqrt %340 : vector<8x1xf32>
    %342 = vector.broadcast %341 : vector<8x1xf32> to vector<8x32xf32>
    %343 = arith.mulf %338, %342 : vector<8x32xf32>
    %c13 = arith.constant 13 : index
    %c0_118 = arith.constant 0 : index
    %344 = vector.load %arg14[%c13, %c0_118] : memref<16x32xf32, #tpu.memory_space<vmem>>, vector<1x32xf32>
    %345 = vector.broadcast %344 : vector<1x32xf32> to vector<8x32xf32>
    %346 = arith.mulf %343, %345 : vector<8x32xf32>
    %c14 = arith.constant 14 : index
    %c0_119 = arith.constant 0 : index
    %347 = vector.load %arg14[%c14, %c0_119] : memref<16x32xf32, #tpu.memory_space<vmem>>, vector<1x32xf32>
    %348 = vector.broadcast %347 : vector<1x32xf32> to vector<8x32xf32>
    %349 = arith.addf %346, %348 : vector<8x32xf32>
    %c0_120 = arith.constant 0 : index
    %c0_121 = arith.constant 0 : index
    %c0_122 = arith.constant 0 : index
    %350 = vector.load %arg15[%c0_120, %c0_121, %c0_122] : memref<1x8x32xf32, #tpu.memory_space<vmem>>, vector<1x8x32xf32>
    %351 = vector.shape_cast %350 : vector<1x8x32xf32> to vector<8x32xf32>
    %352 = vector.shape_cast %349 : vector<8x32xf32> to vector<1x8x32xf32>
    tpu.vector_store %arg15[%c0_120, %c0_121, %c0_122], %352 {strides = array<i32>} : memref<1x8x32xf32, #tpu.memory_space<vmem>>, vector<1x8x32xf32>,
    return
  }
  func.func @transform_0(%arg0: i32) -> (i32, i32, i32) {
    %c0_i32 = arith.constant 0 : i32
    %c0_i32_0 = arith.constant 0 : i32
    %c0_i32_1 = arith.constant 0 : i32
    return %arg0, %c0_i32, %c0_i32_0 : i32, i32, i32
  }
  func.func @transform_1(%arg0: i32) -> (i32, i32, i32) {
    %c0_i32 = arith.constant 0 : i32
    %c0_i32_0 = arith.constant 0 : i32
    %c0_i32_1 = arith.constant 0 : i32
    return %arg0, %c0_i32, %c0_i32_0 : i32, i32, i32
  }
  func.func @transform_2(%arg0: i32) -> (i32, i32) {
    %c0_i32 = arith.constant 0 : i32
    %c0_i32_0 = arith.constant 0 : i32
    %c0_i32_1 = arith.constant 0 : i32
    return %c0_i32, %c0_i32_0 : i32, i32
  }
  func.func @transform_3(%arg0: i32) -> (i32, i32) {
    %c0_i32 = arith.constant 0 : i32
    %c0_i32_0 = arith.constant 0 : i32
    %c0_i32_1 = arith.constant 0 : i32
    return %c0_i32, %c0_i32_0 : i32, i32
  }
  func.func @transform_4(%arg0: i32) -> (i32, i32) {
    %c0_i32 = arith.constant 0 : i32
    %c0_i32_0 = arith.constant 0 : i32
    %c0_i32_1 = arith.constant 0 : i32
    return %c0_i32, %c0_i32_0 : i32, i32
  }
  func.func @transform_5(%arg0: i32) -> (i32, i32) {
    %c0_i32 = arith.constant 0 : i32
    %c0_i32_0 = arith.constant 0 : i32
    %c0_i32_1 = arith.constant 0 : i32
    return %c0_i32, %c0_i32_0 : i32, i32
  }
  func.func @transform_6(%arg0: i32) -> (i32, i32) {
    %c0_i32 = arith.constant 0 : i32
    %c0_i32_0 = arith.constant 0 : i32
    %c0_i32_1 = arith.constant 0 : i32
    return %c0_i32, %c0_i32_0 : i32, i32
  }
  func.func @transform_7(%arg0: i32) -> (i32, i32) {
    %c0_i32 = arith.constant 0 : i32
    %c0_i32_0 = arith.constant 0 : i32
    %c0_i32_1 = arith.constant 0 : i32
    return %c0_i32, %c0_i32_0 : i32, i32
  }
  func.func @transform_8(%arg0: i32) -> (i32, i32) {
    %c0_i32 = arith.constant 0 : i32
    %c0_i32_0 = arith.constant 0 : i32
    %c0_i32_1 = arith.constant 0 : i32
    return %c0_i32, %c0_i32_0 : i32, i32
  }
  func.func @transform_9(%arg0: i32) -> (i32, i32) {
    %c0_i32 = arith.constant 0 : i32
    %c0_i32_0 = arith.constant 0 : i32
    %c0_i32_1 = arith.constant 0 : i32
    return %c0_i32, %c0_i32_0 : i32, i32
  }
  func.func @transform_10(%arg0: i32) -> (i32, i32) {
    %c0_i32 = arith.constant 0 : i32
    %c0_i32_0 = arith.constant 0 : i32
    %c0_i32_1 = arith.constant 0 : i32
    return %c0_i32, %c0_i32_0 : i32, i32
  }
  func.func @transform_11(%arg0: i32) -> (i32, i32) {
    %c0_i32 = arith.constant 0 : i32
    %c0_i32_0 = arith.constant 0 : i32
    %c0_i32_1 = arith.constant 0 : i32
    return %c0_i32, %c0_i32_0 : i32, i32
  }
  func.func @transform_12(%arg0: i32) -> (i32, i32) {
    %c0_i32 = arith.constant 0 : i32
    %c0_i32_0 = arith.constant 0 : i32
    %c0_i32_1 = arith.constant 0 : i32
    return %c0_i32, %c0_i32_0 : i32, i32
  }
  func.func @transform_13(%arg0: i32) -> (i32, i32) {
    %c0_i32 = arith.constant 0 : i32
    %c0_i32_0 = arith.constant 0 : i32
    %c0_i32_1 = arith.constant 0 : i32
    return %c0_i32, %c0_i32_0 : i32, i32
  }
  func.func @transform_14(%arg0: i32) -> (i32, i32, i32) {
    %c0_i32 = arith.constant 0 : i32
    %c0_i32_0 = arith.constant 0 : i32
    %c0_i32_1 = arith.constant 0 : i32
    return %arg0, %c0_i32, %c0_i32_0 : i32, i32, i32
  }
}

</mosaic_0001>

<bundles_post_ra>
// kernel: tpu_custom_call.1
= control target key start
LH: loop header
LB: loop body
LE: loop exit
PB: predicated region body
PF: predicated region fallthrough
CT: control target
= control target key end

     0   :  { %s2994_s0 = inlined_call_operand.vmem [shape: f32[2,8,32], index: 0, kind: input, shape index: {}]   ;;  %s2995_s1 = inlined_call_operand.vmem [shape: f32[2,8,32], index: 1, kind: input, shape index: {}]   ;;  %s2996_s2 = inlined_call_operand.vmem [shape: bf16[32,32], index: 2, kind: input, shape index: {}]   ;;  %s2997_s3 = inlined_call_operand.hbm [shape: bf16[32,32], index: 3, kind: input, shape index: {}]   ;;  %s2998_s4 = inlined_call_operand.hbm [shape: bf16[32,32], index: 4, kind: input, shape index: {}]   ;;  %s2999_s5 = inlined_call_operand.hbm [shape: bf16[32,32], index: 5, kind: input, shape index: {}]   ;;  %s3000_s6 = inlined_call_operand.hbm [shape: bf16[32,32], index: 6, kind: input, shape index: {}]   ;;  %s3001_s7 = inlined_call_operand.hbm [shape: bf16[32,32], index: 7, kind: input, shape index: {}]   ;;  %s3002_s8 = inlined_call_operand.hbm [shape: bf16[32,32], index: 8, kind: input, shape index: {}]   ;;  %s3003_s9 = inlined_call_operand.hbm [shape: bf16[32,32], index: 9, kind: input, shape index: {}]   ;;  %s3004_s10 = inlined_call_operand.hbm [shape: bf16[32,64], index: 10, kind: input, shape index: {}]   ;;  %s3005_s11 = inlined_call_operand.vmem [shape: f32[1,64], index: 11, kind: input, shape index: {}]   ;;  %s3006_s12 = inlined_call_operand.vmem [shape: bf16[64,32], index: 12, kind: input, shape index: {}]   ;;  %s3007_s13 = inlined_call_operand.hbm [shape: f32[16,32], index: 13, kind: input, shape index: {}]   ;;  %s3008_s14 = inlined_call_operand.hbm [shape: f32[2,8,32], index: 14, kind: output, shape index: {}]  }
   0x1   :  { %3017 = sst [smem:[#allocation31_spill]] %s2998_s4 }
   0x2   :  { %3018 = sst [smem:[#allocation32_spill]] %s3000_s6 }
   0x3   :  { %19 = vsyncpa [#allocation3], 0 }
   0x4   :  { %20 = vsyncpa [#allocation6], 0 }
   0x5   :  { %21 = vsyncpa [#allocation9], 0 }
   0x6   :  { %22 = vsyncpa [#allocation12], 0 }
   0x7   :  { %23 = vsyncpa [#allocation15], 0 }
   0x8   :  { %24 = vsyncpa [#allocation4], 0 }
   0x9   :  { %26 = vsyncpa [#allocation4 + $0x1], 0  ;;  %s2627_s29 = smov 0   ;;  %s2629_s30 = smov 0  }
   0xa   :  { %s2631_s15 = smov 0   ;;  %s2633_s16 = smov 0  }
   0xb LB: > { %3019 = sst [smem:[#allocation24_spill]] %s2521_s29  ;;  %s2648_s17 = sadd.s32 4294967295, %s2533_s16   ;;  %s2533_s16 = sphi %s2633_s16, %s3036_s16   ;;  %s2529_s15 = sphi %s2631_s15, %s3038_s15   ;;  %s2525_s30 = sphi %s2629_s30, %s3040_s30   ;;  %s2521_s29 = sphi %s2627_s29, %s3039_s29  }
   0xc   : > { %3020 = sst [smem:[#allocation25_spill]] %s2529_s15  ;;  %s1836_s18 = sadd.s32 4294967294, %s2533_s16  }
   0xd   : > { %3021 = sst [smem:[#allocation26_spill]] %s2533_s16  ;;  %s2652_s19 = sadd.s32 1, %s2533_s16  }
   0xe   : > { %3022 = sst [smem:[#allocation27_spill]] %s2652_s19  ;;  %s343_s20 = sadd.s32 1, %s2529_s15 }
   0xf   : > { %s340_s21 = ssub.s32 %s2533_s16, %s2652_s19  ;;  %p353_p0 = scmp.ne.s32.totalorder %s2529_s15, %s2525_s30 }
  0x10   : > { %p341_p1 = scmp.eq.s32.totalorder %s340_s21, 0  ;;  %p354_p2 = scmp.eq.s32.totalorder %s2648_s17, 1 }
  0x11   : > { %p359_p3 = scmp.ne.s32.totalorder %s2525_s30, %s2521_s29  ;;  %p360_p4 = scmp.eq.s32.totalorder %s1836_s18, 1 }
  0x12   : > { %s2663_s22 = scalar_select %p341_p1, %s2529_s15, %s343_s20  }
  0x13   : > { %p2665_p5 = por %p354_p2, %p353_p0  ;;  %p2669_p6 = por %p360_p4, %p359_p3 }
  0x14   : > { %3023 = sst [smem:[#allocation28_spill]] %s2663_s22  ;;  %p1837_p7 = scmp.ge.s32.totalorder %s2533_s16, 1 }
  0x15   : > { %s3024_s23 = scalar_select %p2665_p5, 1, 0 }
  0x16   : > { %s3026_s24 = scalar_select %p2669_p6, 1, 0 }
  0x17   : > { %3025 = sst [smem:[#allocation29_spill]] %s3024_s23  ;;  %p367_p8 = scmp.lt.s32.totalorder %s2533_s16, 3 }
  0x18   : > { %3027 = sst [smem:[#allocation30_spill]] %s3026_s24  ;;  %p2057_p9 = scmp.eq.s32.totalorder %s2648_s17, 0 }
  0x19   : > { %p2676_p10 = pnand %p1837_p7, %p367_p8  ;;  %s3029_s4 = sld [smem:[#allocation31_spill]] }
  0x1a   : > { %s3030_s6 = sld [smem:[#allocation32_spill]]  ;;  %s2535_s15 = smov [#allocation5]  }
  0x1b   : > { %p2025_p11 = pneg %p2676_p10  ;;  %s397_s19 = sshll.u32 %s2535_s15, 4  ;;  %s398_s19 = int_to_ptr.vmem [resolvable:$true] %s397_s19 }
  0x1c   : > { %s2536_s26 = smov 64   ;;  %s2537_s27 = smov 4  }
  0x1d   : > { %p2690_p12 = pnand %p2057_p9, %p2025_p11  ;;  %s2538_s18 = smov [#allocation8]  }
  0x1e   : > { %s425_s20 = sshll.u32 %s2538_s18, 4  ;;  %s451_s24 = sshll.u32 %s3002_s8, 4  ;;  %s426_s20 = int_to_ptr.vmem [resolvable:$true] %s425_s20  ;;  %s452_s24 = int_to_ptr.hbm [resolvable:$true] %s451_s24 }
  0x1f   : > { %s395_s28 = sshll.u32 %s3029_s4, 4  ;;  %s479_s16 = sshll.u32 %s3004_s10, 4  ;;  %s396_s28 = int_to_ptr.hbm [resolvable:$true] %s395_s28  ;;  %s480_s16 = int_to_ptr.hbm [resolvable:$true] %s479_s16 }
  0x20   : > { %s423_s21 = sshll.u32 %s3030_s6, 4  ;;  %s2539_s23 = smov [#allocation11]   ;;  %s424_s21 = int_to_ptr.hbm [resolvable:$true] %s423_s21 }
  0x21   : > { %2031 = dma.hbm_to_vmem [thread:$0]  (!%p2690_p12), %s396_s28, 256, %s398_s19, [#allocation6], %s2536_s26, %s2536_s26, %s2537_s27  }
  0x22   : > { %2037 = dma.hbm_to_vmem [thread:$0]  (!%p2690_p12), %s424_s21, 256, %s426_s20, [#allocation9], %s2536_s26, %s2536_s26, %s2537_s27  }
  0x23   : > { %s453_s19 = sshll.u32 %s2539_s23, 4  ;;  %s2540_s4 = smov [#allocation14]   ;;  %s454_s19 = int_to_ptr.vmem [resolvable:$true] %s453_s19 }
  0x24   : > { %2043 = dma.hbm_to_vmem [thread:$0]  (!%p2690_p12), %s452_s24, 256, %s454_s19, [#allocation12], %s2536_s26, %s2536_s26, %s2537_s27  }
  0x25   : > { %s481_s6 = sshll.u32 %s2540_s4, 4  ;;  %s381_s21 = sshll.u32 %s2997_s3, 4  ;;  %s482_s6 = int_to_ptr.vmem [resolvable:$true] %s481_s6  ;;  %s382_s21 = int_to_ptr.hbm [resolvable:$true] %s381_s21 }
  0x26   : > { %2049 = dma.hbm_to_vmem [thread:$0]  (!%p2690_p12), %s480_s16, 256, %s482_s6, [#allocation15], %s2536_s26, %s2536_s26, %s2537_s27  }
  0x27   : > { %s409_s20 = sshll.u32 %s2999_s5, 4  ;;  %s2541_s15 = smov [#allocation2]   ;;  %s410_s20 = int_to_ptr.hbm [resolvable:$true] %s409_s20 }
  0x28   : > { %s383_s24 = sshll.u32 %s2541_s15, 4  ;;  %s2542_s19 = smov [#allocation7]   ;;  %s384_s24 = int_to_ptr.vmem [resolvable:$true] %s383_s24 }
  0x29   : > { %2028 = dma.hbm_to_vmem [thread:$0]  (!%p2690_p12), %s382_s21, 256, %s384_s24, [#allocation3], %s2536_s26, %s2536_s26, %s2537_s27  }
  0x2a   : > { %s411_s4 = sshll.u32 %s2542_s19, 4  ;;  %s437_s16 = sshll.u32 %s3001_s7, 4  ;;  %s412_s4 = int_to_ptr.vmem [resolvable:$true] %s411_s4  ;;  %s438_s16 = int_to_ptr.hbm [resolvable:$true] %s437_s16 }
  0x2b   : > { %2034 = dma.hbm_to_vmem [thread:$0]  (!%p2690_p12), %s410_s20, 256, %s412_s4, [#allocation6], %s2536_s26, %s2536_s26, %s2537_s27  }
  0x2c   : > { %s465_s23 = sshll.u32 %s3003_s9, 4  ;;  %s2543_s15 = smov [#allocation10]   ;;  %s466_s23 = int_to_ptr.hbm [resolvable:$true] %s465_s23 }
  0x2d   : > { %s439_s21 = sshll.u32 %s2543_s15, 4  ;;  %s2544_s24 = smov [#allocation13]   ;;  %s440_s21 = int_to_ptr.vmem [resolvable:$true] %s439_s21 }
  0x2e   : > { %2040 = dma.hbm_to_vmem [thread:$0]  (!%p2690_p12), %s438_s16, 256, %s440_s21, [#allocation9], %s2536_s26, %s2536_s26, %s2537_s27  }
  0x2f   : > { %s467_s19 = sshll.u32 %s2544_s24, 4  ;;  %s499_s20 = sshll.u32 %s3007_s13, 4  ;;  %s468_s19 = int_to_ptr.vmem [resolvable:$true] %s467_s19  ;;  %s500_s20 = int_to_ptr.hbm [resolvable:$true] %s499_s20 }
  0x30   : > { %2046 = dma.hbm_to_vmem [thread:$0]  (!%p2690_p12), %s466_s23, 256, %s468_s19, [#allocation12], %s2536_s26, %s2536_s26, %s2537_s27  }
  0x31   : > { %s2545_s4 = smov [#allocation16]   ;;  %s2546_s29 = smov 128  }
  0x32   : > { %s501_s6 = sshll.u32 %s2545_s4, 4  ;;  %s2547_s15 = smov 8   ;;  %s502_s6 = int_to_ptr.vmem [resolvable:$true] %s501_s6 }
  0x33   : > { %2052 = dma.hbm_to_vmem [thread:$0]  (!%p2690_p12), %s500_s20, 256, %s502_s6, [#allocation15], %s2546_s29, %s2546_s29, %s2547_s15  }
  0x34   : > { %531 = sbr.rel (%p2676_p10) target bundleno = 3836 (0xefc), region = 76 }
  0x39   : > { %2496 = dma.done.wait (%p2057_p9), [#allocation3], 256  }
  0x3a   : > { %2498 = vsyncadd (%p2057_p9), [#allocation3], 4294967040 }
  0x3b   : > { %2500 = dma.done.wait (%p2057_p9), [#allocation6], 512  }
  0x3c   : > { %2502 = vsyncadd (%p2057_p9), [#allocation6], 4294966784 }
  0x3d   : > { %2504 = dma.done.wait (%p2057_p9), [#allocation9], 512  }
  0x3e   : > { %2506 = vsyncadd (%p2057_p9), [#allocation9], 4294966784 }
  0x3f   : > { %2508 = dma.done.wait (%p2057_p9), [#allocation12], 512  }
  0x40   : > { %2510 = vsyncadd (%p2057_p9), [#allocation12], 4294966784 }
  0x41   : > { %2512 = dma.done.wait (%p2057_p9), [#allocation15], 512  }
  0x42   : > { %2514 = vsyncadd (%p2057_p9), [#allocation15], 4294966784  ;;  %p621_p13 = scmp.lt.s32.totalorder %s2648_s17, 1  ;;  %v1970_v0 = vld [vmem:[%s2996_s2 + $0x8] sm:$0xff]  ;;  %v1969_v2 = vld [vmem:[%s2996_s2] sm:$0xff]  ;;  %vm651_vm0 = vcmask 261120   ;;  %v730_v24 = vlaneseq }
  0x43   : > { %v1972_v1 = vld [vmem:[#allocation2 + $0x8] sm:$0xff]  ;;  %v1971_v3 = vld [vmem:[#allocation2] sm:$0xff]  ;;  %661 = vmatpush.bf16.msra.mxu0 %v1970_v0  ;;  %vm741_vm1 = vcmask 64512   ;;  %s2548_s28 = smov 112   ;;  %s2549_s18 = smov 120   ;;  %v1974_v21 = vld [vmem:[#allocation5 + $0x8] sm:$0xff] }
  0x44   : > { %s2781_s22 = scalar_select %p621_p13, %s2648_s17, 1  ;;  %692 = vmatpush.bf16.msra.mxu1 %v1972_v1  ;;  %v2126_v6 = vld [vmem:[#allocation16 + $0x1] ss:$0 sm:$0xff]  ;;  %v2125_v9 = vld [vmem:[#allocation16] ss:$0 sm:$0xff]  ;;  %723 = vmatpush.bf16.msra.mxu2 %v1974_v21  ;;  %v1973_v22 = vld [vmem:[#allocation5] sm:$0xff] }
  0x45   : > { %s2550_s20 = smov 104   ;;  %v2812_v25 = vshrl.u32 %v730_v24, 7  ;;  %v2814_v26 = vand.u32 127, %v730_v24  ;;  %v2127_v49 = vld [vmem:[#allocation16 + $0x2] ss:$0 sm:$0xff]  ;;  %vm779_vm3 = vcmask 1043456  }
  0x46   : > { %s1859_s25 = sshll.u32 %s2781_s22, 3  ;;  %v735_v57 = vld [vmem:[#allocation7] sm:$0xf]  ;;  %vm1614_vm11 = vcmask 523264   ;;  %s2471_s24 = scalar_lea.hbm %s3008_s14, 16 }
  0x47   : > { %s624_s16 = scalar_lea.vmem %s2994_s0, %s1859_s25  ;;  %662 = vmatpush.bf16.msra.mxu0 %v1969_v2  ;;  %vm734_vm2 = vcmp.ge.s32.totalorder %v2812_v25, %v2814_v26  ;;  %v882_v59 = vsel %vm779_vm3, %v735_v57, 0  ;;  %s628_s29 = scalar_lea.vmem %s2995_s1, %s1859_s25 }
  0x48   : > { %v2795_v4 = vld [vmem:[%s624_s16] sm:$0xff]  ;;  %693 = vmatpush.bf16.msra.mxu1 %v1971_v3  ;;  %724 = vmatpush.bf16.msra.mxu2 %v1973_v22 }
  0x49   : > { %v636_v5 = vpack.c.bf16 %v2795_v4, %v2795_v4 }
  0x4b   : > { %1869 = vmatmul.msk.bf16.vlgmr.msra.gmra.mxu0 %vm651_vm0, %v636_v5  ;;  %1878 = vmatmul.msk.bf16.vlgmr.msra.gmra.mxu1 %vm651_vm0, %v636_v5 }
  0x4c   : > { %1887 = vmatmul.msk.bf16.vlgmr.msra.gmra.mxu2 %vm651_vm0, %v636_v5 }
  0xc8   : > { %v664_v7 = vpop.f32.mrf.mxu0  ;;  %v695_v8 = vpop.f32.mrf.mxu1 }
  0xc9   : > { %v696_v10 = vadd.f32 %v2126_v6, %v695_v8  ;;  %v665_v12 = vadd.f32 %v2125_v9, %v664_v7 }
  0xcb   : > { %v740_v11 = vpack.c.bf16 %v696_v10, %v696_v10  ;;  %v739_v16 = vpack.c.bf16 %v665_v12, %v665_v12 }
  0xcd   : > { %899 = vrot.lane.b32.xlu2 %v740_v11, %s2548_s28  ;;  %801 = vrot.lane.b32.xlu1 %v740_v11, %s2549_s18  ;;  %v746_v13 = vsel %vm741_vm1, %v740_v11, 0 }
  0xce   : > { %755 = vmatpush.bf16.xpose.msra.mxu3 %v746_v13 }
  0xcf   : > { %v726_v48 = vpop.f32.mrf.mxu2 }
  0xd0   : > { %v666_v14 = vpop.f32.mrf.mxu0  ;;  %v697_v15 = vpop.f32.mrf.mxu1  ;;  %v727_v50 = vadd.f32 %v2127_v49, %v726_v48 }
  0xd2   : > { %v2833_v52 = vpack.c.bf16 %v727_v50, %v727_v50 }
  0xd4   : > { %v781_v53 = vsel %vm779_vm3, %v2833_v52, 0 }
  0xd5   : > { %897 = vrot.lane.b32.xlu2 %v739_v16, %s2548_s28  ;;  %798 = vrot.lane.b32.xlu1 %v739_v16, %s2549_s18 }
  0xd6   : > { %1888 = vmatmul.msk.bf16.vlgmr.msra.gmra.mxu3 %vm741_vm1, %v739_v16  ;;  %790 = vmatpush.bf16.msrb.mxu0 %v781_v53 }
  0xd7   : > { %v728_v51 = vpop.f32.mrf.mxu2 }
  0xda   : > { %891 = vmatpush.bf16.msra.mxu0 %v882_v59 }
  0xdd   : > { %976 = vrot.lane.b32.xlu1 %v739_v16, %s2550_s20 }
 0x127   : > { %v900_v17 = vpop.permute.xlu2 %899 }
 0x128   : > { %v905_v20 = vsel %vm741_vm1, %v900_v17, 0 }
 0x12f   : > { %v898_v27 = vpop.permute.xlu2 %897 }
 0x13f   : > { %v802_v18 = vpop.permute.xlu1 %801 }
 0x140   : > { %v807_v19 = vsel %vm741_vm1, %v802_v18, 0 }
 0x141   : > { %816 = vmatpush.bf16.xpose.msrb.mxu1 %v807_v19 }
 0x147   : > { %v799_v23 = vpop.permute.xlu1 %798 }
 0x148   : > { %1890 = vmatmul.msk.bf16.vlgmr.msrb.gmra.mxu1 %vm741_vm1, %v799_v23 }
 0x149   : > { %914 = vmatpush.bf16.xpose.msra.mxu1 %v905_v20 }
 0x14f   : > { %v977_v58 = vpop.permute.xlu1 %976 }
 0x158   : > { %1894 = vmatmul.msk.bf16.vlgmr.msra.gmra.mxu1 %vm741_vm1, %v898_v27  ;;  %v736_v27 = vld [vmem:[#allocation7 + $0x4] sm:$0xf] }
 0x159   : > { %v757_v28 = vpop.f32.mrf.mxu3 }
 0x15a   : > { %v761_v29 = vmul.f32 0.35355338, %v757_v28  ;;  %v863_v28 = vsel %vm779_vm3, %v736_v27, 0 }
 0x15b   : > { %872 = vmatpush.bf16.msrb.mxu3 %v863_v28 }
 0x15c   : > { %v762_v30 = vsel %vm734_vm2, %v761_v29, -1e+09 }
 0x15d   : > { %v763_v31 = vsel %vm741_vm1, %v762_v30, -inf }
 0x15e   : > { %764 = vmax.xlane.f32.xlu0 %v763_v31 }
 0x161   : > { %v759_v32 = vpop.f32.mrf.mxu3 }
 0x1c5   : > { %v818_v33 = vpop.f32.mrf.mxu1 }
 0x1c6   : > { %v822_v34 = vmul.f32 0.35355338, %v818_v33 }
 0x1c8   : > { %v823_v35 = vsel %vm734_vm2, %v822_v34, -1e+09 }
 0x1c9   : > { %v824_v36 = vsel %vm741_vm1, %v823_v35, -inf }
 0x1ca   : > { %825 = vmax.xlane.f32.xlu2 %v824_v36 }
 0x1cd   : > { %v820_v37 = vpop.f32.mrf.mxu1 }
 0x1d1   : > { %v765_v38 = vpop.xlane.xlu0 %764 }
 0x1d2   : > { %v766_v39 = vsub.f32 %v762_v30, %v765_v38  ;;  %v737_v30 = vld [vmem:[#allocation7 + $0x8] sm:$0xf] }
 0x1d3   : > { %v960_v32 = vsel %vm779_vm3, %v737_v30, 0 }
 0x1d4   : > { %v767_v40 = vmul.f32 1.442695, %v766_v39  ;;  %969 = vmatpush.bf16.msra.mxu3 %v960_v32 }
 0x1d5   : > { %v916_v41 = vpop.f32.mrf.mxu1 }
 0x1d6   : > { %2141 = vpow2.f32 %v767_v40  ;;  %v920_v42 = vmul.f32 0.35355338, %v916_v41 }
 0x1d8   : > { %v921_v43 = vsel %vm734_vm2, %v920_v42, -1e+09 }
 0x1d9   : > { %v922_v44 = vsel %vm741_vm1, %v921_v43, -inf }
 0x1da   : > { %923 = vmax.xlane.f32.xlu1 %v922_v44 }
 0x1dc   : > { %v2142_v45 = vpop.eup %2141 }
 0x1dd   : > { %v918_v46 = vpop.f32.mrf.mxu1  ;;  %v769_v47 = vsel %vm741_vm1, %v2142_v45, 0.0 }
 0x1de   : > { %770 = vadd.xlane.f32.xlu0 %v769_v47 }
 0x1f2   : > { %978 = vrot.lane.b32.xlu0 %v740_v11, %s2550_s20 }
 0x23d   : > { %v826_v54 = vpop.xlane.xlu2 %825 }
 0x23e   : > { %v827_v55 = vsub.f32 %v823_v35, %v826_v54 }
 0x240   : > { %v828_v56 = vmul.f32 1.442695, %v827_v55 }
 0x242   : > { %2143 = vpow2.f32 %v828_v56 }
 0x248   : > { %v2144_v60 = vpop.eup %2143 }
 0x249   : > { %v830_v61 = vsel %vm741_vm1, %v2144_v60, 0.0 }
 0x24a   : > { %831 = vadd.xlane.f32.xlu2 %v830_v61 }
 0x24d   : > { %v924_v62 = vpop.xlane.xlu1 %923 }
 0x24e   : > { %v925_v63 = vsub.f32 %v921_v43, %v924_v62 }
 0x250   : > { %v926_v0 = vmul.f32 1.442695, %v925_v63 }
 0x251   : > { %v771_v1 = vpop.xlane.xlu0 %770 }
 0x252   : > { %2145 = vpow2.f32 %v926_v0  ;;  %v2128_v0 = vld [vmem:[#allocation16 + $0x3] ss:$0 sm:$0xff] }
 0x253   : > { %2147 = vrcp.f32 %v771_v1 }
 0x258   : > { %v2146_v2 = vpop.eup %2145 }
 0x259   : > { %v2148_v3 = vpop.eup %2147  ;;  %v928_v5 = vsel %vm741_vm1, %v2146_v2, 0.0 }
 0x25a   : > { %v773_v6 = vmul.f32 %v2148_v3, %v2142_v45  ;;  %929 = vadd.xlane.f32.xlu1 %v928_v5 }
 0x25c   : > { %v774_v7 = vpack.c.bf16 %v773_v6, %v773_v6 }
 0x25e   : > { %1889 = vmatmul.msk.bf16.vlgmr.msrb.gmra.mxu0 %vm741_vm1, %v774_v7 }
 0x262   : > { %837 = vrot.lane.b32.xlu2 %v2833_v52, %s2549_s18 }
 0x264   : > { %v979_v8 = vpop.permute.xlu0 %978 }
 0x265   : > { %v984_v9 = vsel %vm741_vm1, %v979_v8, 0  ;;  %v2551_v8 = vmov 32.0  }
 0x266   : > { %993 = vmatpush.bf16.xpose.msrb.mxu0 %v984_v9 }
 0x273   : > { %934 = vrot.lane.b32.xlu1 %v2833_v52, %s2548_s28 }
 0x2bd   : > { %v832_v10 = vpop.xlane.xlu2 %831 }
 0x2be   : > { %2149 = vrcp.f32 %v832_v10 }
 0x2c4   : > { %v2150_v11 = vpop.eup %2149 }
 0x2c5   : > { %v834_v12 = vmul.f32 %v2150_v11, %v2144_v60  ;;  %v838_v13 = vpop.permute.xlu2 %837  ;;  %v738_v60 = vld [vmem:[#allocation7 + $0xc] sm:$0xf] }
 0x2c6   : > { %v843_v14 = vsel %vm779_vm3, %v838_v13, 0  ;;  %v1039_v61 = vsel %vm779_vm3, %v738_v60, 0 }
 0x2c7   : > { %852 = vmatpush.bf16.msrb.mxu2 %v843_v14  ;;  %v835_v15 = vpack.c.bf16 %v834_v12, %v834_v12 }
 0x2ca   : > { %1891 = vmatmul.msk.bf16.vlgmr.msrb.gmra.mxu2 %vm741_vm1, %v835_v15 }
 0x2cd   : > { %v930_v16 = vpop.xlane.xlu1 %929 }
 0x2ce   : > { %2151 = vrcp.f32 %v930_v16 }
 0x2d4   : > { %v2152_v19 = vpop.eup %2151 }
 0x2d5   : > { %v932_v21 = vmul.f32 %v2152_v19, %v2146_v2  ;;  %v1978_v19 = vld [vmem:[#allocation10 + $0x8] sm:$0xff] }
 0x2d7   : > { %v933_v24 = vpack.c.bf16 %v932_v21, %v932_v21  ;;  %v1977_v21 = vld [vmem:[#allocation10] sm:$0xff] }
 0x2db   : > { %v792_v17 = vpop.f32.mrf.mxu0 }
 0x2dc   : > { %v796_v18 = vpack.c.bf16 %v792_v17, %v792_v17 }
 0x2de   : > { %1893 = vmatmul.msk.bf16.vlgmr.msra.gmra.mxu0 %vm741_vm1, %v796_v18 }
 0x2df   : > { %1157 = vmatpush.bf16.msra.mxu0 %v1978_v19 }
 0x2e3   : > { %v794_v20 = vpop.f32.mrf.mxu0  ;;  %1158 = vmatpush.bf16.msra.mxu0 %v1977_v21 }
 0x2e4   : > { %v631_v20 = vld [vmem:[%s628_s29] sm:$0xff] }
 0x2e5   : > { %v935_v22 = vpop.permute.xlu1 %934 }
 0x2e6   : > { %v940_v23 = vsel %vm779_vm3, %v935_v22, 0  ;;  %v1133_v22 = vpack.c.bf16 %v631_v20, %v631_v20 }
 0x2e7   : > { %949 = vmatpush.bf16.msra.mxu2 %v940_v23  ;;  %v1976_v23 = vld [vmem:[#allocation8 + $0x8] sm:$0xff] }
 0x2ea   : > { %1895 = vmatmul.msk.bf16.vlgmr.msra.gmra.mxu2 %vm741_vm1, %v933_v24  ;;  %v1975_v24 = vld [vmem:[#allocation8] sm:$0xff] }
 0x2eb   : > { %1048 = vmatpush.bf16.msrb.mxu2 %v1039_v61 }
 0x2ee   : > { %1897 = vmatmul.msk.bf16.vlgmr.msrb.gmra.mxu0 %vm741_vm1, %v977_v58 }
 0x2fe   : > { %1917 = vmatmul.msk.bf16.vlgmr.msra.gmra.mxu0 %vm651_vm0, %v1133_v22 }
 0x34d   : > { %v854_v29 = vpop.f32.mrf.mxu2 }
 0x34e   : > { %v858_v31 = vpack.c.bf16 %v854_v29, %v854_v29 }
 0x350   : > { %1892 = vmatmul.msk.bf16.vlgmr.msrb.gmra.mxu3 %vm741_vm1, %v858_v31 }
 0x351   : > { %1122 = vmatpush.bf16.msrb.mxu3 %v1976_v23 }
 0x355   : > { %v856_v33 = vpop.f32.mrf.mxu2  ;;  %1123 = vmatpush.bf16.msrb.mxu3 %v1975_v24 }
 0x35b   : > { %v893_v34 = vpop.f32.mrf.mxu0 }
 0x363   : > { %v895_v35 = vpop.f32.mrf.mxu0 }
 0x36b   : > { %v995_v36 = vpop.f32.mrf.mxu0 }
 0x36c   : > { %v999_v37 = vmul.f32 0.35355338, %v995_v36  ;;  %v2129_v36 = vld [vmem:[#allocation16 + $0x9] ss:$0 sm:$0xff] }
 0x36d   : > { %v951_v38 = vpop.f32.mrf.mxu2 }
 0x36e   : > { %v955_v39 = vpack.c.bf16 %v951_v38, %v951_v38  ;;  %v1000_v40 = vsel %vm734_vm2, %v999_v37, -1e+09  ;;  %v2130_v38 = vld [vmem:[#allocation16 + $0xa] ss:$0 sm:$0xff] }
 0x36f   : > { %v1001_v41 = vsel %vm741_vm1, %v1000_v40, -inf }
 0x370   : > { %1002 = vmax.xlane.f32.xlu0 %v1001_v41  ;;  %1896 = vmatmul.msk.bf16.vlgmr.msra.gmra.mxu3 %vm741_vm1, %v955_v39 }
 0x373   : > { %v997_v42 = vpop.f32.mrf.mxu0 }
 0x375   : > { %v953_v43 = vpop.f32.mrf.mxu2 }
 0x376   : > { %v2131_v43 = vld [vmem:[#allocation16 + $0x5] ss:$0 sm:$0xff] }
 0x3d3   : > { %v874_v44 = vpop.f32.mrf.mxu3 }
 0x3d4   : > { %v894_v51 = vadd.f32 %v893_v34, %v874_v44  ;;  %v1160_v44 = vpop.f32.mrf.mxu0 }
 0x3db   : > { %v876_v45 = vpop.f32.mrf.mxu3 }
 0x3dc   : > { %v1161_v45 = vadd.f32 %v2131_v43, %v1160_v44 }
 0x3e3   : > { %v1003_v46 = vpop.xlane.xlu0 %1002 }
 0x3e4   : > { %v1004_v47 = vsub.f32 %v1000_v40, %v1003_v46  ;;  %v1200_v46 = vpack.c.bf16 %v1161_v45, %v1161_v45 }
 0x3e6   : > { %v1005_v48 = vmul.f32 1.442695, %v1004_v47  ;;  %v1205_v47 = vsel %vm741_vm1, %v1200_v46, 0 }
 0x3e7   : > { %1214 = vmatpush.bf16.xpose.msra.mxu2 %v1205_v47 }
 0x3e8   : > { %2153 = vpow2.f32 %v1005_v48  ;;  %v1162_v48 = vpop.f32.mrf.mxu0 }
 0x3ee   : > { %v2154_v49 = vpop.eup %2153 }
 0x3ef   : > { %v1007_v50 = vsel %vm741_vm1, %v2154_v49, 0.0 }
 0x3f0   : > { %1008 = vadd.xlane.f32.xlu0 %v1007_v50 }
 0x3f3   : > { %v971_v25 = vpop.f32.mrf.mxu3 }
 0x3f4   : > { %v975_v26 = vadd.f32 %v971_v25, %v894_v51 }
 0x3fb   : > { %v973_v53 = vpop.f32.mrf.mxu3 }
 0x404   : > { %1013 = vrot.lane.b32.xlu0 %v2833_v52, %s2550_s20 }
 0x463   : > { %v1009_v54 = vpop.xlane.xlu0 %1008 }
 0x464   : > { %2155 = vrcp.f32 %v1009_v54  ;;  %v1980_v54 = vld [vmem:[#allocation11 + $0x8] sm:$0xff] }
 0x465   : > { %2157 = vrcp.f32 %v2551_v8 }
 0x46a   : > { %v2156_v55 = vpop.eup %2155 }
 0x46b   : > { %v1011_v56 = vmul.f32 %v2156_v55, %v2154_v49  ;;  %v2158_v9 = vpop.eup %2157  ;;  %v2132_v49 = vld [vmem:[#allocation16 + $0x4] ss:$0 sm:$0xff] }
 0x46c   : > { %v1063_v10 = vmul.f32 32.0, %v2158_v9  ;;  %vm1067_vm4 = vweird.f32 %v2158_v9 }
 0x46d   : > { %v1012_v59 = vpack.c.bf16 %v1011_v56, %v1011_v56  ;;  %v1979_v56 = vld [vmem:[#allocation11] sm:$0xff] }
 0x46e   : > { %v1064_v11 = vsub.f32 1.0, %v1063_v10 }
 0x470   : > { %v1065_v12 = vmul.f32 %v2158_v9, %v1064_v11 }
 0x472   : > { %v1066_v13 = vadd.f32 %v2158_v9, %v1065_v12 }
 0x474   : > { %v2869_v14 = vsel %vm1067_vm4, %v2158_v9, %v1066_v13 }
 0x476   : > { %v1014_v57 = vpop.permute.xlu0 %1013 }
 0x477   : > { %v1019_v58 = vsel %vm779_vm3, %v1014_v57, 0 }
 0x478   : > { %1028 = vmatpush.bf16.msrb.mxu1 %v1019_v58 }
 0x47b   : > { %1898 = vmatmul.msk.bf16.vlgmr.msrb.gmra.mxu1 %vm741_vm1, %v1012_v59 }
 0x47c   : > { %1188 = vmatpush.bf16.msra.mxu1 %v1980_v54 }
 0x480   : > { %1189 = vmatpush.bf16.msra.mxu1 %v1979_v56 }
 0x48b   : > { %1926 = vmatmul.msk.bf16.vlgmr.msra.gmra.mxu1 %vm651_vm0, %v1133_v22 }
 0x4f8   : > { %v1030_v62 = vpop.f32.mrf.mxu1 }
 0x4f9   : > { %v1034_v63 = vpack.c.bf16 %v1030_v62, %v1030_v62 }
 0x4fb   : > { %1899 = vmatmul.msk.bf16.vlgmr.msrb.gmra.mxu2 %vm741_vm1, %v1034_v63 }
 0x500   : > { %v1032_v52 = vpop.f32.mrf.mxu1 }
 0x508   : > { %v1191_v52 = vpop.f32.mrf.mxu1 }
 0x57e   : > { %v1050_v1 = vpop.f32.mrf.mxu2 }
 0x57f   : > { %v1054_v2 = vadd.f32 %v1050_v1, %v975_v26  ;;  %v2133_v1 = vld [vmem:[#allocation16 + $0x6] ss:$0 sm:$0xff] }
 0x581   : > { %v1057_v3 = vadd.f32 %v2128_v0, %v1054_v2  ;;  %v1193_v0 = vpop.f32.mrf.mxu1  ;;  %v1192_v2 = vadd.f32 %v2133_v1, %v1191_v52 }
 0x583   : > { %v1058_v5 = vadd.f32 %v1057_v3, %v2795_v4  ;;  %v2896_v3 = vpack.c.bf16 %v1192_v2, %v1192_v2  ;;  %v1196_v2 = vld [vmem:[#allocation13 + $0x4] sm:$0xf] }
 0x585   : > { %v1059_v6 = vsel %vm651_vm0, %v1058_v5, 0.0 }
 0x586   : > { %v1052_v7 = vpop.f32.mrf.mxu2  ;;  %1060 = vadd.xlane.f32.xlu2 %v1059_v6  ;;  %v1195_v6 = vld [vmem:[#allocation13] sm:$0xf] }
 0x587   : > { %v1338_v7 = vsel %vm779_vm3, %v1195_v6, 0  ;;  %v1197_v6 = vld [vmem:[#allocation13 + $0x8] sm:$0xf] }
 0x5f9   : > { %v1061_v15 = vpop.xlane.xlu2 %1060 }
 0x5fa   : > { %v1069_v16 = vmul.f32 %v2869_v14, %v1061_v15 }
 0x5fc   : > { %v1070_v17 = vsub.f32 %v1058_v5, %v1069_v16  ;;  %v1238_v5 = vsel %vm779_vm3, %v2896_v3, 0 }
 0x5fd   : > { %1247 = vmatpush.bf16.msra.mxu3 %v1238_v5  ;;  %v1319_v5 = vsel %vm779_vm3, %v1196_v2, 0 }
 0x5fe   : > { %v1071_v4 = vmul.f32 %v1070_v17, %v1070_v17  ;;  %1328 = vmatpush.bf16.msrb.mxu2 %v1319_v5 }
 0x600   : > { %v1072_v18 = vsel %vm651_vm0, %v1071_v4, 0.0 }
 0x601   : > { %1073 = vadd.xlane.f32.xlu1 %v1072_v18 }
 0x674   : > { %v1074_v27 = vpop.xlane.xlu1 %1073 }
 0x675   : > { %v1075_v28 = vmul.f32 %v1074_v27, %v2869_v14 }
 0x677   : > { %v1076_v29 = vadd.f32 1e-05, %v1075_v28 }
 0x679   : > { %2159 = vrsqrt.f32 %v1076_v29  ;;  %vm1083_vm6 = vweird.f32 %v1076_v29 }
 0x67f   : > { %v2160_v30 = vpop.eup %2159 }
 0x680   : > { %v1078_v31 = vmul.f32 %v2160_v30, %v1076_v29  ;;  %vm1084_vm5 = vweird.f32 %v2160_v30 }
 0x681   : > { %vm1085_vm7 = vmor %vm1083_vm6, %vm1084_vm5 }
 0x682   : > { %v1079_v32 = vmul.f32 %v2160_v30, %v1078_v31 }
 0x684   : > { %v1080_v33 = vmul.f32 0.5, %v1079_v32 }
 0x686   : > { %v1081_v34 = vsub.f32 1.5, %v1080_v33 }
 0x688   : > { %v1082_v35 = vmul.f32 %v2160_v30, %v1081_v34 }
 0x68a   : > { %v1086_v37 = vsel %vm1085_vm7, %v2160_v30, %v1082_v35 }
 0x68b   : > { %v1087_v39 = vmul.f32 %v1086_v37, %v1070_v17 }
 0x68d   : > { %v1090_v40 = vmul.f32 %v2129_v36, %v1087_v39 }
 0x68f   : > { %v2880_v41 = vadd.f32 %v2130_v38, %v1090_v40 }
 0x691   : > { %v1098_v42 = vpack.c.bf16 %v2880_v41, %v2880_v41 }
 0x693   : > { %1908 = vmatmul.msk.bf16.vlgmr.msrb.gmra.mxu3 %vm651_vm0, %v1098_v42 }
 0x694   : > { %1347 = vmatpush.bf16.msrb.mxu3 %v1338_v7  ;;  %v1415_v7 = vsel %vm779_vm3, %v1197_v6, 0 }
 0x716   : > { %v1125_v50 = vpop.f32.mrf.mxu3 }
 0x717   : > { %v1126_v51 = vadd.f32 %v2132_v49, %v1125_v50 }
 0x719   : > { %v1199_v25 = vpack.c.bf16 %v1126_v51, %v1126_v51 }
 0x71b   : > { %1255 = vrot.lane.b32.xlu1 %v1199_v25, %s2549_s18  ;;  %1927 = vmatmul.msk.bf16.vlgmr.msra.gmra.mxu2 %vm741_vm1, %v1199_v25 }
 0x71c   : > { %1424 = vmatpush.bf16.msra.mxu2 %v1415_v7 }
 0x71e   : > { %v1127_v26 = vpop.f32.mrf.mxu3 }
 0x723   : > { %1353 = vrot.lane.b32.xlu1 %v1199_v25, %s2548_s28 }
 0x78d   : > { %v1256_v17 = vpop.permute.xlu1 %1255 }
 0x795   : > { %v1354_v19 = vpop.permute.xlu1 %1353 }
 0x79e   : > { %v1216_v53 = vpop.f32.mrf.mxu2 }
 0x79f   : > { %v1220_v55 = vmul.f32 0.35355338, %v1216_v53 }
 0x7a1   : > { %v1221_v57 = vsel %vm741_vm1, %v1220_v55, -inf }
 0x7a2   : > { %1222 = vmax.xlane.f32.xlu0 %v1221_v57 }
 0x7a6   : > { %v1218_v58 = vpop.f32.mrf.mxu2 }
 0x7b6   : > { %1355 = vrot.lane.b32.xlu0 %v1200_v46, %s2548_s28 }
 0x7be   : > { %1431 = vrot.lane.b32.xlu0 %v1199_v25, %s2550_s20 }
 0x815   : > { %v1223_v59 = vpop.xlane.xlu0 %1222 }
 0x816   : > { %v1224_v60 = vsub.f32 %v1220_v55, %v1223_v59 }
 0x818   : > { %v1225_v61 = vmul.f32 1.442695, %v1224_v60 }
 0x81a   : > { %2161 = vpow2.f32 %v1225_v61 }
 0x820   : > { %v2162_v62 = vpop.eup %2161 }
 0x821   : > { %v1227_v63 = vsel %vm741_vm1, %v2162_v62, 0.0 }
 0x822   : > { %1228 = vadd.xlane.f32.xlu2 %v1227_v63 }
 0x828   : > { %v1356_v10 = vpop.permute.xlu0 %1355 }
 0x829   : > { %v1361_v15 = vsel %vm741_vm1, %v1356_v10, 0 }
 0x830   : > { %v1432_v31 = vpop.permute.xlu0 %1431 }
 0x83a   : > { %1258 = vrot.lane.b32.xlu2 %v1200_v46, %s2549_s18 }
 0x842   : > { %1433 = vrot.lane.b32.xlu2 %v1200_v46, %s2550_s20 }
 0x895   : > { %v1229_v8 = vpop.xlane.xlu2 %1228 }
 0x896   : > { %2163 = vrcp.f32 %v1229_v8 }
 0x89c   : > { %v2164_v9 = vpop.eup %2163 }
 0x89d   : > { %v1231_v11 = vmul.f32 %v2164_v9, %v2162_v62  ;;  %v1259_v12 = vpop.permute.xlu2 %1258 }
 0x89e   : > { %v1264_v13 = vsel %vm741_vm1, %v1259_v12, 0 }
 0x89f   : > { %v1232_v16 = vpack.c.bf16 %v1231_v11, %v1231_v11  ;;  %1273 = vmatpush.bf16.xpose.msrb.mxu0 %v1264_v13 }
 0x8a1   : > { %1928 = vmatmul.msk.bf16.vlgmr.msra.gmra.mxu3 %vm741_vm1, %v1232_v16 }
 0x8a5   : > { %v1434_v4 = vpop.permute.xlu2 %1433 }
 0x8a6   : > { %v1439_v18 = vsel %vm741_vm1, %v1434_v4, 0  ;;  %1929 = vmatmul.msk.bf16.vlgmr.msrb.gmra.mxu0 %vm741_vm1, %v1256_v17 }
 0x8a7   : > { %1370 = vmatpush.bf16.xpose.msra.mxu0 %v1361_v15  ;;  %1448 = vmatpush.bf16.xpose.msra.mxu3 %v1439_v18 }
 0x8b6   : > { %1933 = vmatmul.msk.bf16.vlgmr.msra.gmra.mxu0 %vm741_vm1, %v1354_v19  ;;  %v1198_v19 = vld [vmem:[#allocation13 + $0xc] sm:$0xf] }
 0x923   : > { %v1275_v20 = vpop.f32.mrf.mxu0 }
 0x924   : > { %v1279_v21 = vmul.f32 0.35355338, %v1275_v20  ;;  %v1249_v22 = vpop.f32.mrf.mxu3  ;;  %v1493_v20 = vsel %vm779_vm3, %v1198_v19, 0 }
 0x925   : > { %v1253_v23 = vpack.c.bf16 %v1249_v22, %v1249_v22 }
 0x926   : > { %v1280_v24 = vsel %vm741_vm1, %v1279_v21, -inf }
 0x927   : > { %1932 = vmatmul.msk.bf16.vlgmr.msrb.gmra.mxu3 %vm741_vm1, %v1253_v23  ;;  %1281 = vmax.xlane.f32.xlu2 %v1280_v24 }
 0x92b   : > { %v1277_v27 = vpop.f32.mrf.mxu0 }
 0x92c   : > { %v1251_v28 = vpop.f32.mrf.mxu3 }
 0x933   : > { %v1372_v29 = vpop.f32.mrf.mxu0 }
 0x934   : > { %v1376_v30 = vmul.f32 0.35355338, %v1372_v29 }
 0x936   : > { %v1377_v32 = vsel %vm741_vm1, %v1376_v30, -inf }
 0x937   : > { %1378 = vmax.xlane.f32.xlu1 %v1377_v32  ;;  %1936 = vmatmul.msk.bf16.vlgmr.msra.gmra.mxu3 %vm741_vm1, %v1432_v31  ;;  %v2134_v32 = vld [vmem:[#allocation16 + $0x7] ss:$0 sm:$0xff] }
 0x93b   : > { %v1374_v33 = vpop.f32.mrf.mxu0 }
 0x950   : > { %1293 = vrot.lane.b32.xlu1 %v2896_v3, %s2549_s18 }
 0x99a   : > { %v1282_v34 = vpop.xlane.xlu2 %1281 }
 0x99b   : > { %v1283_v35 = vsub.f32 %v1279_v21, %v1282_v34 }
 0x99d   : > { %v1284_v36 = vmul.f32 1.442695, %v1283_v35 }
 0x99f   : > { %2165 = vpow2.f32 %v1284_v36 }
 0x9a5   : > { %v2166_v37 = vpop.eup %2165 }
 0x9a6   : > { %v1286_v38 = vsel %vm741_vm1, %v2166_v37, 0.0 }
 0x9a7   : > { %1287 = vadd.xlane.f32.xlu2 %v1286_v38 }
 0x9aa   : > { %v2914_v39 = vpop.f32.mrf.mxu3  ;;  %v1379_v40 = vpop.xlane.xlu1 %1378 }
 0x9ab   : > { %v1380_v43 = vsub.f32 %v1376_v30, %v1379_v40 }
 0x9ad   : > { %v1381_v44 = vmul.f32 1.442695, %v1380_v43 }
 0x9af   : > { %2167 = vpow2.f32 %v1381_v44 }
 0x9b2   : > { %v1351_v42 = vpop.f32.mrf.mxu3 }
 0x9b5   : > { %v2168_v48 = vpop.eup %2167 }
 0x9b6   : > { %v1383_v25 = vsel %vm741_vm1, %v2168_v48, 0.0 }
 0x9ba   : > { %v1450_v45 = vpop.f32.mrf.mxu3 }
 0x9bb   : > { %v1454_v46 = vmul.f32 0.35355338, %v1450_v45  ;;  %v1982_v45 = vld [vmem:[#allocation14 + $0x8] sm:$0xff] }
 0x9bd   : > { %v1455_v47 = vsel %vm741_vm1, %v1454_v46, -inf }
 0x9be   : > { %1456 = vmax.xlane.f32.xlu0 %v1455_v47 }
 0x9bf   : > { %1389 = vrot.lane.b32.xlu2 %v2896_v3, %s2548_s28  ;;  %s618_s28 = sand.u32 1, %s2525_s30  }
 0x9c0   : > { %s1858_s18 = sshll.u32 %s618_s28, 3 }
 0x9c1   : > { %s620_s22 = scalar_lea.vmem [#allocation17], %s1858_s18 }
 0x9c2   : > { %v1294_v49 = vpop.permute.xlu1 %1293  ;;  %v1452_v50 = vpop.f32.mrf.mxu3  ;;  %s1674_s25 = sshll.u32 %s620_s22, 4  ;;  %s1675_s25 = int_to_ptr.vmem [resolvable:$true] %s1674_s25 }
 0x9c3   : > { %v1299_v51 = vsel %vm779_vm3, %v1294_v49, 0  ;;  %v1985_v49 = vld [vmem:[%s3006_s12 + $0x10] sm:$0xff] }
 0x9c4   : > { %1308 = vmatpush.bf16.msrb.mxu1 %v1299_v51 }
 0x9c6   : > { %1384 = vadd.xlane.f32.xlu0 %v1383_v25 }
 0xa1a   : > { %v1288_v26 = vpop.xlane.xlu2 %1287 }
 0xa1b   : > { %2169 = vrcp.f32 %v1288_v26 }
 0xa21   : > { %v2170_v53 = vpop.eup %2169 }
 0xa22   : > { %v1290_v54 = vmul.f32 %v2170_v53, %v2166_v37  ;;  %v1390_v55 = vpop.permute.xlu2 %1389 }
 0xa23   : > { %v1395_v56 = vsel %vm779_vm3, %v1390_v55, 0 }
 0xa24   : > { %v1291_v57 = vpack.c.bf16 %v1290_v54, %v1290_v54  ;;  %1404 = vmatpush.bf16.msra.mxu1 %v1395_v56  ;;  %v2135_v56 = vld [vmem:[#allocation16 + $0xb] ss:$0 sm:$0xff] }
 0xa26   : > { %1930 = vmatmul.msk.bf16.vlgmr.msrb.gmra.mxu1 %vm741_vm1, %v1291_v57 }
 0xa28   : > { %1502 = vmatpush.bf16.msrb.mxu1 %v1493_v20 }
 0xa31   : > { %v1457_v58 = vpop.xlane.xlu0 %1456 }
 0xa32   : > { %v1458_v59 = vsub.f32 %v1454_v46, %v1457_v58  ;;  %v1981_v46 = vld [vmem:[#allocation14] sm:$0xff]  ;;  %v2136_v58 = vld [vmem:[#allocation16 + $0xc] ss:$0 sm:$0xff] }
 0xa34   : > { %v1459_v60 = vmul.f32 1.442695, %v1458_v59 }
 0xa36   : > { %2171 = vpow2.f32 %v1459_v60 }
 0xa39   : > { %v1385_v61 = vpop.xlane.xlu0 %1384 }
 0xa3a   : > { %2173 = vrcp.f32 %v1385_v61 }
 0xa3c   : > { %v2172_v62 = vpop.eup %2171 }
 0xa3d   : > { %v1461_v63 = vsel %vm741_vm1, %v2172_v62, 0.0 }
 0xa3e   : > { %1462 = vadd.xlane.f32.xlu0 %v1461_v63  ;;  %v1984_v63 = vld [vmem:[%s3006_s12 + $0x8] sm:$0xff] }
 0xa40   : > { %v2174_v52 = vpop.eup %2173 }
 0xa41   : > { %v1387_v0 = vmul.f32 %v2174_v52, %v2168_v48  ;;  %v1983_v52 = vld [vmem:[%s3006_s12] sm:$0xff] }
 0xa43   : > { %v1388_v1 = vpack.c.bf16 %v1387_v0, %v1387_v0  ;;  %v2137_v0 = vld [vmem:[%s3005_s11] ss:$0 sm:$0xff] }
 0xa45   : > { %1934 = vmatmul.msk.bf16.vlgmr.msra.gmra.mxu1 %vm741_vm1, %v1388_v1 }
 0xa52   : > { %1467 = vrot.lane.b32.xlu0 %v2896_v3, %s2550_s20  ;;  %s1966_s20 = sshll.u32 %s2648_s17, 3  ;;  %s1662_s17 = scalar_lea.sflag [#allocation4], %s618_s28 }
 0xa53   : > { %s1672_s29 = scalar_lea.hbm %s3008_s14, %s1966_s20 }
 0xa54   : > { %s1676_s26 = sshll.u32 %s1672_s29, 4  ;;  %s1677_s26 = int_to_ptr.hbm [resolvable:$true] %s1676_s26 }
 0xa55   : > { %s2465_s27 = sshra.s32 %s1677_s26, 4  ;;  %s2466_s27 = int_to_ptr.hbm [resolvable:$true] %s2465_s27 }
 0xa56   : > { %s2467_s16 = scalar_lea.hbm %s2466_s27, 8  ;;  %p2472_p3 = scmp.lt.s32.totalorder %s2466_s27, %s3008_s14 }
 0xa57   : > { %p2468_p0 = scmp.ne.s32.totalorder %s2466_s27, %s2467_s16  ;;  %p2473_p4 = scmp.lt.s32.totalorder %s2471_s24, %s2467_s16 }
 0xa59   : > { %p2469_p1 = pnand %p2468_p0, %p2665_p5  ;;  %p2474_p7 = por %p2473_p4, %p2472_p3 }
 0xa5b   : > { %p2470_p2 = pneg %p2469_p1 }
 0xa5d   : > { %p2475_p8 = pnand %p2474_p7, %p2470_p2 }
 0xaa3   : > { %v1310_v8 = vpop.f32.mrf.mxu1 }
 0xaa4   : > { %v1314_v9 = vpack.c.bf16 %v1310_v8, %v1310_v8  ;;  %v2138_v8 = vld [vmem:[#allocation16 + $0x8] ss:$0 sm:$0xff] }
 0xaa6   : > { %1931 = vmatmul.msk.bf16.vlgmr.msrb.gmra.mxu2 %vm741_vm1, %v1314_v9 }
 0xaa7   : > { %1571 = vmatpush.bf16.msrb.mxu2 %v1982_v45 }
 0xaab   : > { %v1312_v10 = vpop.f32.mrf.mxu1  ;;  %1572 = vmatpush.bf16.msrb.mxu2 %v1981_v46 }
 0xab1   : > { %v1463_v11 = vpop.xlane.xlu0 %1462 }
 0xab2   : > { %2175 = vrcp.f32 %v1463_v11 }
 0xab8   : > { %v2176_v12 = vpop.eup %2175 }
 0xab9   : > { %v1465_v15 = vmul.f32 %v2176_v12, %v2172_v62 }
 0xabb   : > { %v1466_v4 = vpack.c.bf16 %v1465_v15, %v1465_v15 }
 0xac2   : > { %v1406_v13 = vpop.f32.mrf.mxu1 }
 0xac3   : > { %v1410_v16 = vpack.c.bf16 %v1406_v13, %v1406_v13 }
 0xac4   : > { %v1468_v3 = vpop.permute.xlu0 %1467 }
 0xac5   : > { %v1473_v17 = vsel %vm779_vm3, %v1468_v3, 0  ;;  %1935 = vmatmul.msk.bf16.vlgmr.msra.gmra.mxu2 %vm741_vm1, %v1410_v16 }
 0xac6   : > { %1482 = vmatpush.bf16.msrb.mxu0 %v1473_v17 }
 0xac9   : > { %1937 = vmatmul.msk.bf16.vlgmr.msrb.gmra.mxu0 %vm741_vm1, %v1466_v4 }
 0xaca   : > { %v1408_v18 = vpop.f32.mrf.mxu1 }
 0xb29   : > { %v1330_v21 = vpop.f32.mrf.mxu2 }
 0xb2a   : > { %v1350_v24 = vadd.f32 %v2914_v39, %v1330_v21 }
 0xb31   : > { %v1332_v22 = vpop.f32.mrf.mxu2 }
 0xb46   : > { %v1484_v23 = vpop.f32.mrf.mxu0 }
 0xb47   : > { %v1488_v27 = vpack.c.bf16 %v1484_v23, %v1484_v23 }
 0xb48   : > { %v1426_v28 = vpop.f32.mrf.mxu2 }
 0xb49   : > { %v1430_v29 = vadd.f32 %v1426_v28, %v1350_v24  ;;  %1938 = vmatmul.msk.bf16.vlgmr.msrb.gmra.mxu1 %vm741_vm1, %v1488_v27 }
 0xb4e   : > { %v1486_v30 = vpop.f32.mrf.mxu0 }
 0xb50   : > { %v1428_v31 = vpop.f32.mrf.mxu2 }
 0xb51   : > { %v2140_v31 = vld [vmem:[#allocation16 + $0xe] ss:$0 sm:$0xff] }
 0xbc6   : > { %v1504_v33 = vpop.f32.mrf.mxu1 }
 0xbc7   : > { %v1508_v34 = vadd.f32 %v1504_v33, %v1430_v29  ;;  %v2139_v29 = vld [vmem:[#allocation16 + $0xd] ss:$0 sm:$0xff] }
 0xbc9   : > { %v1511_v35 = vadd.f32 %v2134_v32, %v1508_v34 }
 0xbcb   : > { %v1512_v36 = vadd.f32 %v1511_v35, %v2880_v41  ;;  %v1986_v41 = vld [vmem:[%s3006_s12 + $0x18] sm:$0xff] }
 0xbcc   : > { %1622 = vmatpush.bf16.msrb.mxu3 %v1986_v41 }
 0xbcd   : > { %v1513_v37 = vsel %vm651_vm0, %v1512_v36, 0.0 }
 0xbce   : > { %v1506_v38 = vpop.f32.mrf.mxu1  ;;  %1514 = vadd.xlane.f32.xlu1 %v1513_v37 }
 0xbd0   : > { %1623 = vmatpush.bf16.msrb.mxu3 %v1985_v49 }
 0xbd4   : > { %1624 = vmatpush.bf16.msrb.mxu3 %v1984_v63 }
 0xbd8   : > { %1625 = vmatpush.bf16.msrb.mxu3 %v1983_v52 }
 0xc41   : > { %v1515_v40 = vpop.xlane.xlu1 %1514 }
 0xc42   : > { %v1516_v39 = vmul.f32 %v1515_v40, %v2869_v14 }
 0xc44   : > { %v1517_v42 = vsub.f32 %v1512_v36, %v1516_v39 }
 0xc46   : > { %v1518_v43 = vmul.f32 %v1517_v42, %v1517_v42 }
 0xc48   : > { %v1519_v44 = vsel %vm651_vm0, %v1518_v43, 0.0 }
 0xc49   : > { %1520 = vadd.xlane.f32.xlu2 %v1519_v44 }
 0xcbc   : > { %v1521_v47 = vpop.xlane.xlu2 %1520 }
 0xcbd   : > { %v1522_v48 = vmul.f32 %v1521_v47, %v2869_v14 }
 0xcbf   : > { %v1523_v50 = vadd.f32 1e-05, %v1522_v48 }
 0xcc1   : > { %2177 = vrsqrt.f32 %v1523_v50  ;;  %vm1530_vm9 = vweird.f32 %v1523_v50 }
 0xcc7   : > { %v2178_v51 = vpop.eup %2177 }
 0xcc8   : > { %v1525_v25 = vmul.f32 %v2178_v51, %v1523_v50  ;;  %vm1531_vm8 = vweird.f32 %v2178_v51 }
 0xcc9   : > { %vm1532_vm10 = vmor %vm1530_vm9, %vm1531_vm8 }
 0xcca   : > { %v1526_v26 = vmul.f32 %v2178_v51, %v1525_v25 }
 0xccc   : > { %v1527_v53 = vmul.f32 0.5, %v1526_v26 }
 0xcce   : > { %v1528_v54 = vsub.f32 1.5, %v1527_v53 }
 0xcd0   : > { %v1529_v55 = vmul.f32 %v2178_v51, %v1528_v54 }
 0xcd2   : > { %v1533_v57 = vsel %vm1532_vm10, %v2178_v51, %v1529_v55 }
 0xcd3   : > { %v1534_v59 = vmul.f32 %v1533_v57, %v1517_v42 }
 0xcd5   : > { %v1537_v60 = vmul.f32 %v2135_v56, %v1534_v59 }
 0xcd7   : > { %v1540_v61 = vadd.f32 %v2136_v58, %v1537_v60 }
 0xcd9   : > { %v1545_v62 = vpack.c.bf16 %v1540_v61, %v1540_v61 }
 0xcdb   : > { %1947 = vmatmul.msk.bf16.vlgmr.msrb.gmra.mxu2 %vm651_vm0, %v1545_v62 }
 0xd5e   : > { %v1574_v1 = vpop.f32.mrf.mxu2 }
 0xd5f   : > { %v1575_v2 = vadd.f32 %v2137_v0, %v1574_v1 }
 0xd61   : > { %v1578_v5 = vmax.f32 %v1575_v2, 0.0 }
 0xd63   : > { %v1587_v6 = vpack.c.bf16 %v1578_v5, %v1578_v5 }
 0xd65   : > { %1964 = vmatmul.msk.bf16.vlgmr.msrb.gmra.mxu3 %vm1614_vm11, %v1587_v6 }
 0xd66   : > { %v1576_v7 = vpop.f32.mrf.mxu2 }
 0xde8   : > { %v1627_v9 = vpop.f32.mrf.mxu3 }
 0xde9   : > { %v1628_v10 = vadd.f32 %v2138_v8, %v1627_v9 }
 0xdeb   : > { %v1631_v11 = vadd.f32 %v1628_v10, %v1540_v61 }
 0xded   : > { %v1632_v12 = vsel %vm651_vm0, %v1631_v11, 0.0 }
 0xdee   : > { %1633 = vadd.xlane.f32.xlu0 %v1632_v12 }
 0xdf0   : > { %v1629_v13 = vpop.f32.mrf.mxu3 }
 0xe61   : > { %v1634_v15 = vpop.xlane.xlu0 %1633 }
 0xe62   : > { %v1635_v16 = vmul.f32 %v1634_v15, %v2869_v14 }
 0xe64   : > { %v1636_v3 = vsub.f32 %v1631_v11, %v1635_v16 }
 0xe66   : > { %v1637_v17 = vmul.f32 %v1636_v3, %v1636_v3 }
 0xe68   : > { %v1638_v4 = vsel %vm651_vm0, %v1637_v17, 0.0 }
 0xe69   : > { %1639 = vadd.xlane.f32.xlu1 %v1638_v4 }
 0xedc   : > { %v1640_v18 = vpop.xlane.xlu1 %1639 }
 0xedd   : > { %v1641_v19 = vmul.f32 %v1640_v18, %v2869_v14 }
 0xedf   : > { %v1642_v20 = vadd.f32 1e-05, %v1641_v19 }
 0xee1   : > { %2179 = vrsqrt.f32 %v1642_v20  ;;  %vm1649_vm13 = vweird.f32 %v1642_v20 }
 0xee7   : > { %v2180_v21 = vpop.eup %2179 }
 0xee8   : > { %v1644_v22 = vmul.f32 %v2180_v21, %v1642_v20  ;;  %vm1650_vm12 = vweird.f32 %v2180_v21 }
 0xee9   : > { %vm1651_vm14 = vmor %vm1649_vm13, %vm1650_vm12 }
 0xeea   : > { %v1645_v23 = vmul.f32 %v2180_v21, %v1644_v22 }
 0xeec   : > { %v1646_v24 = vmul.f32 0.5, %v1645_v23 }
 0xeee   : > { %v1647_v27 = vsub.f32 1.5, %v1646_v24 }
 0xef0   : > { %v1648_v28 = vmul.f32 %v2180_v21, %v1647_v27 }
 0xef2   : > { %v1652_v14 = vsel %vm1651_vm14, %v2180_v21, %v1648_v28 }
 0xef3   : > { %v1653_v30 = vmul.f32 %v1652_v14, %v1636_v3 }
 0xef5   : > { %v1656_v32 = vmul.f32 %v2139_v29, %v1653_v30 }
 0xef7   : > { %v1659_v33 = vadd.f32 %v2140_v31, %v1656_v32 }
 0xef9   : > { %1660 = vst.msk [vmem:[%s620_s22] sm:$0xff] %vm651_vm0, %v1659_v33 }
 0xefa   : > { %2478 = shalt.err (!%p2475_p8)
}
 0xefb   : > { %2023 = dma.vmem_to_hbm [thread:$0]  (%p2665_p5), %s1675_s25, 128, %s1677_s26, %s1662_s17  }
 0xefc PF: > { %s3033_s28 = sld [smem:[#allocation26_spill]] }
 0xefd   : > { %s3034_s20 = sld [smem:[#allocation24_spill]] }
 0xf02   : > { %p2075_p9 = scmp.ge.s32.totalorder %s3033_s28, 2 }
 0xf03   : > { %s1688_s6 = sand.u32 1, %s3034_s20  }
 0xf04   : > { %p2054_p10 = pnand %p2075_p9, %p2669_p6  ;;  %s1689_s29 = scalar_lea.sflag [#allocation4], %s1688_s6 }
 0xf06   : > { %p2055_p11 = pneg %p2054_p10 }
 0xf08   : > { %2516 = dma.done.wait (%p2055_p11), %s1689_s29, 128  }
 0xf09   : > { %2518 = vsyncadd (%p2055_p11), %s1689_s29, 4294967168  ;;  %s3036_s16 = sld [smem:[#allocation27_spill]]  ;;  %s3039_s29 = smov %s2525_s30 }
 0xf0a   : > { %s3037_s22 = sld [smem:[#allocation25_spill]] }
 0xf0b   : > { %s3038_s15 = sld [smem:[#allocation28_spill]] }
 0xf0f   : > { %p29_p12 = scmp.ge.s32.totalorder %s3036_s16, 4  }
 0xf10   : > { %s3040_s30 = smov %s3037_s22 }
 0xf11   :  { %31 = sbr.rel (!%p29_p12) target bundleno = 11 (0xb), region = 151 }
 0xf16   :  { %1695 = vsyncpa [#allocation3], 1 }
 0xf17   :  { %1697 = vsyncpa [#allocation3 + $0x1], 1 }
 0xf18   :  { %1698 = vsyncpa [#allocation6], 1 }
 0xf19   :  { %1699 = vsyncpa [#allocation9], 1 }
 0xf1a   :  { %1700 = vsyncpa [#allocation12], 1 }
 0xf1b   :  { %1701 = vsyncpa [#allocation15], 1 }
 0xf1c   :  { %1702 = vsyncpa [#allocation4], 1 }
 0xf1d   :  { %1704 = vsyncpa [#allocation4 + $0x1], 1 }

// kernel: tpu_custom_call.1
= control target key start
LH: loop header
LB: loop body
LE: loop exit
PB: predicated region body
PF: predicated region fallthrough
CT: control target
= control target key end

     0   :  { %s2994_s0 = inlined_call_operand.vmem [shape: f32[2,8,32], index: 0, kind: input, shape index: {}]   ;;  %s2995_s1 = inlined_call_operand.vmem [shape: f32[2,8,32], index: 1, kind: input, shape index: {}]   ;;  %s2996_s2 = inlined_call_operand.vmem [shape: bf16[32,32], index: 2, kind: input, shape index: {}]   ;;  %s2997_s3 = inlined_call_operand.hbm [shape: bf16[32,32], index: 3, kind: input, shape index: {}]   ;;  %s2998_s4 = inlined_call_operand.hbm [shape: bf16[32,32], index: 4, kind: input, shape index: {}]   ;;  %s2999_s5 = inlined_call_operand.hbm [shape: bf16[32,32], index: 5, kind: input, shape index: {}]   ;;  %s3000_s6 = inlined_call_operand.hbm [shape: bf16[32,32], index: 6, kind: input, shape index: {}]   ;;  %s3001_s7 = inlined_call_operand.hbm [shape: bf16[32,32], index: 7, kind: input, shape index: {}]   ;;  %s3002_s8 = inlined_call_operand.hbm [shape: bf16[32,32], index: 8, kind: input, shape index: {}]   ;;  %s3003_s9 = inlined_call_operand.hbm [shape: bf16[32,32], index: 9, kind: input, shape index: {}]   ;;  %s3004_s10 = inlined_call_operand.hbm [shape: bf16[32,64], index: 10, kind: input, shape index: {}]   ;;  %s3005_s11 = inlined_call_operand.vmem [shape: f32[1,64], index: 11, kind: input, shape index: {}]   ;;  %s3006_s12 = inlined_call_operand.vmem [shape: bf16[64,32], index: 12, kind: input, shape index: {}]   ;;  %s3007_s13 = inlined_call_operand.hbm [shape: f32[16,32], index: 13, kind: input, shape index: {}]   ;;  %s3008_s14 = inlined_call_operand.hbm [shape: f32[2,8,32], index: 14, kind: output, shape index: {}]  }
   0x1   :  { %3017 = sst [smem:[#allocation31_spill]] %s2998_s4 }
   0x2   :  { %3018 = sst [smem:[#allocation32_spill]] %s3000_s6 }
   0x3   :  { %19 = vsyncpa [#allocation3], 0 }
   0x4   :  { %20 = vsyncpa [#allocation6], 0 }
   0x5   :  { %21 = vsyncpa [#allocation9], 0 }
   0x6   :  { %22 = vsyncpa [#allocation12], 0 }
   0x7   :  { %23 = vsyncpa [#allocation15], 0 }
   0x8   :  { %24 = vsyncpa [#allocation4], 0 }
   0x9   :  { %26 = vsyncpa [#allocation4 + $0x1], 0  ;;  %s2627_s29 = smov 0   ;;  %s2629_s30 = smov 0  }
   0xa   :  { %s2631_s15 = smov 0   ;;  %s2633_s16 = smov 0  }
   0xb LB: > { %3019 = sst [smem:[#allocation24_spill]] %s2521_s29  ;;  %s2648_s17 = sadd.s32 4294967295, %s2533_s16   ;;  %s2533_s16 = sphi %s2633_s16, %s3036_s16   ;;  %s2529_s15 = sphi %s2631_s15, %s3038_s15   ;;  %s2525_s30 = sphi %s2629_s30, %s3040_s30   ;;  %s2521_s29 = sphi %s2627_s29, %s3039_s29  }
   0xc   : > { %3020 = sst [smem:[#allocation25_spill]] %s2529_s15  ;;  %s1836_s18 = sadd.s32 4294967294, %s2533_s16  }
   0xd   : > { %3021 = sst [smem:[#allocation26_spill]] %s2533_s16  ;;  %s2652_s19 = sadd.s32 1, %s2533_s16  }
   0xe   : > { %3022 = sst [smem:[#allocation27_spill]] %s2652_s19  ;;  %s343_s20 = sadd.s32 1, %s2529_s15 }
   0xf   : > { %s340_s21 = ssub.s32 %s2533_s16, %s2652_s19  ;;  %p353_p0 = scmp.ne.s32.totalorder %s2529_s15, %s2525_s30 }
  0x10   : > { %p341_p1 = scmp.eq.s32.totalorder %s340_s21, 0  ;;  %p354_p2 = scmp.eq.s32.totalorder %s2648_s17, 1 }
  0x11   : > { %p359_p3 = scmp.ne.s32.totalorder %s2525_s30, %s2521_s29  ;;  %p360_p4 = scmp.eq.s32.totalorder %s1836_s18, 1 }
  0x12   : > { %s2663_s22 = scalar_select %p341_p1, %s2529_s15, %s343_s20  }
  0x13   : > { %p2665_p5 = por %p354_p2, %p353_p0  ;;  %p2669_p6 = por %p360_p4, %p359_p3 }
  0x14   : > { %3023 = sst [smem:[#allocation28_spill]] %s2663_s22  ;;  %p1837_p7 = scmp.ge.s32.totalorder %s2533_s16, 1 }
  0x15   : > { %s3024_s23 = scalar_select %p2665_p5, 1, 0 }
  0x16   : > { %s3026_s24 = scalar_select %p2669_p6, 1, 0 }
  0x17   : > { %3025 = sst [smem:[#allocation29_spill]] %s3024_s23  ;;  %p367_p8 = scmp.lt.s32.totalorder %s2533_s16, 3 }
  0x18   : > { %3027 = sst [smem:[#allocation30_spill]] %s3026_s24  ;;  %p2057_p9 = scmp.eq.s32.totalorder %s2648_s17, 0 }
  0x19   : > { %p2676_p10 = pnand %p1837_p7, %p367_p8  ;;  %s3029_s4 = sld [smem:[#allocation31_spill]] }
  0x1a   : > { %s3030_s6 = sld [smem:[#allocation32_spill]]  ;;  %s2535_s15 = smov [#allocation5]  }
  0x1b   : > { %p2025_p11 = pneg %p2676_p10  ;;  %s397_s19 = sshll.u32 %s2535_s15, 4  ;;  %s398_s19 = int_to_ptr.vmem [resolvable:$true] %s397_s19 }
  0x1c   : > { %s2536_s26 = smov 64   ;;  %s2537_s27 = smov 4  }
  0x1d   : > { %p2690_p12 = pnand %p2057_p9, %p2025_p11  ;;  %s2538_s18 = smov [#allocation8]  }
  0x1e   : > { %s425_s20 = sshll.u32 %s2538_s18, 4  ;;  %s451_s24 = sshll.u32 %s3002_s8, 4  ;;  %s426_s20 = int_to_ptr.vmem [resolvable:$true] %s425_s20  ;;  %s452_s24 = int_to_ptr.hbm [resolvable:$true] %s451_s24 }
  0x1f   : > { %s395_s28 = sshll.u32 %s3029_s4, 4  ;;  %s479_s16 = sshll.u32 %s3004_s10, 4  ;;  %s396_s28 = int_to_ptr.hbm [resolvable:$true] %s395_s28  ;;  %s480_s16 = int_to_ptr.hbm [resolvable:$true] %s479_s16 }
  0x20   : > { %s423_s21 = sshll.u32 %s3030_s6, 4  ;;  %s2539_s23 = smov [#allocation11]   ;;  %s424_s21 = int_to_ptr.hbm [resolvable:$true] %s423_s21 }
  0x21   : > { %2031 = dma.hbm_to_vmem [thread:$0]  (!%p2690_p12), %s396_s28, 256, %s398_s19, [#allocation6], %s2536_s26, %s2536_s26, %s2537_s27  }
  0x22   : > { %2037 = dma.hbm_to_vmem [thread:$0]  (!%p2690_p12), %s424_s21, 256, %s426_s20, [#allocation9], %s2536_s26, %s2536_s26, %s2537_s27  }
  0x23   : > { %s453_s19 = sshll.u32 %s2539_s23, 4  ;;  %s2540_s4 = smov [#allocation14]   ;;  %s454_s19 = int_to_ptr.vmem [resolvable:$true] %s453_s19 }
  0x24   : > { %2043 = dma.hbm_to_vmem [thread:$0]  (!%p2690_p12), %s452_s24, 256, %s454_s19, [#allocation12], %s2536_s26, %s2536_s26, %s2537_s27  }
  0x25   : > { %s481_s6 = sshll.u32 %s2540_s4, 4  ;;  %s381_s21 = sshll.u32 %s2997_s3, 4  ;;  %s482_s6 = int_to_ptr.vmem [resolvable:$true] %s481_s6  ;;  %s382_s21 = int_to_ptr.hbm [resolvable:$true] %s381_s21 }
  0x26   : > { %2049 = dma.hbm_to_vmem [thread:$0]  (!%p2690_p12), %s480_s16, 256, %s482_s6, [#allocation15], %s2536_s26, %s2536_s26, %s2537_s27  }
  0x27   : > { %s409_s20 = sshll.u32 %s2999_s5, 4  ;;  %s2541_s15 = smov [#allocation2]   ;;  %s410_s20 = int_to_ptr.hbm [resolvable:$true] %s409_s20 }
  0x28   : > { %s383_s24 = sshll.u32 %s2541_s15, 4  ;;  %s2542_s19 = smov [#allocation7]   ;;  %s384_s24 = int_to_ptr.vmem [resolvable:$true] %s383_s24 }
  0x29   : > { %2028 = dma.hbm_to_vmem [thread:$0]  (!%p2690_p12), %s382_s21, 256, %s384_s24, [#allocation3], %s2536_s26, %s2536_s26, %s2537_s27  }
  0x2a   : > { %s411_s4 = sshll.u32 %s2542_s19, 4  ;;  %s437_s16 = sshll.u32 %s3001_s7, 4  ;;  %s412_s4 = int_to_ptr.vmem [resolvable:$true] %s411_s4  ;;  %s438_s16 = int_to_ptr.hbm [resolvable:$true] %s437_s16 }
  0x2b   : > { %2034 = dma.hbm_to_vmem [thread:$0]  (!%p2690_p12), %s410_s20, 256, %s412_s4, [#allocation6], %s2536_s26, %s2536_s26, %s2537_s27  }
  0x2c   : > { %s465_s23 = sshll.u32 %s3003_s9, 4  ;;  %s2543_s15 = smov [#allocation10]   ;;  %s466_s23 = int_to_ptr.hbm [resolvable:$true] %s465_s23 }
  0x2d   : > { %s439_s21 = sshll.u32 %s2543_s15, 4  ;;  %s2544_s24 = smov [#allocation13]   ;;  %s440_s21 = int_to_ptr.vmem [resolvable:$true] %s439_s21 }
  0x2e   : > { %2040 = dma.hbm_to_vmem [thread:$0]  (!%p2690_p12), %s438_s16, 256, %s440_s21, [#allocation9], %s2536_s26, %s2536_s26, %s2537_s27  }
  0x2f   : > { %s467_s19 = sshll.u32 %s2544_s24, 4  ;;  %s499_s20 = sshll.u32 %s3007_s13, 4  ;;  %s468_s19 = int_to_ptr.vmem [resolvable:$true] %s467_s19  ;;  %s500_s20 = int_to_ptr.hbm [resolvable:$true] %s499_s20 }
  0x30   : > { %2046 = dma.hbm_to_vmem [thread:$0]  (!%p2690_p12), %s466_s23, 256, %s468_s19, [#allocation12], %s2536_s26, %s2536_s26, %s2537_s27  }
  0x31   : > { %s2545_s4 = smov [#allocation16]   ;;  %s2546_s29 = smov 128  }
  0x32   : > { %s501_s6 = sshll.u32 %s2545_s4, 4  ;;  %s2547_s15 = smov 8   ;;  %s502_s6 = int_to_ptr.vmem [resolvable:$true] %s501_s6 }
  0x33   : > { %2052 = dma.hbm_to_vmem [thread:$0]  (!%p2690_p12), %s500_s20, 256, %s502_s6, [#allocation15], %s2546_s29, %s2546_s29, %s2547_s15  }
  0x34   : > { %531 = sbr.rel (%p2676_p10) target bundleno = 3836 (0xefc), region = 76 }
  0x39   : > { %2496 = dma.done.wait (%p2057_p9), [#allocation3], 256  }
  0x3a   : > { %2498 = vsyncadd (%p2057_p9), [#allocation3], 4294967040 }
  0x3b   : > { %2500 = dma.done.wait (%p2057_p9), [#allocation6], 512  }
  0x3c   : > { %2502 = vsyncadd (%p2057_p9), [#allocation6], 4294966784 }
  0x3d   : > { %2504 = dma.done.wait (%p2057_p9), [#allocation9], 512  }
  0x3e   : > { %2506 = vsyncadd (%p2057_p9), [#allocation9], 4294966784 }
  0x3f   : > { %2508 = dma.done.wait (%p2057_p9), [#allocation12], 512  }
  0x40   : > { %2510 = vsyncadd (%p2057_p9), [#allocation12], 4294966784 }
  0x41   : > { %2512 = dma.done.wait (%p2057_p9), [#allocation15], 512  }
  0x42   : > { %2514 = vsyncadd (%p2057_p9), [#allocation15], 4294966784  ;;  %p621_p13 = scmp.lt.s32.totalorder %s2648_s17, 1  ;;  %v1970_v0 = vld [vmem:[%s2996_s2 + $0x8] sm:$0xff]  ;;  %v1969_v2 = vld [vmem:[%s2996_s2] sm:$0xff]  ;;  %vm651_vm0 = vcmask 261120   ;;  %v730_v24 = vlaneseq }
  0x43   : > { %v1972_v1 = vld [vmem:[#allocation2 + $0x8] sm:$0xff]  ;;  %v1971_v3 = vld [vmem:[#allocation2] sm:$0xff]  ;;  %661 = vmatpush.bf16.msra.mxu0 %v1970_v0  ;;  %vm741_vm1 = vcmask 64512   ;;  %s2548_s28 = smov 112   ;;  %s2549_s18 = smov 120   ;;  %v1974_v21 = vld [vmem:[#allocation5 + $0x8] sm:$0xff] }
  0x44   : > { %s2781_s22 = scalar_select %p621_p13, %s2648_s17, 1  ;;  %692 = vmatpush.bf16.msra.mxu1 %v1972_v1  ;;  %v2126_v6 = vld [vmem:[#allocation16 + $0x1] ss:$0 sm:$0xff]  ;;  %v2125_v9 = vld [vmem:[#allocation16] ss:$0 sm:$0xff]  ;;  %723 = vmatpush.bf16.msra.mxu2 %v1974_v21  ;;  %v1973_v22 = vld [vmem:[#allocation5] sm:$0xff] }
  0x45   : > { %s2550_s20 = smov 104   ;;  %v2812_v25 = vshrl.u32 %v730_v24, 7  ;;  %v2814_v26 = vand.u32 127, %v730_v24  ;;  %v2127_v49 = vld [vmem:[#allocation16 + $0x2] ss:$0 sm:$0xff]  ;;  %vm779_vm3 = vcmask 1043456  }
  0x46   : > { %s1859_s25 = sshll.u32 %s2781_s22, 3  ;;  %v735_v57 = vld [vmem:[#allocation7] sm:$0xf]  ;;  %vm1614_vm11 = vcmask 523264   ;;  %s2471_s24 = scalar_lea.hbm %s3008_s14, 16 }
  0x47   : > { %s624_s16 = scalar_lea.vmem %s2994_s0, %s1859_s25  ;;  %662 = vmatpush.bf16.msra.mxu0 %v1969_v2  ;;  %vm734_vm2 = vcmp.ge.s32.totalorder %v2812_v25, %v2814_v26  ;;  %v882_v59 = vsel %vm779_vm3, %v735_v57, 0  ;;  %s628_s29 = scalar_lea.vmem %s2995_s1, %s1859_s25 }
  0x48   : > { %v2795_v4 = vld [vmem:[%s624_s16] sm:$0xff]  ;;  %693 = vmatpush.bf16.msra.mxu1 %v1971_v3  ;;  %724 = vmatpush.bf16.msra.mxu2 %v1973_v22 }
  0x49   : > { %v636_v5 = vpack.c.bf16 %v2795_v4, %v2795_v4 }
  0x4b   : > { %1869 = vmatmul.msk.bf16.vlgmr.msra.gmra.mxu0 %vm651_vm0, %v636_v5  ;;  %1878 = vmatmul.msk.bf16.vlgmr.msra.gmra.mxu1 %vm651_vm0, %v636_v5 }
  0x4c   : > { %1887 = vmatmul.msk.bf16.vlgmr.msra.gmra.mxu2 %vm651_vm0, %v636_v5 }
  0xc8   : > { %v664_v7 = vpop.f32.mrf.mxu0  ;;  %v695_v8 = vpop.f32.mrf.mxu1 }
  0xc9   : > { %v696_v10 = vadd.f32 %v2126_v6, %v695_v8  ;;  %v665_v12 = vadd.f32 %v2125_v9, %v664_v7 }
  0xcb   : > { %v740_v11 = vpack.c.bf16 %v696_v10, %v696_v10  ;;  %v739_v16 = vpack.c.bf16 %v665_v12, %v665_v12 }
  0xcd   : > { %899 = vrot.lane.b32.xlu2 %v740_v11, %s2548_s28  ;;  %801 = vrot.lane.b32.xlu1 %v740_v11, %s2549_s18  ;;  %v746_v13 = vsel %vm741_vm1, %v740_v11, 0 }
  0xce   : > { %755 = vmatpush.bf16.xpose.msra.mxu3 %v746_v13 }
  0xcf   : > { %v726_v48 = vpop.f32.mrf.mxu2 }
  0xd0   : > { %v666_v14 = vpop.f32.mrf.mxu0  ;;  %v697_v15 = vpop.f32.mrf.mxu1  ;;  %v727_v50 = vadd.f32 %v2127_v49, %v726_v48 }
  0xd2   : > { %v2833_v52 = vpack.c.bf16 %v727_v50, %v727_v50 }
  0xd4   : > { %v781_v53 = vsel %vm779_vm3, %v2833_v52, 0 }
  0xd5   : > { %897 = vrot.lane.b32.xlu2 %v739_v16, %s2548_s28  ;;  %798 = vrot.lane.b32.xlu1 %v739_v16, %s2549_s18 }
  0xd6   : > { %1888 = vmatmul.msk.bf16.vlgmr.msra.gmra.mxu3 %vm741_vm1, %v739_v16  ;;  %790 = vmatpush.bf16.msrb.mxu0 %v781_v53 }
  0xd7   : > { %v728_v51 = vpop.f32.mrf.mxu2 }
  0xda   : > { %891 = vmatpush.bf16.msra.mxu0 %v882_v59 }
  0xdd   : > { %976 = vrot.lane.b32.xlu1 %v739_v16, %s2550_s20 }
 0x127   : > { %v900_v17 = vpop.permute.xlu2 %899 }
 0x128   : > { %v905_v20 = vsel %vm741_vm1, %v900_v17, 0 }
 0x12f   : > { %v898_v27 = vpop.permute.xlu2 %897 }
 0x13f   : > { %v802_v18 = vpop.permute.xlu1 %801 }
 0x140   : > { %v807_v19 = vsel %vm741_vm1, %v802_v18, 0 }
 0x141   : > { %816 = vmatpush.bf16.xpose.msrb.mxu1 %v807_v19 }
 0x147   : > { %v799_v23 = vpop.permute.xlu1 %798 }
 0x148   : > { %1890 = vmatmul.msk.bf16.vlgmr.msrb.gmra.mxu1 %vm741_vm1, %v799_v23 }
 0x149   : > { %914 = vmatpush.bf16.xpose.msra.mxu1 %v905_v20 }
 0x14f   : > { %v977_v58 = vpop.permute.xlu1 %976 }
 0x158   : > { %1894 = vmatmul.msk.bf16.vlgmr.msra.gmra.mxu1 %vm741_vm1, %v898_v27  ;;  %v736_v27 = vld [vmem:[#allocation7 + $0x4] sm:$0xf] }
 0x159   : > { %v757_v28 = vpop.f32.mrf.mxu3 }
 0x15a   : > { %v761_v29 = vmul.f32 0.35355338, %v757_v28  ;;  %v863_v28 = vsel %vm779_vm3, %v736_v27, 0 }
 0x15b   : > { %872 = vmatpush.bf16.msrb.mxu3 %v863_v28 }
 0x15c   : > { %v762_v30 = vsel %vm734_vm2, %v761_v29, -1e+09 }
 0x15d   : > { %v763_v31 = vsel %vm741_vm1, %v762_v30, -inf }
 0x15e   : > { %764 = vmax.xlane.f32.xlu0 %v763_v31 }
 0x161   : > { %v759_v32 = vpop.f32.mrf.mxu3 }
 0x1c5   : > { %v818_v33 = vpop.f32.mrf.mxu1 }
 0x1c6   : > { %v822_v34 = vmul.f32 0.35355338, %v818_v33 }
 0x1c8   : > { %v823_v35 = vsel %vm734_vm2, %v822_v34, -1e+09 }
 0x1c9   : > { %v824_v36 = vsel %vm741_vm1, %v823_v35, -inf }
 0x1ca   : > { %825 = vmax.xlane.f32.xlu2 %v824_v36 }
 0x1cd   : > { %v820_v37 = vpop.f32.mrf.mxu1 }
 0x1d1   : > { %v765_v38 = vpop.xlane.xlu0 %764 }
 0x1d2   : > { %v766_v39 = vsub.f32 %v762_v30, %v765_v38  ;;  %v737_v30 = vld [vmem:[#allocation7 + $0x8] sm:$0xf] }
 0x1d3   : > { %v960_v32 = vsel %vm779_vm3, %v737_v30, 0 }
 0x1d4   : > { %v767_v40 = vmul.f32 1.442695, %v766_v39  ;;  %969 = vmatpush.bf16.msra.mxu3 %v960_v32 }
 0x1d5   : > { %v916_v41 = vpop.f32.mrf.mxu1 }
 0x1d6   : > { %2141 = vpow2.f32 %v767_v40  ;;  %v920_v42 = vmul.f32 0.35355338, %v916_v41 }
 0x1d8   : > { %v921_v43 = vsel %vm734_vm2, %v920_v42, -1e+09 }
 0x1d9   : > { %v922_v44 = vsel %vm741_vm1, %v921_v43, -inf }
 0x1da   : > { %923 = vmax.xlane.f32.xlu1 %v922_v44 }
 0x1dc   : > { %v2142_v45 = vpop.eup %2141 }
 0x1dd   : > { %v918_v46 = vpop.f32.mrf.mxu1  ;;  %v769_v47 = vsel %vm741_vm1, %v2142_v45, 0.0 }
 0x1de   : > { %770 = vadd.xlane.f32.xlu0 %v769_v47 }
 0x1f2   : > { %978 = vrot.lane.b32.xlu0 %v740_v11, %s2550_s20 }
 0x23d   : > { %v826_v54 = vpop.xlane.xlu2 %825 }
 0x23e   : > { %v827_v55 = vsub.f32 %v823_v35, %v826_v54 }
 0x240   : > { %v828_v56 = vmul.f32 1.442695, %v827_v55 }
 0x242   : > { %2143 = vpow2.f32 %v828_v56 }
 0x248   : > { %v2144_v60 = vpop.eup %2143 }
 0x249   : > { %v830_v61 = vsel %vm741_vm1, %v2144_v60, 0.0 }
 0x24a   : > { %831 = vadd.xlane.f32.xlu2 %v830_v61 }
 0x24d   : > { %v924_v62 = vpop.xlane.xlu1 %923 }
 0x24e   : > { %v925_v63 = vsub.f32 %v921_v43, %v924_v62 }
 0x250   : > { %v926_v0 = vmul.f32 1.442695, %v925_v63 }
 0x251   : > { %v771_v1 = vpop.xlane.xlu0 %770 }
 0x252   : > { %2145 = vpow2.f32 %v926_v0  ;;  %v2128_v0 = vld [vmem:[#allocation16 + $0x3] ss:$0 sm:$0xff] }
 0x253   : > { %2147 = vrcp.f32 %v771_v1 }
 0x258   : > { %v2146_v2 = vpop.eup %2145 }
 0x259   : > { %v2148_v3 = vpop.eup %2147  ;;  %v928_v5 = vsel %vm741_vm1, %v2146_v2, 0.0 }
 0x25a   : > { %v773_v6 = vmul.f32 %v2148_v3, %v2142_v45  ;;  %929 = vadd.xlane.f32.xlu1 %v928_v5 }
 0x25c   : > { %v774_v7 = vpack.c.bf16 %v773_v6, %v773_v6 }
 0x25e   : > { %1889 = vmatmul.msk.bf16.vlgmr.msrb.gmra.mxu0 %vm741_vm1, %v774_v7 }
 0x262   : > { %837 = vrot.lane.b32.xlu2 %v2833_v52, %s2549_s18 }
 0x264   : > { %v979_v8 = vpop.permute.xlu0 %978 }
 0x265   : > { %v984_v9 = vsel %vm741_vm1, %v979_v8, 0  ;;  %v2551_v8 = vmov 32.0  }
 0x266   : > { %993 = vmatpush.bf16.xpose.msrb.mxu0 %v984_v9 }
 0x273   : > { %934 = vrot.lane.b32.xlu1 %v2833_v52, %s2548_s28 }
 0x2bd   : > { %v832_v10 = vpop.xlane.xlu2 %831 }
 0x2be   : > { %2149 = vrcp.f32 %v832_v10 }
 0x2c4   : > { %v2150_v11 = vpop.eup %2149 }
 0x2c5   : > { %v834_v12 = vmul.f32 %v2150_v11, %v2144_v60  ;;  %v838_v13 = vpop.permute.xlu2 %837  ;;  %v738_v60 = vld [vmem:[#allocation7 + $0xc] sm:$0xf] }
 0x2c6   : > { %v843_v14 = vsel %vm779_vm3, %v838_v13, 0  ;;  %v1039_v61 = vsel %vm779_vm3, %v738_v60, 0 }
 0x2c7   : > { %852 = vmatpush.bf16.msrb.mxu2 %v843_v14  ;;  %v835_v15 = vpack.c.bf16 %v834_v12, %v834_v12 }
 0x2ca   : > { %1891 = vmatmul.msk.bf16.vlgmr.msrb.gmra.mxu2 %vm741_vm1, %v835_v15 }
 0x2cd   : > { %v930_v16 = vpop.xlane.xlu1 %929 }
 0x2ce   : > { %2151 = vrcp.f32 %v930_v16 }
 0x2d4   : > { %v2152_v19 = vpop.eup %2151 }
 0x2d5   : > { %v932_v21 = vmul.f32 %v2152_v19, %v2146_v2  ;;  %v1978_v19 = vld [vmem:[#allocation10 + $0x8] sm:$0xff] }
 0x2d7   : > { %v933_v24 = vpack.c.bf16 %v932_v21, %v932_v21  ;;  %v1977_v21 = vld [vmem:[#allocation10] sm:$0xff] }
 0x2db   : > { %v792_v17 = vpop.f32.mrf.mxu0 }
 0x2dc   : > { %v796_v18 = vpack.c.bf16 %v792_v17, %v792_v17 }
 0x2de   : > { %1893 = vmatmul.msk.bf16.vlgmr.msra.gmra.mxu0 %vm741_vm1, %v796_v18 }
 0x2df   : > { %1157 = vmatpush.bf16.msra.mxu0 %v1978_v19 }
 0x2e3   : > { %v794_v20 = vpop.f32.mrf.mxu0  ;;  %1158 = vmatpush.bf16.msra.mxu0 %v1977_v21 }
 0x2e4   : > { %v631_v20 = vld [vmem:[%s628_s29] sm:$0xff] }
 0x2e5   : > { %v935_v22 = vpop.permute.xlu1 %934 }
 0x2e6   : > { %v940_v23 = vsel %vm779_vm3, %v935_v22, 0  ;;  %v1133_v22 = vpack.c.bf16 %v631_v20, %v631_v20 }
 0x2e7   : > { %949 = vmatpush.bf16.msra.mxu2 %v940_v23  ;;  %v1976_v23 = vld [vmem:[#allocation8 + $0x8] sm:$0xff] }
 0x2ea   : > { %1895 = vmatmul.msk.bf16.vlgmr.msra.gmra.mxu2 %vm741_vm1, %v933_v24  ;;  %v1975_v24 = vld [vmem:[#allocation8] sm:$0xff] }
 0x2eb   : > { %1048 = vmatpush.bf16.msrb.mxu2 %v1039_v61 }
 0x2ee   : > { %1897 = vmatmul.msk.bf16.vlgmr.msrb.gmra.mxu0 %vm741_vm1, %v977_v58 }
 0x2fe   : > { %1917 = vmatmul.msk.bf16.vlgmr.msra.gmra.mxu0 %vm651_vm0, %v1133_v22 }
 0x34d   : > { %v854_v29 = vpop.f32.mrf.mxu2 }
 0x34e   : > { %v858_v31 = vpack.c.bf16 %v854_v29, %v854_v29 }
 0x350   : > { %1892 = vmatmul.msk.bf16.vlgmr.msrb.gmra.mxu3 %vm741_vm1, %v858_v31 }
 0x351   : > { %1122 = vmatpush.bf16.msrb.mxu3 %v1976_v23 }
 0x355   : > { %v856_v33 = vpop.f32.mrf.mxu2  ;;  %1123 = vmatpush.bf16.msrb.mxu3 %v1975_v24 }
 0x35b   : > { %v893_v34 = vpop.f32.mrf.mxu0 }
 0x363   : > { %v895_v35 = vpop.f32.mrf.mxu0 }
 0x36b   : > { %v995_v36 = vpop.f32.mrf.mxu0 }
 0x36c   : > { %v999_v37 = vmul.f32 0.35355338, %v995_v36  ;;  %v2129_v36 = vld [vmem:[#allocation16 + $0x9] ss:$0 sm:$0xff] }
 0x36d   : > { %v951_v38 = vpop.f32.mrf.mxu2 }
 0x36e   : > { %v955_v39 = vpack.c.bf16 %v951_v38, %v951_v38  ;;  %v1000_v40 = vsel %vm734_vm2, %v999_v37, -1e+09  ;;  %v2130_v38 = vld [vmem:[#allocation16 + $0xa] ss:$0 sm:$0xff] }
 0x36f   : > { %v1001_v41 = vsel %vm741_vm1, %v1000_v40, -inf }
 0x370   : > { %1002 = vmax.xlane.f32.xlu0 %v1001_v41  ;;  %1896 = vmatmul.msk.bf16.vlgmr.msra.gmra.mxu3 %vm741_vm1, %v955_v39 }
 0x373   : > { %v997_v42 = vpop.f32.mrf.mxu0 }
 0x375   : > { %v953_v43 = vpop.f32.mrf.mxu2 }
 0x376   : > { %v2131_v43 = vld [vmem:[#allocation16 + $0x5] ss:$0 sm:$0xff] }
 0x3d3   : > { %v874_v44 = vpop.f32.mrf.mxu3 }
 0x3d4   : > { %v894_v51 = vadd.f32 %v893_v34, %v874_v44  ;;  %v1160_v44 = vpop.f32.mrf.mxu0 }
 0x3db   : > { %v876_v45 = vpop.f32.mrf.mxu3 }
 0x3dc   : > { %v1161_v45 = vadd.f32 %v2131_v43, %v1160_v44 }
 0x3e3   : > { %v1003_v46 = vpop.xlane.xlu0 %1002 }
 0x3e4   : > { %v1004_v47 = vsub.f32 %v1000_v40, %v1003_v46  ;;  %v1200_v46 = vpack.c.bf16 %v1161_v45, %v1161_v45 }
 0x3e6   : > { %v1005_v48 = vmul.f32 1.442695, %v1004_v47  ;;  %v1205_v47 = vsel %vm741_vm1, %v1200_v46, 0 }
 0x3e7   : > { %1214 = vmatpush.bf16.xpose.msra.mxu2 %v1205_v47 }
 0x3e8   : > { %2153 = vpow2.f32 %v1005_v48  ;;  %v1162_v48 = vpop.f32.mrf.mxu0 }
 0x3ee   : > { %v2154_v49 = vpop.eup %2153 }
 0x3ef   : > { %v1007_v50 = vsel %vm741_vm1, %v2154_v49, 0.0 }
 0x3f0   : > { %1008 = vadd.xlane.f32.xlu0 %v1007_v50 }
 0x3f3   : > { %v971_v25 = vpop.f32.mrf.mxu3 }
 0x3f4   : > { %v975_v26 = vadd.f32 %v971_v25, %v894_v51 }
 0x3fb   : > { %v973_v53 = vpop.f32.mrf.mxu3 }
 0x404   : > { %1013 = vrot.lane.b32.xlu0 %v2833_v52, %s2550_s20 }
 0x463   : > { %v1009_v54 = vpop.xlane.xlu0 %1008 }
 0x464   : > { %2155 = vrcp.f32 %v1009_v54  ;;  %v1980_v54 = vld [vmem:[#allocation11 + $0x8] sm:$0xff] }
 0x465   : > { %2157 = vrcp.f32 %v2551_v8 }
 0x46a   : > { %v2156_v55 = vpop.eup %2155 }
 0x46b   : > { %v1011_v56 = vmul.f32 %v2156_v55, %v2154_v49  ;;  %v2158_v9 = vpop.eup %2157  ;;  %v2132_v49 = vld [vmem:[#allocation16 + $0x4] ss:$0 sm:$0xff] }
 0x46c   : > { %v1063_v10 = vmul.f32 32.0, %v2158_v9  ;;  %vm1067_vm4 = vweird.f32 %v2158_v9 }
 0x46d   : > { %v1012_v59 = vpack.c.bf16 %v1011_v56, %v1011_v56  ;;  %v1979_v56 = vld [vmem:[#allocation11] sm:$0xff] }
 0x46e   : > { %v1064_v11 = vsub.f32 1.0, %v1063_v10 }
 0x470   : > { %v1065_v12 = vmul.f32 %v2158_v9, %v1064_v11 }
 0x472   : > { %v1066_v13 = vadd.f32 %v2158_v9, %v1065_v12 }
 0x474   : > { %v2869_v14 = vsel %vm1067_vm4, %v2158_v9, %v1066_v13 }
 0x476   : > { %v1014_v57 = vpop.permute.xlu0 %1013 }
 0x477   : > { %v1019_v58 = vsel %vm779_vm3, %v1014_v57, 0 }
 0x478   : > { %1028 = vmatpush.bf16.msrb.mxu1 %v1019_v58 }
 0x47b   : > { %1898 = vmatmul.msk.bf16.vlgmr.msrb.gmra.mxu1 %vm741_vm1, %v1012_v59 }
 0x47c   : > { %1188 = vmatpush.bf16.msra.mxu1 %v1980_v54 }
 0x480   : > { %1189 = vmatpush.bf16.msra.mxu1 %v1979_v56 }
 0x48b   : > { %1926 = vmatmul.msk.bf16.vlgmr.msra.gmra.mxu1 %vm651_vm0, %v1133_v22 }
 0x4f8   : > { %v1030_v62 = vpop.f32.mrf.mxu1 }
 0x4f9   : > { %v1034_v63 = vpack.c.bf16 %v1030_v62, %v1030_v62 }
 0x4fb   : > { %1899 = vmatmul.msk.bf16.vlgmr.msrb.gmra.mxu2 %vm741_vm1, %v1034_v63 }
 0x500   : > { %v1032_v52 = vpop.f32.mrf.mxu1 }
 0x508   : > { %v1191_v52 = vpop.f32.mrf.mxu1 }
 0x57e   : > { %v1050_v1 = vpop.f32.mrf.mxu2 }
 0x57f   : > { %v1054_v2 = vadd.f32 %v1050_v1, %v975_v26  ;;  %v2133_v1 = vld [vmem:[#allocation16 + $0x6] ss:$0 sm:$0xff] }
 0x581   : > { %v1057_v3 = vadd.f32 %v2128_v0, %v1054_v2  ;;  %v1193_v0 = vpop.f32.mrf.mxu1  ;;  %v1192_v2 = vadd.f32 %v2133_v1, %v1191_v52 }
 0x583   : > { %v1058_v5 = vadd.f32 %v1057_v3, %v2795_v4  ;;  %v2896_v3 = vpack.c.bf16 %v1192_v2, %v1192_v2  ;;  %v1196_v2 = vld [vmem:[#allocation13 + $0x4] sm:$0xf] }
 0x585   : > { %v1059_v6 = vsel %vm651_vm0, %v1058_v5, 0.0 }
 0x586   : > { %v1052_v7 = vpop.f32.mrf.mxu2  ;;  %1060 = vadd.xlane.f32.xlu2 %v1059_v6  ;;  %v1195_v6 = vld [vmem:[#allocation13] sm:$0xf] }
 0x587   : > { %v1338_v7 = vsel %vm779_vm3, %v1195_v6, 0  ;;  %v1197_v6 = vld [vmem:[#allocation13 + $0x8] sm:$0xf] }
 0x5f9   : > { %v1061_v15 = vpop.xlane.xlu2 %1060 }
 0x5fa   : > { %v1069_v16 = vmul.f32 %v2869_v14, %v1061_v15 }
 0x5fc   : > { %v1070_v17 = vsub.f32 %v1058_v5, %v1069_v16  ;;  %v1238_v5 = vsel %vm779_vm3, %v2896_v3, 0 }
 0x5fd   : > { %1247 = vmatpush.bf16.msra.mxu3 %v1238_v5  ;;  %v1319_v5 = vsel %vm779_vm3, %v1196_v2, 0 }
 0x5fe   : > { %v1071_v4 = vmul.f32 %v1070_v17, %v1070_v17  ;;  %1328 = vmatpush.bf16.msrb.mxu2 %v1319_v5 }
 0x600   : > { %v1072_v18 = vsel %vm651_vm0, %v1071_v4, 0.0 }
 0x601   : > { %1073 = vadd.xlane.f32.xlu1 %v1072_v18 }
 0x674   : > { %v1074_v27 = vpop.xlane.xlu1 %1073 }
 0x675   : > { %v1075_v28 = vmul.f32 %v1074_v27, %v2869_v14 }
 0x677   : > { %v1076_v29 = vadd.f32 1e-05, %v1075_v28 }
 0x679   : > { %2159 = vrsqrt.f32 %v1076_v29  ;;  %vm1083_vm6 = vweird.f32 %v1076_v29 }
 0x67f   : > { %v2160_v30 = vpop.eup %2159 }
 0x680   : > { %v1078_v31 = vmul.f32 %v2160_v30, %v1076_v29  ;;  %vm1084_vm5 = vweird.f32 %v2160_v30 }
 0x681   : > { %vm1085_vm7 = vmor %vm1083_vm6, %vm1084_vm5 }
 0x682   : > { %v1079_v32 = vmul.f32 %v2160_v30, %v1078_v31 }
 0x684   : > { %v1080_v33 = vmul.f32 0.5, %v1079_v32 }
 0x686   : > { %v1081_v34 = vsub.f32 1.5, %v1080_v33 }
 0x688   : > { %v1082_v35 = vmul.f32 %v2160_v30, %v1081_v34 }
 0x68a   : > { %v1086_v37 = vsel %vm1085_vm7, %v2160_v30, %v1082_v35 }
 0x68b   : > { %v1087_v39 = vmul.f32 %v1086_v37, %v1070_v17 }
 0x68d   : > { %v1090_v40 = vmul.f32 %v2129_v36, %v1087_v39 }
 0x68f   : > { %v2880_v41 = vadd.f32 %v2130_v38, %v1090_v40 }
 0x691   : > { %v1098_v42 = vpack.c.bf16 %v2880_v41, %v2880_v41 }
 0x693   : > { %1908 = vmatmul.msk.bf16.vlgmr.msrb.gmra.mxu3 %vm651_vm0, %v1098_v42 }
 0x694   : > { %1347 = vmatpush.bf16.msrb.mxu3 %v1338_v7  ;;  %v1415_v7 = vsel %vm779_vm3, %v1197_v6, 0 }
 0x716   : > { %v1125_v50 = vpop.f32.mrf.mxu3 }
 0x717   : > { %v1126_v51 = vadd.f32 %v2132_v49, %v1125_v50 }
 0x719   : > { %v1199_v25 = vpack.c.bf16 %v1126_v51, %v1126_v51 }
 0x71b   : > { %1255 = vrot.lane.b32.xlu1 %v1199_v25, %s2549_s18  ;;  %1927 = vmatmul.msk.bf16.vlgmr.msra.gmra.mxu2 %vm741_vm1, %v1199_v25 }
 0x71c   : > { %1424 = vmatpush.bf16.msra.mxu2 %v1415_v7 }
 0x71e   : > { %v1127_v26 = vpop.f32.mrf.mxu3 }
 0x723   : > { %1353 = vrot.lane.b32.xlu1 %v1199_v25, %s2548_s28 }
 0x78d   : > { %v1256_v17 = vpop.permute.xlu1 %1255 }
 0x795   : > { %v1354_v19 = vpop.permute.xlu1 %1353 }
 0x79e   : > { %v1216_v53 = vpop.f32.mrf.mxu2 }
 0x79f   : > { %v1220_v55 = vmul.f32 0.35355338, %v1216_v53 }
 0x7a1   : > { %v1221_v57 = vsel %vm741_vm1, %v1220_v55, -inf }
 0x7a2   : > { %1222 = vmax.xlane.f32.xlu0 %v1221_v57 }
 0x7a6   : > { %v1218_v58 = vpop.f32.mrf.mxu2 }
 0x7b6   : > { %1355 = vrot.lane.b32.xlu0 %v1200_v46, %s2548_s28 }
 0x7be   : > { %1431 = vrot.lane.b32.xlu0 %v1199_v25, %s2550_s20 }
 0x815   : > { %v1223_v59 = vpop.xlane.xlu0 %1222 }
 0x816   : > { %v1224_v60 = vsub.f32 %v1220_v55, %v1223_v59 }
 0x818   : > { %v1225_v61 = vmul.f32 1.442695, %v1224_v60 }
 0x81a   : > { %2161 = vpow2.f32 %v1225_v61 }
 0x820   : > { %v2162_v62 = vpop.eup %2161 }
 0x821   : > { %v1227_v63 = vsel %vm741_vm1, %v2162_v62, 0.0 }
 0x822   : > { %1228 = vadd.xlane.f32.xlu2 %v1227_v63 }
 0x828   : > { %v1356_v10 = vpop.permute.xlu0 %1355 }
 0x829   : > { %v1361_v15 = vsel %vm741_vm1, %v1356_v10, 0 }
 0x830   : > { %v1432_v31 = vpop.permute.xlu0 %1431 }
 0x83a   : > { %1258 = vrot.lane.b32.xlu2 %v1200_v46, %s2549_s18 }
 0x842   : > { %1433 = vrot.lane.b32.xlu2 %v1200_v46, %s2550_s20 }
 0x895   : > { %v1229_v8 = vpop.xlane.xlu2 %1228 }
 0x896   : > { %2163 = vrcp.f32 %v1229_v8 }
 0x89c   : > { %v2164_v9 = vpop.eup %2163 }
 0x89d   : > { %v1231_v11 = vmul.f32 %v2164_v9, %v2162_v62  ;;  %v1259_v12 = vpop.permute.xlu2 %1258 }
 0x89e   : > { %v1264_v13 = vsel %vm741_vm1, %v1259_v12, 0 }
 0x89f   : > { %v1232_v16 = vpack.c.bf16 %v1231_v11, %v1231_v11  ;;  %1273 = vmatpush.bf16.xpose.msrb.mxu0 %v1264_v13 }
 0x8a1   : > { %1928 = vmatmul.msk.bf16.vlgmr.msra.gmra.mxu3 %vm741_vm1, %v1232_v16 }
 0x8a5   : > { %v1434_v4 = vpop.permute.xlu2 %1433 }
 0x8a6   : > { %v1439_v18 = vsel %vm741_vm1, %v1434_v4, 0  ;;  %1929 = vmatmul.msk.bf16.vlgmr.msrb.gmra.mxu0 %vm741_vm1, %v1256_v17 }
 0x8a7   : > { %1370 = vmatpush.bf16.xpose.msra.mxu0 %v1361_v15  ;;  %1448 = vmatpush.bf16.xpose.msra.mxu3 %v1439_v18 }
 0x8b6   : > { %1933 = vmatmul.msk.bf16.vlgmr.msra.gmra.mxu0 %vm741_vm1, %v1354_v19  ;;  %v1198_v19 = vld [vmem:[#allocation13 + $0xc] sm:$0xf] }
 0x923   : > { %v1275_v20 = vpop.f32.mrf.mxu0 }
 0x924   : > { %v1279_v21 = vmul.f32 0.35355338, %v1275_v20  ;;  %v1249_v22 = vpop.f32.mrf.mxu3  ;;  %v1493_v20 = vsel %vm779_vm3, %v1198_v19, 0 }
 0x925   : > { %v1253_v23 = vpack.c.bf16 %v1249_v22, %v1249_v22 }
 0x926   : > { %v1280_v24 = vsel %vm741_vm1, %v1279_v21, -inf }
 0x927   : > { %1932 = vmatmul.msk.bf16.vlgmr.msrb.gmra.mxu3 %vm741_vm1, %v1253_v23  ;;  %1281 = vmax.xlane.f32.xlu2 %v1280_v24 }
 0x92b   : > { %v1277_v27 = vpop.f32.mrf.mxu0 }
 0x92c   : > { %v1251_v28 = vpop.f32.mrf.mxu3 }
 0x933   : > { %v1372_v29 = vpop.f32.mrf.mxu0 }
 0x934   : > { %v1376_v30 = vmul.f32 0.35355338, %v1372_v29 }
 0x936   : > { %v1377_v32 = vsel %vm741_vm1, %v1376_v30, -inf }
 0x937   : > { %1378 = vmax.xlane.f32.xlu1 %v1377_v32  ;;  %1936 = vmatmul.msk.bf16.vlgmr.msra.gmra.mxu3 %vm741_vm1, %v1432_v31  ;;  %v2134_v32 = vld [vmem:[#allocation16 + $0x7] ss:$0 sm:$0xff] }
 0x93b   : > { %v1374_v33 = vpop.f32.mrf.mxu0 }
 0x950   : > { %1293 = vrot.lane.b32.xlu1 %v2896_v3, %s2549_s18 }
 0x99a   : > { %v1282_v34 = vpop.xlane.xlu2 %1281 }
 0x99b   : > { %v1283_v35 = vsub.f32 %v1279_v21, %v1282_v34 }
 0x99d   : > { %v1284_v36 = vmul.f32 1.442695, %v1283_v35 }
 0x99f   : > { %2165 = vpow2.f32 %v1284_v36 }
 0x9a5   : > { %v2166_v37 = vpop.eup %2165 }
 0x9a6   : > { %v1286_v38 = vsel %vm741_vm1, %v2166_v37, 0.0 }
 0x9a7   : > { %1287 = vadd.xlane.f32.xlu2 %v1286_v38 }
 0x9aa   : > { %v2914_v39 = vpop.f32.mrf.mxu3  ;;  %v1379_v40 = vpop.xlane.xlu1 %1378 }
 0x9ab   : > { %v1380_v43 = vsub.f32 %v1376_v30, %v1379_v40 }
 0x9ad   : > { %v1381_v44 = vmul.f32 1.442695, %v1380_v43 }
 0x9af   : > { %2167 = vpow2.f32 %v1381_v44 }
 0x9b2   : > { %v1351_v42 = vpop.f32.mrf.mxu3 }
 0x9b5   : > { %v2168_v48 = vpop.eup %2167 }
 0x9b6   : > { %v1383_v25 = vsel %vm741_vm1, %v2168_v48, 0.0 }
 0x9ba   : > { %v1450_v45 = vpop.f32.mrf.mxu3 }
 0x9bb   : > { %v1454_v46 = vmul.f32 0.35355338, %v1450_v45  ;;  %v1982_v45 = vld [vmem:[#allocation14 + $0x8] sm:$0xff] }
 0x9bd   : > { %v1455_v47 = vsel %vm741_vm1, %v1454_v46, -inf }
 0x9be   : > { %1456 = vmax.xlane.f32.xlu0 %v1455_v47 }
 0x9bf   : > { %1389 = vrot.lane.b32.xlu2 %v2896_v3, %s2548_s28  ;;  %s618_s28 = sand.u32 1, %s2525_s30  }
 0x9c0   : > { %s1858_s18 = sshll.u32 %s618_s28, 3 }
 0x9c1   : > { %s620_s22 = scalar_lea.vmem [#allocation17], %s1858_s18 }
 0x9c2   : > { %v1294_v49 = vpop.permute.xlu1 %1293  ;;  %v1452_v50 = vpop.f32.mrf.mxu3  ;;  %s1674_s25 = sshll.u32 %s620_s22, 4  ;;  %s1675_s25 = int_to_ptr.vmem [resolvable:$true] %s1674_s25 }
 0x9c3   : > { %v1299_v51 = vsel %vm779_vm3, %v1294_v49, 0  ;;  %v1985_v49 = vld [vmem:[%s3006_s12 + $0x10] sm:$0xff] }
 0x9c4   : > { %1308 = vmatpush.bf16.msrb.mxu1 %v1299_v51 }
 0x9c6   : > { %1384 = vadd.xlane.f32.xlu0 %v1383_v25 }
 0xa1a   : > { %v1288_v26 = vpop.xlane.xlu2 %1287 }
 0xa1b   : > { %2169 = vrcp.f32 %v1288_v26 }
 0xa21   : > { %v2170_v53 = vpop.eup %2169 }
 0xa22   : > { %v1290_v54 = vmul.f32 %v2170_v53, %v2166_v37  ;;  %v1390_v55 = vpop.permute.xlu2 %1389 }
 0xa23   : > { %v1395_v56 = vsel %vm779_vm3, %v1390_v55, 0 }
 0xa24   : > { %v1291_v57 = vpack.c.bf16 %v1290_v54, %v1290_v54  ;;  %1404 = vmatpush.bf16.msra.mxu1 %v1395_v56  ;;  %v2135_v56 = vld [vmem:[#allocation16 + $0xb] ss:$0 sm:$0xff] }
 0xa26   : > { %1930 = vmatmul.msk.bf16.vlgmr.msrb.gmra.mxu1 %vm741_vm1, %v1291_v57 }
 0xa28   : > { %1502 = vmatpush.bf16.msrb.mxu1 %v1493_v20 }
 0xa31   : > { %v1457_v58 = vpop.xlane.xlu0 %1456 }
 0xa32   : > { %v1458_v59 = vsub.f32 %v1454_v46, %v1457_v58  ;;  %v1981_v46 = vld [vmem:[#allocation14] sm:$0xff]  ;;  %v2136_v58 = vld [vmem:[#allocation16 + $0xc] ss:$0 sm:$0xff] }
 0xa34   : > { %v1459_v60 = vmul.f32 1.442695, %v1458_v59 }
 0xa36   : > { %2171 = vpow2.f32 %v1459_v60 }
 0xa39   : > { %v1385_v61 = vpop.xlane.xlu0 %1384 }
 0xa3a   : > { %2173 = vrcp.f32 %v1385_v61 }
 0xa3c   : > { %v2172_v62 = vpop.eup %2171 }
 0xa3d   : > { %v1461_v63 = vsel %vm741_vm1, %v2172_v62, 0.0 }
 0xa3e   : > { %1462 = vadd.xlane.f32.xlu0 %v1461_v63  ;;  %v1984_v63 = vld [vmem:[%s3006_s12 + $0x8] sm:$0xff] }
 0xa40   : > { %v2174_v52 = vpop.eup %2173 }
 0xa41   : > { %v1387_v0 = vmul.f32 %v2174_v52, %v2168_v48  ;;  %v1983_v52 = vld [vmem:[%s3006_s12] sm:$0xff] }
 0xa43   : > { %v1388_v1 = vpack.c.bf16 %v1387_v0, %v1387_v0  ;;  %v2137_v0 = vld [vmem:[%s3005_s11] ss:$0 sm:$0xff] }
 0xa45   : > { %1934 = vmatmul.msk.bf16.vlgmr.msra.gmra.mxu1 %vm741_vm1, %v1388_v1 }
 0xa52   : > { %1467 = vrot.lane.b32.xlu0 %v2896_v3, %s2550_s20  ;;  %s1966_s20 = sshll.u32 %s2648_s17, 3  ;;  %s1662_s17 = scalar_lea.sflag [#allocation4], %s618_s28 }
 0xa53   : > { %s1672_s29 = scalar_lea.hbm %s3008_s14, %s1966_s20 }
 0xa54   : > { %s1676_s26 = sshll.u32 %s1672_s29, 4  ;;  %s1677_s26 = int_to_ptr.hbm [resolvable:$true] %s1676_s26 }
 0xa55   : > { %s2465_s27 = sshra.s32 %s1677_s26, 4  ;;  %s2466_s27 = int_to_ptr.hbm [resolvable:$true] %s2465_s27 }
 0xa56   : > { %s2467_s16 = scalar_lea.hbm %s2466_s27, 8  ;;  %p2472_p3 = scmp.lt.s32.totalorder %s2466_s27, %s3008_s14 }
 0xa57   : > { %p2468_p0 = scmp.ne.s32.totalorder %s2466_s27, %s2467_s16  ;;  %p2473_p4 = scmp.lt.s32.totalorder %s2471_s24, %s2467_s16 }
 0xa59   : > { %p2469_p1 = pnand %p2468_p0, %p2665_p5  ;;  %p2474_p7 = por %p2473_p4, %p2472_p3 }
 0xa5b   : > { %p2470_p2 = pneg %p2469_p1 }
 0xa5d   : > { %p2475_p8 = pnand %p2474_p7, %p2470_p2 }
 0xaa3   : > { %v1310_v8 = vpop.f32.mrf.mxu1 }
 0xaa4   : > { %v1314_v9 = vpack.c.bf16 %v1310_v8, %v1310_v8  ;;  %v2138_v8 = vld [vmem:[#allocation16 + $0x8] ss:$0 sm:$0xff] }
 0xaa6   : > { %1931 = vmatmul.msk.bf16.vlgmr.msrb.gmra.mxu2 %vm741_vm1, %v1314_v9 }
 0xaa7   : > { %1571 = vmatpush.bf16.msrb.mxu2 %v1982_v45 }
 0xaab   : > { %v1312_v10 = vpop.f32.mrf.mxu1  ;;  %1572 = vmatpush.bf16.msrb.mxu2 %v1981_v46 }
 0xab1   : > { %v1463_v11 = vpop.xlane.xlu0 %1462 }
 0xab2   : > { %2175 = vrcp.f32 %v1463_v11 }
 0xab8   : > { %v2176_v12 = vpop.eup %2175 }
 0xab9   : > { %v1465_v15 = vmul.f32 %v2176_v12, %v2172_v62 }
 0xabb   : > { %v1466_v4 = vpack.c.bf16 %v1465_v15, %v1465_v15 }
 0xac2   : > { %v1406_v13 = vpop.f32.mrf.mxu1 }
 0xac3   : > { %v1410_v16 = vpack.c.bf16 %v1406_v13, %v1406_v13 }
 0xac4   : > { %v1468_v3 = vpop.permute.xlu0 %1467 }
 0xac5   : > { %v1473_v17 = vsel %vm779_vm3, %v1468_v3, 0  ;;  %1935 = vmatmul.msk.bf16.vlgmr.msra.gmra.mxu2 %vm741_vm1, %v1410_v16 }
 0xac6   : > { %1482 = vmatpush.bf16.msrb.mxu0 %v1473_v17 }
 0xac9   : > { %1937 = vmatmul.msk.bf16.vlgmr.msrb.gmra.mxu0 %vm741_vm1, %v1466_v4 }
 0xaca   : > { %v1408_v18 = vpop.f32.mrf.mxu1 }
 0xb29   : > { %v1330_v21 = vpop.f32.mrf.mxu2 }
 0xb2a   : > { %v1350_v24 = vadd.f32 %v2914_v39, %v1330_v21 }
 0xb31   : > { %v1332_v22 = vpop.f32.mrf.mxu2 }
 0xb46   : > { %v1484_v23 = vpop.f32.mrf.mxu0 }
 0xb47   : > { %v1488_v27 = vpack.c.bf16 %v1484_v23, %v1484_v23 }
 0xb48   : > { %v1426_v28 = vpop.f32.mrf.mxu2 }
 0xb49   : > { %v1430_v29 = vadd.f32 %v1426_v28, %v1350_v24  ;;  %1938 = vmatmul.msk.bf16.vlgmr.msrb.gmra.mxu1 %vm741_vm1, %v1488_v27 }
 0xb4e   : > { %v1486_v30 = vpop.f32.mrf.mxu0 }
 0xb50   : > { %v1428_v31 = vpop.f32.mrf.mxu2 }
 0xb51   : > { %v2140_v31 = vld [vmem:[#allocation16 + $0xe] ss:$0 sm:$0xff] }
 0xbc6   : > { %v1504_v33 = vpop.f32.mrf.mxu1 }
 0xbc7   : > { %v1508_v34 = vadd.f32 %v1504_v33, %v1430_v29  ;;  %v2139_v29 = vld [vmem:[#allocation16 + $0xd] ss:$0 sm:$0xff] }
 0xbc9   : > { %v1511_v35 = vadd.f32 %v2134_v32, %v1508_v34 }
 0xbcb   : > { %v1512_v36 = vadd.f32 %v1511_v35, %v2880_v41  ;;  %v1986_v41 = vld [vmem:[%s3006_s12 + $0x18] sm:$0xff] }
 0xbcc   : > { %1622 = vmatpush.bf16.msrb.mxu3 %v1986_v41 }
 0xbcd   : > { %v1513_v37 = vsel %vm651_vm0, %v1512_v36, 0.0 }
 0xbce   : > { %v1506_v38 = vpop.f32.mrf.mxu1  ;;  %1514 = vadd.xlane.f32.xlu1 %v1513_v37 }
 0xbd0   : > { %1623 = vmatpush.bf16.msrb.mxu3 %v1985_v49 }
 0xbd4   : > { %1624 = vmatpush.bf16.msrb.mxu3 %v1984_v63 }
 0xbd8   : > { %1625 = vmatpush.bf16.msrb.mxu3 %v1983_v52 }
 0xc41   : > { %v1515_v40 = vpop.xlane.xlu1 %1514 }
 0xc42   : > { %v1516_v39 = vmul.f32 %v1515_v40, %v2869_v14 }
 0xc44   : > { %v1517_v42 = vsub.f32 %v1512_v36, %v1516_v39 }
 0xc46   : > { %v1518_v43 = vmul.f32 %v1517_v42, %v1517_v42 }
 0xc48   : > { %v1519_v44 = vsel %vm651_vm0, %v1518_v43, 0.0 }
 0xc49   : > { %1520 = vadd.xlane.f32.xlu2 %v1519_v44 }
 0xcbc   : > { %v1521_v47 = vpop.xlane.xlu2 %1520 }
 0xcbd   : > { %v1522_v48 = vmul.f32 %v1521_v47, %v2869_v14 }
 0xcbf   : > { %v1523_v50 = vadd.f32 1e-05, %v1522_v48 }
 0xcc1   : > { %2177 = vrsqrt.f32 %v1523_v50  ;;  %vm1530_vm9 = vweird.f32 %v1523_v50 }
 0xcc7   : > { %v2178_v51 = vpop.eup %2177 }
 0xcc8   : > { %v1525_v25 = vmul.f32 %v2178_v51, %v1523_v50  ;;  %vm1531_vm8 = vweird.f32 %v2178_v51 }
 0xcc9   : > { %vm1532_vm10 = vmor %vm1530_vm9, %vm1531_vm8 }
 0xcca   : > { %v1526_v26 = vmul.f32 %v2178_v51, %v1525_v25 }
 0xccc   : > { %v1527_v53 = vmul.f32 0.5, %v1526_v26 }
 0xcce   : > { %v1528_v54 = vsub.f32 1.5, %v1527_v53 }
 0xcd0   : > { %v1529_v55 = vmul.f32 %v2178_v51, %v1528_v54 }
 0xcd2   : > { %v1533_v57 = vsel %vm1532_vm10, %v2178_v51, %v1529_v55 }
 0xcd3   : > { %v1534_v59 = vmul.f32 %v1533_v57, %v1517_v42 }
 0xcd5   : > { %v1537_v60 = vmul.f32 %v2135_v56, %v1534_v59 }
 0xcd7   : > { %v1540_v61 = vadd.f32 %v2136_v58, %v1537_v60 }
 0xcd9   : > { %v1545_v62 = vpack.c.bf16 %v1540_v61, %v1540_v61 }
 0xcdb   : > { %1947 = vmatmul.msk.bf16.vlgmr.msrb.gmra.mxu2 %vm651_vm0, %v1545_v62 }
 0xd5e   : > { %v1574_v1 = vpop.f32.mrf.mxu2 }
 0xd5f   : > { %v1575_v2 = vadd.f32 %v2137_v0, %v1574_v1 }
 0xd61   : > { %v1578_v5 = vmax.f32 %v1575_v2, 0.0 }
 0xd63   : > { %v1587_v6 = vpack.c.bf16 %v1578_v5, %v1578_v5 }
 0xd65   : > { %1964 = vmatmul.msk.bf16.vlgmr.msrb.gmra.mxu3 %vm1614_vm11, %v1587_v6 }
 0xd66   : > { %v1576_v7 = vpop.f32.mrf.mxu2 }
 0xde8   : > { %v1627_v9 = vpop.f32.mrf.mxu3 }
 0xde9   : > { %v1628_v10 = vadd.f32 %v2138_v8, %v1627_v9 }
 0xdeb   : > { %v1631_v11 = vadd.f32 %v1628_v10, %v1540_v61 }
 0xded   : > { %v1632_v12 = vsel %vm651_vm0, %v1631_v11, 0.0 }
 0xdee   : > { %1633 = vadd.xlane.f32.xlu0 %v1632_v12 }
 0xdf0   : > { %v1629_v13 = vpop.f32.mrf.mxu3 }
 0xe61   : > { %v1634_v15 = vpop.xlane.xlu0 %1633 }
 0xe62   : > { %v1635_v16 = vmul.f32 %v1634_v15, %v2869_v14 }
 0xe64   : > { %v1636_v3 = vsub.f32 %v1631_v11, %v1635_v16 }
 0xe66   : > { %v1637_v17 = vmul.f32 %v1636_v3, %v1636_v3 }
 0xe68   : > { %v1638_v4 = vsel %vm651_vm0, %v1637_v17, 0.0 }
 0xe69   : > { %1639 = vadd.xlane.f32.xlu1 %v1638_v4 }
 0xedc   : > { %v1640_v18 = vpop.xlane.xlu1 %1639 }
 0xedd   : > { %v1641_v19 = vmul.f32 %v1640_v18, %v2869_v14 }
 0xedf   : > { %v1642_v20 = vadd.f32 1e-05, %v1641_v19 }
 0xee1   : > { %2179 = vrsqrt.f32 %v1642_v20  ;;  %vm1649_vm13 = vweird.f32 %v1642_v20 }
 0xee7   : > { %v2180_v21 = vpop.eup %2179 }
 0xee8   : > { %v1644_v22 = vmul.f32 %v2180_v21, %v1642_v20  ;;  %vm1650_vm12 = vweird.f32 %v2180_v21 }
 0xee9   : > { %vm1651_vm14 = vmor %vm1649_vm13, %vm1650_vm12 }
 0xeea   : > { %v1645_v23 = vmul.f32 %v2180_v21, %v1644_v22 }
 0xeec   : > { %v1646_v24 = vmul.f32 0.5, %v1645_v23 }
 0xeee   : > { %v1647_v27 = vsub.f32 1.5, %v1646_v24 }
 0xef0   : > { %v1648_v28 = vmul.f32 %v2180_v21, %v1647_v27 }
 0xef2   : > { %v1652_v14 = vsel %vm1651_vm14, %v2180_v21, %v1648_v28 }
 0xef3   : > { %v1653_v30 = vmul.f32 %v1652_v14, %v1636_v3 }
 0xef5   : > { %v1656_v32 = vmul.f32 %v2139_v29, %v1653_v30 }
 0xef7   : > { %v1659_v33 = vadd.f32 %v2140_v31, %v1656_v32 }
 0xef9   : > { %1660 = vst.msk [vmem:[%s620_s22] sm:$0xff] %vm651_vm0, %v1659_v33 }
 0xefa   : > { %2478 = shalt.err (!%p2475_p8)
}
 0xefb   : > { %2023 = dma.vmem_to_hbm [thread:$0]  (%p2665_p5), %s1675_s25, 128, %s1677_s26, %s1662_s17  }
 0xefc PF: > { %s3033_s28 = sld [smem:[#allocation26_spill]] }
 0xefd   : > { %s3034_s20 = sld [smem:[#allocation24_spill]] }
 0xf02   : > { %p2075_p9 = scmp.ge.s32.totalorder %s3033_s28, 2 }
 0xf03   : > { %s1688_s6 = sand.u32 1, %s3034_s20  }
 0xf04   : > { %p2054_p10 = pnand %p2075_p9, %p2669_p6  ;;  %s1689_s29 = scalar_lea.sflag [#allocation4], %s1688_s6 }
 0xf06   : > { %p2055_p11 = pneg %p2054_p10 }
 0xf08   : > { %2516 = dma.done.wait (%p2055_p11), %s1689_s29, 128  }
 0xf09   : > { %2518 = vsyncadd (%p2055_p11), %s1689_s29, 4294967168  ;;  %s3036_s16 = sld [smem:[#allocation27_spill]]  ;;  %s3039_s29 = smov %s2525_s30 }
 0xf0a   : > { %s3037_s22 = sld [smem:[#allocation25_spill]] }
 0xf0b   : > { %s3038_s15 = sld [smem:[#allocation28_spill]] }
 0xf0f   : > { %p29_p12 = scmp.ge.s32.totalorder %s3036_s16, 4  }
 0xf10   : > { %s3040_s30 = smov %s3037_s22 }
 0xf11   :  { %31 = sbr.rel (!%p29_p12) target bundleno = 11 (0xb), region = 151 }
 0xf16   :  { %1695 = vsyncpa [#allocation3], 1 }
 0xf17   :  { %1697 = vsyncpa [#allocation3 + $0x1], 1 }
 0xf18   :  { %1698 = vsyncpa [#allocation6], 1 }
 0xf19   :  { %1699 = vsyncpa [#allocation9], 1 }
 0xf1a   :  { %1700 = vsyncpa [#allocation12], 1 }
 0xf1b   :  { %1701 = vsyncpa [#allocation15], 1 }
 0xf1c   :  { %1702 = vsyncpa [#allocation4], 1 }
 0xf1d   :  { %1704 = vsyncpa [#allocation4 + $0x1], 1 }

</bundles_post_ra>
